<compile_context>
chip_gen: v7x
topology: tpu7x:2x2x1
jax: 0.10.0
libtpu: 0.0.40
codegen_flags: <defaults>
</compile_context>

<pallas_src>
import functools

import jax
import jax.numpy as jnp
from jax.experimental import pallas as pl
from jax.experimental.pallas import tpu as pltpu


def _round_up(x, m):
    return (x + m - 1) // m * m


def _pick_row_tile(Ho, Wo, Wp, C, tn, kh, kw, stride,
                   budget_bytes=6 * 1024 * 1024):
    """Largest output-row chunk whose per-step VMEM footprint fits the budget,
    preferring chunk sizes that minimize padded (wasted) rows."""
    # constant per-step cost: double-buffered bf16 weight block + scale/bias
    budget = budget_bytes - 2 * kh * kw * C * tn * 2 - 4 * tn * 4
    budget = max(budget, 0)
    best_th, best_cost = 1, None
    for th in range(1, min(Ho, 512) + 1):
        th_in = (th - 1) * stride + kh
        vmem = (2 * th_in * Wp * C * 2      # double-buffered bf16 input block
                + th * Wo * tn * 4          # f32 accumulator scratch
                + 2 * th * Wo * tn * 4)     # double-buffered f32 output block
        if vmem > budget and th > 1:
            break
        n_hc = -(-Ho // th)
        cost = (n_hc * th, n_hc)            # (padded rows, #chunks) — smaller is better
        if best_cost is None or cost <= best_cost:
            best_th, best_cost = th, cost
    return best_th


def _conv_bn_relu_kernel(x_ref, w_ref, s_ref, b_ref, o_ref, acc_ref, *,
                         kh, kw, stride, th_out, wo):
    """One (batch*row-chunk, C_out-tile) grid step.

    x_ref : (1, th_in, Wp, C)      bf16   padded activation rows for this chunk
    w_ref : (kh, kw, C, tn)        bf16   weights for this C_out tile
    s_ref : (1, tn)                f32    folded BN scale
    b_ref : (1, tn)                f32    folded BN bias
    o_ref : (1, th_out*wo, tn)     f32    output rows (spatially flattened)
    acc_ref: (th_out*wo, tn)       f32    VMEM accumulator
    """
    x = x_ref[0]                                   # (th_in, Wp, C) in VMEM
    acc_ref[...] = jnp.zeros_like(acc_ref)
    # im2col fused in-kernel: unrolled kh*kw tap loop, one MXU matmul per tap.
    for i in range(kh):
        for j in range(kw):
            if stride == 1:
                xt = x[i:i + th_out, j:j + wo, :]
            else:
                # TODO(synk): strided taps (stride > 1) are supported but not
                # exercised by the test below.
                xt = jax.lax.slice(
                    x, (i, j, 0),
                    (i + (th_out - 1) * stride + 1,
                     j + (wo - 1) * stride + 1, x.shape[2]),
                    (stride, stride, 1))
            xt2 = xt.reshape(th_out * wo, xt.shape[-1])          # (M, C)
            acc_ref[...] += jnp.dot(xt2, w_ref[i, j],
                                    preferred_element_type=jnp.float32)
    # Fused BN + ReLU epilogue, single output write.
    y = acc_ref[...] * s_ref[...] + b_ref[...]
    o_ref[0] = jnp.maximum(y, 0.0).astype(o_ref.dtype)


def conv_bn_relu(x_nchw, w_oihw, gamma, beta, running_mean, running_var, *,
                 stride=1, padding=1, eps=1e-5, out_dtype=jnp.float32):
    """relu(batch_norm(conv2d(x, w, stride, padding)))  — NCHW in / NCHW out."""
    N, C, H, W = x_nchw.shape
    Co, Ci, kh, kw = w_oihw.shape
    assert Ci == C, "in_chan mismatch"

    # Fold BatchNorm (inference mode) into per-channel scale / bias.
    scale = (gamma / jnp.sqrt(running_var + eps)).astype(jnp.float32)
    bias = (beta - running_mean * scale).astype(jnp.float32)

    # NHWC, bf16 MXU operands (accumulation stays f32 inside the kernel).
    x = jnp.transpose(x_nchw, (0, 2, 3, 1)).astype(jnp.bfloat16)
    Ho = (H + 2 * padding - kh) // stride + 1
    Wo = (W + 2 * padding - kw) // stride + 1
    Wp = W + 2 * padding

    # C_out tiling: no padding when Co <= 256 (full-dim BlockSpec rule),
    # otherwise pad once at weight-prep time to lane-dense 128/256 tiles.
    if Co <= 256:
        Co_p, tn = Co, Co
    else:
        Co_p = _round_up(Co, 128)
        tn = 256 if Co_p % 256 == 0 else 128
    n_co = Co_p // tn

    # Row chunking: bound per-step VMEM so the kernel scales to real resolutions
    # (v7x has only 64 MiB VMEM); for small images this is one chunk = whole image.
    th_out = _pick_row_tile(Ho, Wo, Wp, C, tn, kh, kw, stride)
    n_hc = -(-Ho // th_out)
    Ho_p = n_hc * th_out
    th_in = (th_out - 1) * stride + kh
    Hp_needed = (Ho_p - 1) * stride + kh
    Hp_full = max(H + 2 * padding, Hp_needed)

    # Single spatial zero-pad (required by conv semantics).
    xp = jnp.pad(x, ((0, 0),
                     (padding, Hp_full - H - padding),
                     (padding, padding),
                     (0, 0)))
    if n_hc == 1:
        x_chunks = xp[:, :th_in][:, None]              # (N, 1, th_in, Wp, C), no gather
    else:
        starts = jnp.arange(n_hc) * (th_out * stride)
        idx = starts[:, None] + jnp.arange(th_in)[None, :]
        x_chunks = xp[:, idx]                          # (N, n_hc, th_in, Wp, C), ~1.0x-1.1x copy
    B = N * n_hc
    x_chunks = x_chunks.reshape(B, th_in, Wp, C)

    # Weights: OIHW -> (kh, kw, C_in, C_out), bf16; pad C_out only if tiling needs it.
    wmat = jnp.transpose(w_oihw, (2, 3, 1, 0)).astype(jnp.bfloat16)
    if Co_p != Co:
        wmat = jnp.pad(wmat, ((0, 0), (0, 0), (0, 0), (0, Co_p - Co)))
        scale = jnp.pad(scale, (0, Co_p - Co))
        bias = jnp.pad(bias, (0, Co_p - Co))
    s2 = scale.reshape(1, Co_p)
    b2 = bias.reshape(1, Co_p)

    kernel = functools.partial(_conv_bn_relu_kernel, kh=kh, kw=kw,
                               stride=stride, th_out=th_out, wo=Wo)

    out = pl.pallas_call(
        kernel,
        out_shape=jax.ShapeDtypeStruct((B, th_out * Wo, Co_p), out_dtype),
        grid_spec=pltpu.PrefetchScalarGridSpec(
            num_scalar_prefetch=0,
            grid=(B, n_co),
            in_specs=[
                pl.BlockSpec((1, th_in, Wp, C), lambda b, co: (b, 0, 0, 0)),
                pl.BlockSpec((kh, kw, C, tn), lambda b, co: (0, 0, 0, co)),
                pl.BlockSpec((1, tn), lambda b, co: (0, co)),
                pl.BlockSpec((1, tn), lambda b, co: (0, co)),
            ],
            out_specs=pl.BlockSpec((1, th_out * Wo, tn), lambda b, co: (b, 0, co)),
            scratch_shapes=[pltpu.VMEM((th_out * Wo, tn), jnp.float32)],
        ),
        compiler_params=pltpu.CompilerParams(
            dimension_semantics=("parallel", "parallel")),
    )(x_chunks, wmat, s2, b2)

    out = out.reshape(N, n_hc * th_out, Wo, Co_p)[:, :Ho, :, :Co]
    return jnp.transpose(out, (0, 3, 1, 2))            # back to NCHW


def _reference(x_nchw, w_oihw, scale, bias, stride, padding):
    y = jax.lax.conv_general_dilated(
        x_nchw.astype(jnp.float32), w_oihw.astype(jnp.float32),
        window_strides=(stride, stride),
        padding=((padding, padding), (padding, padding)),
        dimension_numbers=("NCHW", "OIHW", "NCHW"),
        precision=jax.lax.Precision.HIGHEST)
    y = y * scale[None, :, None, None] + bias[None, :, None, None]
    return jnp.maximum(y, 0.0)


if __name__ == "__main__":
    key = jax.random.PRNGKey(0)
    k1, k2 = jax.random.split(key)

    # Small shapes consistent with ConvBNReLU defaults (ks=3, stride=1, padding=1).
    N, C, H, W = 2, 16, 16, 16
    Co, ks, stride, padding = 32, 3, 1, 1

    x = jax.random.normal(k1, (N, C, H, W), jnp.float32)
    # kaiming_normal_(a=1): std = 1/sqrt(fan_in)
    fan_in = C * ks * ks
    w = jax.random.normal(k2, (Co, C, ks, ks), jnp.float32) * (1.0 / fan_in) ** 0.5
    # BatchNorm2d defaults (inference): gamma=1, beta=0, running_mean=0, running_var=1
    gamma = jnp.ones((Co,), jnp.float32)
    beta = jnp.zeros((Co,), jnp.float32)
    running_mean = jnp.zeros((Co,), jnp.float32)
    running_var = jnp.ones((Co,), jnp.float32)

    fwd = jax.jit(functools.partial(conv_bn_relu, stride=stride, padding=padding))
    out = fwd(x, w, gamma, beta, running_mean, running_var)
    out = jax.block_until_ready(out)

    assert out.shape == (N, Co, H, W), out.shape
    assert bool(jnp.all(jnp.isfinite(out)))

    # Correctness vs an f32 XLA reference on the same bf16-rounded operands
    # (kernel accumulates in f32, so only summation order differs).
    eps = 1e-5
    scale = gamma / jnp.sqrt(running_var + eps)
    bias = beta - running_mean * scale
    xr = x.astype(jnp.bfloat16).astype(jnp.float32)
    wr = w.astype(jnp.bfloat16).astype(jnp.float32)
    ref = _reference(xr, wr, scale, bias, stride, padding)
    err = float(jnp.max(jnp.abs(out - ref)))
    assert err < 1e-2 * (1.0 + float(jnp.max(jnp.abs(ref)))), f"max abs err {err}"

    print("KERNEL_OK")
</pallas_src>

<mosaic_0001>
module attributes {stable_mosaic.version = 11 : i64} {
  func.func @_conv_bn_relu_kernel(%arg0: i32, %arg1: i32, %arg2: memref<1x18x18x16xbf16, #tpu.memory_space<vmem>>, %arg3: memref<3x3x16x32xbf16, #tpu.memory_space<vmem>>, %arg4: memref<1x32xf32, #tpu.memory_space<vmem>>, %arg5: memref<1x32xf32, #tpu.memory_space<vmem>>, %arg6: memref<1x256x32xf32, #tpu.memory_space<vmem>>, %arg7: memref<256x32xf32, #tpu.memory_space<vmem>>) attributes {dimension_semantics = [#tpu.dimension_semantics<parallel>, #tpu.dimension_semantics<parallel>], iteration_bounds = array<i64: 2, 1>, scalar_prefetch = 0 : i64, scratch_operands = 1 : i64, tpu.core_type = #tpu.core_type<tc>, window_params = [{transform_indices = @transform_0, window_bounds = array<i64: 1, 18, 18, 16>}, {transform_indices = @transform_1, window_bounds = array<i64: 3, 3, 16, 32>}, {transform_indices = @transform_2, window_bounds = array<i64: 1, 32>}, {transform_indices = @transform_3, window_bounds = array<i64: 1, 32>}, {transform_indices = @transform_4, window_bounds = array<i64: 1, 256, 32>}]} {
    %c0 = arith.constant 0 : index
    %c0_0 = arith.constant 0 : index
    %c0_1 = arith.constant 0 : index
    %c0_2 = arith.constant 0 : index
    %0 = vector.load %arg2[%c0, %c0_0, %c0_1, %c0_2] : memref<1x18x18x16xbf16, #tpu.memory_space<vmem>>, vector<1x18x18x16xbf16>
    %1 = vector.shape_cast %0 : vector<1x18x18x16xbf16> to vector<18x18x16xbf16>
    %cst = arith.constant 0.000000e+00 : f32
    %2 = vector.broadcast %cst : f32 to vector<256x32xf32>
    %c0_3 = arith.constant 0 : index
    %c0_4 = arith.constant 0 : index
    %3 = vector.load %arg7[%c0_3, %c0_4] : memref<256x32xf32, #tpu.memory_space<vmem>>, vector<256x32xf32>
    tpu.vector_store %arg7[%c0_3, %c0_4], %2 {strides = array<i32>} : memref<256x32xf32, #tpu.memory_space<vmem>>, vector<256x32xf32>,
    %4 = vector.extract_strided_slice %1 {offsets = [0, 0, 0], sizes = [16, 16, 16], strides = [1, 1, 1]} : vector<18x18x16xbf16> to vector<16x16x16xbf16>
    %5 = vector.shape_cast %4 : vector<16x16x16xbf16> to vector<256x16xbf16>
    %c0_5 = arith.constant 0 : index
    %c0_6 = arith.constant 0 : index
    %6 = vector.load %arg7[%c0_5, %c0_6] : memref<256x32xf32, #tpu.memory_space<vmem>>, vector<256x32xf32>
    %c0_7 = arith.constant 0 : index
    %c0_8 = arith.constant 0 : index
    %c0_9 = arith.constant 0 : index
    %c0_10 = arith.constant 0 : index
    %7 = vector.load %arg3[%c0_7, %c0_8, %c0_9, %c0_10] : memref<3x3x16x32xbf16, #tpu.memory_space<vmem>>, vector<1x1x16x32xbf16>
    %8 = vector.shape_cast %7 : vector<1x1x16x32xbf16> to vector<16x32xbf16>
    %cst_11 = arith.constant dense<0.000000e+00> : vector<256x32xf32>
    %9 = tpu.matmul %5, %8, %cst_11 {dimension_numbers = #tpu.dot_dimension_numbers<[1], [0], [0], [1], [0, 0, 1, 1], [], []>} : vector<256x16xbf16>, vector<16x32xbf16>, vector<256x32xf32> -> vector<256x32xf32>
    %10 = arith.addf %6, %9 : vector<256x32xf32>
    %c0_12 = arith.constant 0 : index
    %c0_13 = arith.constant 0 : index
    %11 = vector.load %arg7[%c0_12, %c0_13] : memref<256x32xf32, #tpu.memory_space<vmem>>, vector<256x32xf32>
    tpu.vector_store %arg7[%c0_12, %c0_13], %10 {strides = array<i32>} : memref<256x32xf32, #tpu.memory_space<vmem>>, vector<256x32xf32>,
    %12 = vector.extract_strided_slice %1 {offsets = [0, 1, 0], sizes = [16, 16, 16], strides = [1, 1, 1]} : vector<18x18x16xbf16> to vector<16x16x16xbf16>
    %13 = vector.shape_cast %12 : vector<16x16x16xbf16> to vector<256x16xbf16>
    %c0_14 = arith.constant 0 : index
    %c0_15 = arith.constant 0 : index
    %14 = vector.load %arg7[%c0_14, %c0_15] : memref<256x32xf32, #tpu.memory_space<vmem>>, vector<256x32xf32>
    %c0_16 = arith.constant 0 : index
    %c1 = arith.constant 1 : index
    %c0_17 = arith.constant 0 : index
    %c0_18 = arith.constant 0 : index
    %15 = vector.load %arg3[%c0_16, %c1, %c0_17, %c0_18] : memref<3x3x16x32xbf16, #tpu.memory_space<vmem>>, vector<1x1x16x32xbf16>
    %16 = vector.shape_cast %15 : vector<1x1x16x32xbf16> to vector<16x32xbf16>
    %cst_19 = arith.constant dense<0.000000e+00> : vector<256x32xf32>
    %17 = tpu.matmul %13, %16, %cst_19 {dimension_numbers = #tpu.dot_dimension_numbers<[1], [0], [0], [1], [0, 0, 1, 1], [], []>} : vector<256x16xbf16>, vector<16x32xbf16>, vector<256x32xf32> -> vector<256x32xf32>
    %18 = arith.addf %14, %17 : vector<256x32xf32>
    %c0_20 = arith.constant 0 : index
    %c0_21 = arith.constant 0 : index
    %19 = vector.load %arg7[%c0_20, %c0_21] : memref<256x32xf32, #tpu.memory_space<vmem>>, vector<256x32xf32>
    tpu.vector_store %arg7[%c0_20, %c0_21], %18 {strides = array<i32>} : memref<256x32xf32, #tpu.memory_space<vmem>>, vector<256x32xf32>,
    %20 = vector.extract_strided_slice %1 {offsets = [0, 2, 0], sizes = [16, 16, 16], strides = [1, 1, 1]} : vector<18x18x16xbf16> to vector<16x16x16xbf16>
    %21 = vector.shape_cast %20 : vector<16x16x16xbf16> to vector<256x16xbf16>
    %c0_22 = arith.constant 0 : index
    %c0_23 = arith.constant 0 : index
    %22 = vector.load %arg7[%c0_22, %c0_23] : memref<256x32xf32, #tpu.memory_space<vmem>>, vector<256x32xf32>
    %c0_24 = arith.constant 0 : index
    %c2 = arith.constant 2 : index
    %c0_25 = arith.constant 0 : index
    %c0_26 = arith.constant 0 : index
    %23 = vector.load %arg3[%c0_24, %c2, %c0_25, %c0_26] : memref<3x3x16x32xbf16, #tpu.memory_space<vmem>>, vector<1x1x16x32xbf16>
    %24 = vector.shape_cast %23 : vector<1x1x16x32xbf16> to vector<16x32xbf16>
    %cst_27 = arith.constant dense<0.000000e+00> : vector<256x32xf32>
    %25 = tpu.matmul %21, %24, %cst_27 {dimension_numbers = #tpu.dot_dimension_numbers<[1], [0], [0], [1], [0, 0, 1, 1], [], []>} : vector<256x16xbf16>, vector<16x32xbf16>, vector<256x32xf32> -> vector<256x32xf32>
    %26 = arith.addf %22, %25 : vector<256x32xf32>
    %c0_28 = arith.constant 0 : index
    %c0_29 = arith.constant 0 : index
    %27 = vector.load %arg7[%c0_28, %c0_29] : memref<256x32xf32, #tpu.memory_space<vmem>>, vector<256x32xf32>
    tpu.vector_store %arg7[%c0_28, %c0_29], %26 {strides = array<i32>} : memref<256x32xf32, #tpu.memory_space<vmem>>, vector<256x32xf32>,
    %28 = vector.extract_strided_slice %1 {offsets = [1, 0, 0], sizes = [16, 16, 16], strides = [1, 1, 1]} : vector<18x18x16xbf16> to vector<16x16x16xbf16>
    %29 = vector.shape_cast %28 : vector<16x16x16xbf16> to vector<256x16xbf16>
    %c0_30 = arith.constant 0 : index
    %c0_31 = arith.constant 0 : index
    %30 = vector.load %arg7[%c0_30, %c0_31] : memref<256x32xf32, #tpu.memory_space<vmem>>, vector<256x32xf32>
    %c1_32 = arith.constant 1 : index
    %c0_33 = arith.constant 0 : index
    %c0_34 = arith.constant 0 : index
    %c0_35 = arith.constant 0 : index
    %31 = vector.load %arg3[%c1_32, %c0_33, %c0_34, %c0_35] : memref<3x3x16x32xbf16, #tpu.memory_space<vmem>>, vector<1x1x16x32xbf16>
    %32 = vector.shape_cast %31 : vector<1x1x16x32xbf16> to vector<16x32xbf16>
    %cst_36 = arith.constant dense<0.000000e+00> : vector<256x32xf32>
    %33 = tpu.matmul %29, %32, %cst_36 {dimension_numbers = #tpu.dot_dimension_numbers<[1], [0], [0], [1], [0, 0, 1, 1], [], []>} : vector<256x16xbf16>, vector<16x32xbf16>, vector<256x32xf32> -> vector<256x32xf32>
    %34 = arith.addf %30, %33 : vector<256x32xf32>
    %c0_37 = arith.constant 0 : index
    %c0_38 = arith.constant 0 : index
    %35 = vector.load %arg7[%c0_37, %c0_38] : memref<256x32xf32, #tpu.memory_space<vmem>>, vector<256x32xf32>
    tpu.vector_store %arg7[%c0_37, %c0_38], %34 {strides = array<i32>} : memref<256x32xf32, #tpu.memory_space<vmem>>, vector<256x32xf32>,
    %36 = vector.extract_strided_slice %1 {offsets = [1, 1, 0], sizes = [16, 16, 16], strides = [1, 1, 1]} : vector<18x18x16xbf16> to vector<16x16x16xbf16>
    %37 = vector.shape_cast %36 : vector<16x16x16xbf16> to vector<256x16xbf16>
    %c0_39 = arith.constant 0 : index
    %c0_40 = arith.constant 0 : index
    %38 = vector.load %arg7[%c0_39, %c0_40] : memref<256x32xf32, #tpu.memory_space<vmem>>, vector<256x32xf32>
    %c1_41 = arith.constant 1 : index
    %c1_42 = arith.constant 1 : index
    %c0_43 = arith.constant 0 : index
    %c0_44 = arith.constant 0 : index
    %39 = vector.load %arg3[%c1_41, %c1_42, %c0_43, %c0_44] : memref<3x3x16x32xbf16, #tpu.memory_space<vmem>>, vector<1x1x16x32xbf16>
    %40 = vector.shape_cast %39 : vector<1x1x16x32xbf16> to vector<16x32xbf16>
    %cst_45 = arith.constant dense<0.000000e+00> : vector<256x32xf32>
    %41 = tpu.matmul %37, %40, %cst_45 {dimension_numbers = #tpu.dot_dimension_numbers<[1], [0], [0], [1], [0, 0, 1, 1], [], []>} : vector<256x16xbf16>, vector<16x32xbf16>, vector<256x32xf32> -> vector<256x32xf32>
    %42 = arith.addf %38, %41 : vector<256x32xf32>
    %c0_46 = arith.constant 0 : index
    %c0_47 = arith.constant 0 : index
    %43 = vector.load %arg7[%c0_46, %c0_47] : memref<256x32xf32, #tpu.memory_space<vmem>>, vector<256x32xf32>
    tpu.vector_store %arg7[%c0_46, %c0_47], %42 {strides = array<i32>} : memref<256x32xf32, #tpu.memory_space<vmem>>, vector<256x32xf32>,
    %44 = vector.extract_strided_slice %1 {offsets = [1, 2, 0], sizes = [16, 16, 16], strides = [1, 1, 1]} : vector<18x18x16xbf16> to vector<16x16x16xbf16>
    %45 = vector.shape_cast %44 : vector<16x16x16xbf16> to vector<256x16xbf16>
    %c0_48 = arith.constant 0 : index
    %c0_49 = arith.constant 0 : index
    %46 = vector.load %arg7[%c0_48, %c0_49] : memref<256x32xf32, #tpu.memory_space<vmem>>, vector<256x32xf32>
    %c1_50 = arith.constant 1 : index
    %c2_51 = arith.constant 2 : index
    %c0_52 = arith.constant 0 : index
    %c0_53 = arith.constant 0 : index
    %47 = vector.load %arg3[%c1_50, %c2_51, %c0_52, %c0_53] : memref<3x3x16x32xbf16, #tpu.memory_space<vmem>>, vector<1x1x16x32xbf16>
    %48 = vector.shape_cast %47 : vector<1x1x16x32xbf16> to vector<16x32xbf16>
    %cst_54 = arith.constant dense<0.000000e+00> : vector<256x32xf32>
    %49 = tpu.matmul %45, %48, %cst_54 {dimension_numbers = #tpu.dot_dimension_numbers<[1], [0], [0], [1], [0, 0, 1, 1], [], []>} : vector<256x16xbf16>, vector<16x32xbf16>, vector<256x32xf32> -> vector<256x32xf32>
    %50 = arith.addf %46, %49 : vector<256x32xf32>
    %c0_55 = arith.constant 0 : index
    %c0_56 = arith.constant 0 : index
    %51 = vector.load %arg7[%c0_55, %c0_56] : memref<256x32xf32, #tpu.memory_space<vmem>>, vector<256x32xf32>
    tpu.vector_store %arg7[%c0_55, %c0_56], %50 {strides = array<i32>} : memref<256x32xf32, #tpu.memory_space<vmem>>, vector<256x32xf32>,
    %52 = vector.extract_strided_slice %1 {offsets = [2, 0, 0], sizes = [16, 16, 16], strides = [1, 1, 1]} : vector<18x18x16xbf16> to vector<16x16x16xbf16>
    %53 = vector.shape_cast %52 : vector<16x16x16xbf16> to vector<256x16xbf16>
    %c0_57 = arith.constant 0 : index
    %c0_58 = arith.constant 0 : index
    %54 = vector.load %arg7[%c0_57, %c0_58] : memref<256x32xf32, #tpu.memory_space<vmem>>, vector<256x32xf32>
    %c2_59 = arith.constant 2 : index
    %c0_60 = arith.constant 0 : index
    %c0_61 = arith.constant 0 : index
    %c0_62 = arith.constant 0 : index
    %55 = vector.load %arg3[%c2_59, %c0_60, %c0_61, %c0_62] : memref<3x3x16x32xbf16, #tpu.memory_space<vmem>>, vector<1x1x16x32xbf16>
    %56 = vector.shape_cast %55 : vector<1x1x16x32xbf16> to vector<16x32xbf16>
    %cst_63 = arith.constant dense<0.000000e+00> : vector<256x32xf32>
    %57 = tpu.matmul %53, %56, %cst_63 {dimension_numbers = #tpu.dot_dimension_numbers<[1], [0], [0], [1], [0, 0, 1, 1], [], []>} : vector<256x16xbf16>, vector<16x32xbf16>, vector<256x32xf32> -> vector<256x32xf32>
    %58 = arith.addf %54, %57 : vector<256x32xf32>
    %c0_64 = arith.constant 0 : index
    %c0_65 = arith.constant 0 : index
    %59 = vector.load %arg7[%c0_64, %c0_65] : memref<256x32xf32, #tpu.memory_space<vmem>>, vector<256x32xf32>
    tpu.vector_store %arg7[%c0_64, %c0_65], %58 {strides = array<i32>} : memref<256x32xf32, #tpu.memory_space<vmem>>, vector<256x32xf32>,
    %60 = vector.extract_strided_slice %1 {offsets = [2, 1, 0], sizes = [16, 16, 16], strides = [1, 1, 1]} : vector<18x18x16xbf16> to vector<16x16x16xbf16>
    %61 = vector.shape_cast %60 : vector<16x16x16xbf16> to vector<256x16xbf16>
    %c0_66 = arith.constant 0 : index
    %c0_67 = arith.constant 0 : index
    %62 = vector.load %arg7[%c0_66, %c0_67] : memref<256x32xf32, #tpu.memory_space<vmem>>, vector<256x32xf32>
    %c2_68 = arith.constant 2 : index
    %c1_69 = arith.constant 1 : index
    %c0_70 = arith.constant 0 : index
    %c0_71 = arith.constant 0 : index
    %63 = vector.load %arg3[%c2_68, %c1_69, %c0_70, %c0_71] : memref<3x3x16x32xbf16, #tpu.memory_space<vmem>>, vector<1x1x16x32xbf16>
    %64 = vector.shape_cast %63 : vector<1x1x16x32xbf16> to vector<16x32xbf16>
    %cst_72 = arith.constant dense<0.000000e+00> : vector<256x32xf32>
    %65 = tpu.matmul %61, %64, %cst_72 {dimension_numbers = #tpu.dot_dimension_numbers<[1], [0], [0], [1], [0, 0, 1, 1], [], []>} : vector<256x16xbf16>, vector<16x32xbf16>, vector<256x32xf32> -> vector<256x32xf32>
    %66 = arith.addf %62, %65 : vector<256x32xf32>
    %c0_73 = arith.constant 0 : index
    %c0_74 = arith.constant 0 : index
    %67 = vector.load %arg7[%c0_73, %c0_74] : memref<256x32xf32, #tpu.memory_space<vmem>>, vector<256x32xf32>
    tpu.vector_store %arg7[%c0_73, %c0_74], %66 {strides = array<i32>} : memref<256x32xf32, #tpu.memory_space<vmem>>, vector<256x32xf32>,
    %68 = vector.extract_strided_slice %1 {offsets = [2, 2, 0], sizes = [16, 16, 16], strides = [1, 1, 1]} : vector<18x18x16xbf16> to vector<16x16x16xbf16>
    %69 = vector.shape_cast %68 : vector<16x16x16xbf16> to vector<256x16xbf16>
    %c0_75 = arith.constant 0 : index
    %c0_76 = arith.constant 0 : index
    %70 = vector.load %arg7[%c0_75, %c0_76] : memref<256x32xf32, #tpu.memory_space<vmem>>, vector<256x32xf32>
    %c2_77 = arith.constant 2 : index
    %c2_78 = arith.constant 2 : index
    %c0_79 = arith.constant 0 : index
    %c0_80 = arith.constant 0 : index
    %71 = vector.load %arg3[%c2_77, %c2_78, %c0_79, %c0_80] : memref<3x3x16x32xbf16, #tpu.memory_space<vmem>>, vector<1x1x16x32xbf16>
    %72 = vector.shape_cast %71 : vector<1x1x16x32xbf16> to vector<16x32xbf16>
    %cst_81 = arith.constant dense<0.000000e+00> : vector<256x32xf32>
    %73 = tpu.matmul %69, %72, %cst_81 {dimension_numbers = #tpu.dot_dimension_numbers<[1], [0], [0], [1], [0, 0, 1, 1], [], []>} : vector<256x16xbf16>, vector<16x32xbf16>, vector<256x32xf32> -> vector<256x32xf32>
    %74 = arith.addf %70, %73 : vector<256x32xf32>
    %c0_82 = arith.constant 0 : index
    %c0_83 = arith.constant 0 : index
    %75 = vector.load %arg7[%c0_82, %c0_83] : memref<256x32xf32, #tpu.memory_space<vmem>>, vector<256x32xf32>
    tpu.vector_store %arg7[%c0_82, %c0_83], %74 {strides = array<i32>} : memref<256x32xf32, #tpu.memory_space<vmem>>, vector<256x32xf32>,
    %c0_84 = arith.constant 0 : index
    %c0_85 = arith.constant 0 : index
    %76 = vector.load %arg7[%c0_84, %c0_85] : memref<256x32xf32, #tpu.memory_space<vmem>>, vector<256x32xf32>
    %c0_86 = arith.constant 0 : index
    %c0_87 = arith.constant 0 : index
    %77 = vector.load %arg4[%c0_86, %c0_87] : memref<1x32xf32, #tpu.memory_space<vmem>>, vector<1x32xf32>
    %78 = vector.broadcast %77 : vector<1x32xf32> to vector<256x32xf32>
    %79 = arith.mulf %76, %78 : vector<256x32xf32>
    %c0_88 = arith.constant 0 : index
    %c0_89 = arith.constant 0 : index
    %80 = vector.load %arg5[%c0_88, %c0_89] : memref<1x32xf32, #tpu.memory_space<vmem>>, vector<1x32xf32>
    %81 = vector.broadcast %80 : vector<1x32xf32> to vector<256x32xf32>
    %82 = arith.addf %79, %81 : vector<256x32xf32>
    %cst_90 = arith.constant 0.000000e+00 : f32
    %83 = vector.broadcast %cst_90 : f32 to vector<256x32xf32>
    %84 = arith.maximumf %82, %83 : vector<256x32xf32>
    %c0_91 = arith.constant 0 : index
    %c0_92 = arith.constant 0 : index
    %c0_93 = arith.constant 0 : index
    %85 = vector.load %arg6[%c0_91, %c0_92, %c0_93] : memref<1x256x32xf32, #tpu.memory_space<vmem>>, vector<1x256x32xf32>
    %86 = vector.shape_cast %85 : vector<1x256x32xf32> to vector<256x32xf32>
    %87 = vector.shape_cast %84 : vector<256x32xf32> to vector<1x256x32xf32>
    tpu.vector_store %arg6[%c0_91, %c0_92, %c0_93], %87 {strides = array<i32>} : memref<1x256x32xf32, #tpu.memory_space<vmem>>, vector<1x256x32xf32>,
    return
  }
  func.func @transform_0(%arg0: i32, %arg1: i32) -> (i32, i32, i32, i32) {
    %c0_i32 = arith.constant 0 : i32
    %c0_i32_0 = arith.constant 0 : i32
    %c0_i32_1 = arith.constant 0 : i32
    %c0_i32_2 = arith.constant 0 : i32
    return %arg0, %c0_i32, %c0_i32_0, %c0_i32_1 : i32, i32, i32, i32
  }
  func.func @transform_1(%arg0: i32, %arg1: i32) -> (i32, i32, i32, i32) {
    %c0_i32 = arith.constant 0 : i32
    %c0_i32_0 = arith.constant 0 : i32
    %c0_i32_1 = arith.constant 0 : i32
    %c0_i32_2 = arith.constant 0 : i32
    return %c0_i32, %c0_i32_0, %c0_i32_1, %arg1 : i32, i32, i32, i32
  }
  func.func @transform_2(%arg0: i32, %arg1: i32) -> (i32, i32) {
    %c0_i32 = arith.constant 0 : i32
    %c0_i32_0 = arith.constant 0 : i32
    return %c0_i32, %arg1 : i32, i32
  }
  func.func @transform_3(%arg0: i32, %arg1: i32) -> (i32, i32) {
    %c0_i32 = arith.constant 0 : i32
    %c0_i32_0 = arith.constant 0 : i32
    return %c0_i32, %arg1 : i32, i32
  }
  func.func @transform_4(%arg0: i32, %arg1: i32) -> (i32, i32, i32) {
    %c0_i32 = arith.constant 0 : i32
    %c0_i32_0 = arith.constant 0 : i32
    return %arg0, %c0_i32, %arg1 : i32, i32, i32
  }
}

</mosaic_0001>

<bundles_post_ra>
// kernel: conv_bn_relu.1
= control target key start
LH: loop header
LB: loop body
LE: loop exit
PB: predicated region body
PF: predicated region fallthrough
CT: control target
= control target key end

     0   :  { %9 = vsyncpa [#allocation4], 0  ;;  %s6509_s0 = inlined_call_operand.vmem [shape: bf16[2,18,18,16], index: 0, kind: input, shape index: {}]   ;;  %s6510_s1 = inlined_call_operand.vmem [shape: bf16[3,3,16,32], index: 1, kind: input, shape index: {}]   ;;  %s6511_s2 = inlined_call_operand.vmem [shape: f32[1,32], index: 2, kind: input, shape index: {}]   ;;  %s6512_s3 = inlined_call_operand.vmem [shape: f32[1,32], index: 3, kind: input, shape index: {}]   ;;  %s6513_s4 = inlined_call_operand.hbm [shape: f32[2,256,32], index: 4, kind: output, shape index: {}]  }
   0x1   :  { %11 = vsyncpa [#allocation4 + $0x1], 0  ;;  %s4894_s15 = smov 0   ;;  %s4896_s16 = smov 0  }
   0x2   :  { %s4898_s17 = smov 0   ;;  %s4900_s18 = smov 0  }
   0x3   :  { %s4902_s19 = smov 0   ;;  %s4904_s20 = smov 0  }
   0x4 LB: > { %s3979_s21 = sadd.s32 4294967295, %s4863_s20   ;;  %s3980_s22 = sadd.s32 4294967294, %s4863_s20   ;;  %s4863_s20 = sphi %s4904_s20, %s17_s20   ;;  %s4859_s19 = sphi %s4902_s19, %s6633_s19   ;;  %s4855_s18 = sphi %s4900_s18, %s6632_s18   ;;  %s4851_s17 = sphi %s4898_s17, %s6631_s17   ;;  %s4847_s16 = sphi %s4896_s16, %s6630_s16   ;;  %s4843_s15 = sphi %s4894_s15, %s6629_s15  }
   0x5   : > { %s29_s23 = sadd.s32 1, %s4859_s19  ;;  %s142_s24 = sadd.s32 1, %s4851_s17 }
   0x6   : > { %p31_p0 = scmp.ge.s32.totalorder %s29_s23, 2  ;;  %p152_p1 = scmp.ne.s32.totalorder %s4851_s17, %s4847_s16 }
   0x7   : > { %p153_p2 = scmp.eq.s32.totalorder %s3979_s21, 1  ;;  %p158_p3 = scmp.ne.s32.totalorder %s4847_s16, %s4843_s15 }
   0x8   : > { %s6635_s23 = smov (%p31_p0, %s29_s23), 0  ;;  %p159_p5 = scmp.eq.s32.totalorder %s3980_s22, 1 }
   0x9   : > { %p4934_p4 = por %p153_p2, %p152_p1  ;;  %s137_s26 = ssub.s32 %s4859_s19, %s6635_s23 }
   0xa   : > { %p3986_p6 = scmp.ge.s32.totalorder %s4863_s20, 1  ;;  %p140_p7 = scmp.eq.s32.totalorder %s137_s26, 0 }
   0xb   : > { %p4941_p8 = por %p159_p5, %p158_p3  ;;  %p204_p9 = scmp.lt.s32.totalorder %s4863_s20, 3 }
   0xc   : > { %s4947_s28 = scalar_select %p140_p7, %s4851_s17, %s142_s24  }
   0xd   : > { %p205_p10 = pnand %p3986_p6, %p204_p9 }
   0xf   : > { %208 = sbr.rel (%p205_p10) target bundleno = 589 (0x24d), region = 36 }
  0x16   : > { %v4758_v0 = vld [vmem:[%s6510_s1] sm:$0xff]   ;;  %p240_p11 = scmp.lt.s32.totalorder %s4855_s18, 1  ;;  %v4760_v1 = vld [vmem:[%s6510_s1 + $0x8] sm:$0xff]   ;;  %v4960_v2 = vld [vmem:[%s6510_s1 + $0x10] sm:$0xff]   ;;  %vm463_vm0 = vcmask 130048   ;;  %vm1502_vm3 = vcmask 1042432  }
  0x17   : > { %4697 = vmatprep.subr.bf16.mxu1 %v4758_v0  ;;  %4391 = vmatprep.subr.bf16.mxu0 %v4758_v0  ;;  %v5000_v16 = vld [vmem:[%s6510_s1 + $0x18] sm:$0xff]   ;;  %vm737_vm1 = vsmask.f32 3328  ;;  %vm738_vm2 = vsmask.f32 7440  ;;  %v5047_v37 = vld [vmem:[%s6510_s1 + $0x20] sm:$0xff]  }
  0x18   : > { %s241_s7 = scalar_select %p240_p11, %s4855_s18, 1  ;;  %4698 = vmatpush3.bf16.msra.mxu1 %v4758_v0  ;;  %4392 = vmatpush3.bf16.msra.mxu0 %v4758_v0  ;;  %vm1503_vm4 = vcmask 1046532   ;;  %vm5168_vm5 = vmor %vm737_vm1, %vm738_vm2  ;;  %vm310_vm7 = vcmask 261120  }
  0x19   : > { %4425 = vmatprep.subr.bf16.mxu1 %v4760_v1  ;;  %4459 = vmatprep.subr.bf16.mxu0 %v4960_v2  ;;  %vm5193_vm6 = vmor %vm1502_vm3, %vm1503_vm4  ;;  %s4237_s24 = sshll.u32 %s4855_s18, 12 }
  0x1a   : > { %s4699_s10 = smul.u32 216, %s241_s7  ;;  %s6451_s5 = scalar_lea.hbm %s6513_s4, %s4237_s24 }
  0x1b   : > { %s4866_s7 = smov [#allocation3]  }
  0x1c   : > { %s4966_s13 = scalar_lea.vmem %s6509_s0, %s4699_s10  ;;  %s237_s10 = sand.u32 1, %s4847_s16  }
  0x1d   : > { %v4969_v3 = vld [vmem:[%s4966_s13 + $0x60] sm:$0xf]  ;;  %v4972_v4 = vld [vmem:[%s4966_s13 + $0x64] sm:$0xf]  ;;  %v4975_v5 = vld [vmem:[%s4966_s13 + $0x6c] sm:$0xf] }
  0x1e   : > { %v4979_v6 = vcombine.low %v4969_v3, %v4972_v4  ;;  %v933_v7 = vshrl.u32 %v4969_v3, 16  ;;  %v936_v8 = vshll.u32 %v4969_v3, 16  ;;  %v942_v9 = vshll.u32 %v4972_v4, 16  ;;  %v4985_v10 = vld [vmem:[%s4966_s13 + $0x70] sm:$0xf]  ;;  %s6269_s21 = sshll.u32 %s237_s10, 8 }
  0x1f   : > { %v946_v11 = vshrl.u32 %v4972_v4, 16  ;;  %v4992_v14 = vcombine.low %v4975_v5, %v4985_v10  ;;  %v4995_v15 = vld [vmem:[%s4966_s13] sm:$0xf]  ;;  %v5012_v21 = vld [vmem:[%s4966_s13 + $0x4] sm:$0xf]  ;;  %s6286_s22 = scalar_lea.vmem [#allocation3], %s6269_s21 }
  0x20   : > { %6548 = vst [vmem:[#allocation6_spill] sm:$0xff] %v4979_v6  ;;  %4409 = vmatprep.mubr.msk.bf16.mxu1 %vm463_vm0, %v4979_v6  ;;  %v5004_v17 = vrot.slane %v933_v7, 4  ;;  %v5006_v18 = vrot.slane %v936_v8, 5  ;;  %v5008_v19 = vrot.slane %v942_v9, 5  ;;  %v3989_v25 = vcombine.low %v4995_v15, %v5012_v21  ;;  %v5023_v26 = vld [vmem:[%s4966_s13 + $0xc] sm:$0xf] }
  0x21   : > { %6549 = vst [vmem:[#allocation7_spill] sm:$0xff] %v4992_v14  ;;  %v5014_v22 = vrot.slane %v946_v11, 4  ;;  %4410 = vmatmul.mubr.msk.bf16.vlgmr.msra.gmra.mrb[0].mxu1 %vm463_vm0, %v4992_v14  ;;  %v741_v27 = vshrl.u32 %v4995_v15, 16  ;;  %v744_v28 = vshll.u32 %v4995_v15, 16  ;;  %v750_v29 = vshll.u32 %v5012_v21, 16  ;;  %s3868_s26 = sshll.u32 %s6286_s22, 4  ;;  %s6453_s26 = int_to_ptr.vmem [resolvable:$true] %s3868_s26 }
  0x22   : > { %4426 = vmatpush3.bf16.msra.mxu1 %v4760_v1  ;;  %v754_v30 = vshrl.u32 %v5012_v21, 16  ;;  %v5030_v31 = vld [vmem:[%s4966_s13 + $0x10] sm:$0xf]  ;;  %4393 = vmatprep.mubr.msk.bf16.mxu0 %vm463_vm0, %v3989_v25  ;;  %v4057_v32 = vrot.slane %v4995_v15, 9  ;;  %v1507_v33 = vrot.slane %v5012_v21, 5  ;;  %v765_v35 = vshrl.u32 %v5023_v26, 16 }
  0x23   : > { %v5037_v34 = vcombine.low %v5023_v26, %v5030_v31  ;;  %v5041_v36 = vld [vmem:[%s4966_s13 + $0x78] sm:$0xf]  ;;  %4493 = vmatprep.subr.bf16.mxu1 %v5000_v16  ;;  %v743_v38 = vrot.slane %v741_v27, 4  ;;  %v746_v39 = vrot.slane %v744_v28, 5  ;;  %v5049_v40 = vrot.slane %v750_v29, 5  ;;  %s6463_s18 = scalar_lea.sflag [#allocation4], %s237_s10 }
  0x24   : > { %v756_v41 = vrot.slane %v754_v30, 4  ;;  %v5052_v42 = vld [vmem:[%s4966_s13 + $0x7c] sm:$0xf]  ;;  %v5056_v43 = vrot.slane %v1507_v33, 4  ;;  %v767_v44 = vrot.slane %v765_v35, 4  ;;  %v768_v45 = vshll.u32 %v5023_v26, 16 }
  0x25   : > { %6550 = vst [vmem:[#allocation8_spill] sm:$0xff] %v5037_v34  ;;  %4394 = vmatmul.mubr.msk.bf16.vlgmr.msra.gmra.mrb[0].mxu0 %vm463_vm0, %v5037_v34  ;;  %v774_v46 = vshll.u32 %v5030_v31, 16  ;;  %v5063_v47 = vld [vmem:[%s4966_s13 + $0x84] sm:$0xf]  ;;  %v747_v48 = vor.u32 %v746_v39, %v743_v38  ;;  %v778_v50 = vshrl.u32 %v5030_v31, 16  ;;  %v6514_v56 = vrot.slane %v5030_v31, 5 }
  0x26   : > { %v757_v49 = vor.u32 %v756_v41, %v5049_v40  ;;  %v5069_v52 = vld [vmem:[%s4966_s13 + $0x88] sm:$0xf]  ;;  %4460 = vmatpush3.bf16.msra.mxu0 %v4960_v2  ;;  %v5073_v53 = vld [vmem:[%s4966_s13 + $0x18] sm:$0xf]  ;;  %v770_v54 = vrot.slane %v768_v45, 5  ;;  %v5080_v57 = vcombine.low %v5041_v36, %v5052_v42  ;;  %v1508_v24 = vsel %vm5193_vm6, %v4057_v32, %v1507_v33  ;;  %s4785_s6 = scalar_lea.vmem %s6453_s26, 4096 }
  0x27   : > { %v5075_v55 = vrot.slane %v774_v46, 5  ;;  %v5083_v58 = vld [vmem:[%s4966_s13 + $0x1c] sm:$0xf]  ;;  %4527 = vmatprep.subr.bf16.mxu0 %v5047_v37  ;;  %v5086_v59 = vrot.slane %v747_v48, 4  ;;  %v780_v61 = vrot.slane %v778_v50, 4  ;;  %v5096_v1 = vrot.slane %v6514_v56, 4  ;;  %p4786_p12 = scmp.ne.s32.totalorder %s6453_s26, %s4785_s6 }
  0x28   : > { %6551 = vst [vmem:[#allocation9_spill] sm:$0xff] %v5080_v57  ;;  %v5088_v60 = vrot.slane %v757_v49, 4  ;;  %v5092_v63 = vld [vmem:[%s4966_s13 + $0x24] sm:$0xf]  ;;  %v771_v0 = vor.u32 %v770_v54, %v767_v44  ;;  %4413 = vmatprep.mubr.msk.bf16.mxu1 %vm463_vm0, %v5080_v57  ;;  %v5103_v8 = vld [vmem:[%s4966_s13 + $0x28] sm:$0xf]  ;;  %v5108_v11 = vcombine.low %v5063_v47, %v5069_v52  ;;  %v5123_v38 = vcombine.low %v5073_v53, %v5083_v58 }
  0x29   : > { %v781_v9 = vor.u32 %v780_v61, %v5075_v55  ;;  %v5113_v28 = vld [vmem:[%s4966_s13 + $0x90] sm:$0xf]  ;;  %v5116_v29 = vld [vmem:[%s4966_s13 + $0x94] sm:$0xf]  ;;  %v789_v39 = vshrl.u32 %v5073_v53, 16  ;;  %v5137_v48 = vcombine.low %v5092_v63, %v5103_v8  ;;  %v753_v54 = vsel %vm5168_vm5, %v5086_v59, %v5049_v40  ;;  %p4787_p13 = pnand %p4786_p12, %p4934_p4  ;;  %s4789_s8 = sshll.u32 %s4866_s7, 4  ;;  %s4790_s8 = int_to_ptr.vmem [resolvable:$false] %s4789_s8 }
  0x2a   : > { %6552 = vst [vmem:[#allocation10_spill] sm:$0xff] %v5108_v11  ;;  %v5118_v30 = vrot.slane %v771_v0, 4  ;;  %6553 = vst [vmem:[#allocation11_spill] sm:$0xff] %v5123_v38  ;;  %v5127_v41 = vld [vmem:[%s4966_s13 + $0x9c] sm:$0xf]  ;;  %4414 = vmatmul.mubr.msk.bf16.gmra.mrb[4].mxu1 %vm463_vm0, %v5108_v11  ;;  %4397 = vmatprep.mubr.msk.bf16.mxu0 %vm463_vm0, %v5123_v38  ;;  %v5149_v0 = vcombine.low %v5113_v28, %v5116_v29  ;;  %v6569_v21 = vrot.slane %v5023_v26, 9  ;;  %p4792_p1 = scmp.lt.s32.totalorder %s6453_s26, %s4790_s8 }
  0x2b   : > { %v5129_v44 = vrot.slane %v781_v9, 4  ;;  %6554 = vst [vmem:[#allocation12_spill] sm:$0xff] %v5137_v48  ;;  %v5140_v49 = vld [vmem:[%s4966_s13 + $0xa0] sm:$0xf]  ;;  %v5152_v9 = vld [vmem:[%s4966_s13 + $0x30] sm:$0xf]  ;;  %p4788_p0 = pneg %p4787_p13 }
  0x2c   : > { %6555 = vst [vmem:[#allocation13_spill] sm:$0xff] %v5149_v0  ;;  %v5161_v7 = vcombine.low %v5127_v41, %v5140_v49  ;;  %v5164_v2 = vld [vmem:[%s4966_s13 + $0x34] sm:$0xf]  ;;  %4417 = vmatprep.mubr.msk.bf16.mxu1 %vm463_vm0, %v5149_v0  ;;  %v5182_v13 = vld [vmem:[%s4966_s13 + $0x3c] sm:$0xf]  ;;  %v777_v46 = vsel %vm5168_vm5, %v5118_v30, %v5075_v55  ;;  %v791_v56 = vrot.slane %v789_v39, 4 }
  0x2d   : > { %4398 = vmatmul.mubr.msk.bf16.gmra.mrb[4].mxu0 %vm463_vm0, %v5137_v48  ;;  %v5179_v12 = vcombine.low %v5152_v9, %v5164_v2  ;;  %v5188_v27 = vld [vmem:[%s4966_s13 + $0x40] sm:$0xf]  ;;  %v5206_v61 = vld [vmem:[%s4966_s13 + $0xa8] sm:$0xf]  ;;  %v5209_v25 = vld [vmem:[%s4966_s13 + $0xac] sm:$0xf] }
  0x2e   : > { %6556 = vst [vmem:[#allocation14_spill] sm:$0xff] %v5161_v7  ;;  %v5201_v23 = vcombine.low %v5182_v13, %v5188_v27  ;;  %6563 = vst [vmem:[#allocation17_spill] sm:$0xff] %v5209_v25  ;;  %v5217_v50 = vcombine.low %v5206_v61, %v5209_v25  ;;  %v5223_v45 = vld [vmem:[%s4966_s13 + $0xb4] sm:$0xf]  ;;  %v5226_v51 = vld [vmem:[%s4966_s13 + $0xb8] sm:$0xf] }
  0x2f   : > { %6559 = vst [vmem:[#allocation15_spill] sm:$0xff] %v5179_v12  ;;  %4401 = vmatprep.mubr.msk.bf16.mxu0 %vm463_vm0, %v5179_v12  ;;  %6565 = vst [vmem:[#allocation19_spill] sm:$0xff] %v5223_v45  ;;  %v5231_v59 = vld [vmem:[%s4966_s13 + $0x48] sm:$0xf]  ;;  %v5247_v40 = vcombine.low %v5223_v45, %v5226_v51  ;;  %v5251_v20 = vld [vmem:[%s4966_s13 + $0x4c] sm:$0xf] }
  0x30   : > { %6562 = vst [vmem:[#allocation16_spill] sm:$0xff] %v5201_v23  ;;  %6564 = vst [vmem:[#allocation18_spill] sm:$0xff] %v5217_v50  ;;  %v5259_v15 = vcombine.low %v5231_v59, %v5251_v20  ;;  %v5263_v33 = vld [vmem:[%s4966_s13 + $0x54] sm:$0xf]  ;;  %v5266_v30 = vld [vmem:[%s4966_s13 + $0x58] sm:$0xf] }
  0x31   : > { %6566 = vst [vmem:[#allocation20_spill] sm:$0xff] %v5226_v51  ;;  %v6568_v55 = vrot.slane %v5030_v31, 5  ;;  %v258_v11 = vld [vmem:[%s4966_s13 + $0x8] sm:$0x1]  ;;  %v261_v31 = vld [vmem:[%s4966_s13 + $0x14] sm:$0x1] }
  0x32   : > { %4418 = vmatmul.mubr.msk.bf16.gmra.mrb[8].mxu1 %vm463_vm0, %v5161_v7  ;;  %6567 = vst [vmem:[#allocation21_spill] sm:$0xff] %v5259_v15  ;;  %v760_v26 = vshll.u32 %v258_v11, 16  ;;  %v784_v32 = vshll.u32 %v261_v31, 16  ;;  %v6570_v0 = vshll.u32 %v5073_v53, 16  ;;  %v798_v39 = vshll.u32 %v5083_v58, 16  ;;  %s4791_s9 = scalar_lea.vmem %s4790_s8, 8192 }
  0x33   : > { %4421 = vmatprep.mubr.msk.bf16.mxu1 %vm463_vm0, %v5217_v50  ;;  %v1515_v7 = vsel %vm5193_vm6, %v6569_v21, %v6568_v55  ;;  %v5278_v50 = vcombine.low %v5263_v33, %v5266_v30  ;;  %v1510_v55 = vrot.slane %v258_v11, 5  ;;  %v264_v21 = vld [vmem:[%s4966_s13 + $0x20] sm:$0x1]  ;;  %v1517_v57 = vrot.slane %v261_v31, 5  ;;  %p4793_p2 = scmp.lt.s32.totalorder %s4791_s9, %s4785_s6 }
  0x34   : > { %v794_v6 = vrot.slane %v6570_v0, 5  ;;  %v762_v12 = vrot.slane %v760_v26, 5  ;;  %v808_v48 = vshll.u32 %v264_v21, 16  ;;  %v786_v38 = vrot.slane %v784_v32, 5  ;;  %v5307_v26 = vld [vmem:[%s4966_s13 + $0x2c] sm:$0x1] }
  0x35   : > { %4402 = vmatmul.mubr.msk.bf16.gmra.mrb[8].mxu0 %vm463_vm0, %v5201_v23  ;;  %v6571_v23 = vshrl.u32 %v5083_v58, 16  ;;  %v1511_v11 = vsel %vm5193_vm6, %v5056_v43, %v1510_v55  ;;  %v800_v51 = vrot.slane %v798_v39, 5  ;;  %v6572_v25 = vshrl.u32 %v5092_v63, 16  ;;  %p4794_p3 = por %p4793_p2, %p4792_p1 }
  0x36   : > { %4405 = vmatprep.mubr.msk.bf16.mxu0 %vm463_vm0, %v5259_v15  ;;  %v4075_v34 = vcombine.low %v1508_v24, %v1511_v11  ;;  %v795_v14 = vor.u32 %v794_v6, %v791_v56  ;;  %v763_v0 = vsel %vm5168_vm5, %v5088_v60, %v762_v12  ;;  %v810_v45 = vrot.slane %v808_v48, 5 }
  0x37   : > { %v804_v15 = vrot.slane %v6571_v23, 4  ;;  %v1518_v23 = vsel %vm5193_vm6, %v5096_v1, %v1517_v57  ;;  %v815_v43 = vrot.slane %v6572_v25, 4  ;;  %v4024_v24 = vcombine.low %v753_v54, %v763_v0  ;;  %p4795_p5 = pnand %p4794_p3, %p4788_p0 }
  0x38   : > { %v787_v6 = vsel %vm5168_vm5, %v5129_v44, %v786_v38  ;;  %v796_v56 = vrot.slane %v795_v14, 4  ;;  %v5318_v48 = vcombine.low %v1515_v7, %v1518_v23  ;;  %v6573_v57 = vshll.u32 %v5092_v63, 16 }
  0x39   : > { %v805_v12 = vor.u32 %v804_v15, %v800_v51  ;;  %v5316_v60 = vcombine.low %v777_v46, %v787_v6  ;;  %v822_v25 = vshll.u32 %v5103_v8, 16  ;;  %v6574_v44 = vshrl.u32 %v5103_v8, 16 }
  0x3a   : > { %4422 = vmatmul.mubr.msk.bf16.gmra.mrb[12].mxu1 %vm463_vm0, %v5247_v40  ;;  %v818_v1 = vrot.slane %v6573_v57, 5  ;;  %v801_v38 = vsel %vm5168_vm5, %v796_v56, %v800_v51  ;;  %v832_v7 = vshll.u32 %v5307_v26, 16  ;;  %v4059_v32 = vrot.slane %v5073_v53, 9  ;;  %v5337_v51 = vld [vmem:[%s4966_s13 + $0x38] sm:$0x1]  ;;  %v5353_v57 = vld [vmem:[%s6510_s1 + $0x28] sm:$0xff]  }
  0x3b   : > { %4427 = vmatprep.mubr.msk.bf16.mxu1 %vm463_vm0, %v4024_v24  ;;  %v806_v14 = vrot.slane %v805_v12, 4  ;;  %v828_v46 = vrot.slane %v6574_v44, 4  ;;  %v824_v15 = vrot.slane %v822_v25, 5  ;;  %v1521_v39 = vrot.slane %v5083_v58, 5  ;;  %v5362_v44 = vld [vmem:[%s6510_s1 + $0x30] sm:$0xff]  }
  0x3c   : > { %v819_v54 = vor.u32 %v818_v1, %v815_v43  ;;  %v834_v55 = vrot.slane %v832_v7, 5  ;;  %v1524_v11 = vrot.slane %v264_v21, 5  ;;  %v6575_v0 = vshrl.u32 %v5152_v9, 16 }
  0x3d   : > { %4406 = vmatmul.mubr.msk.bf16.gmra.mrb[12].mxu0 %vm463_vm0, %v5278_v50  ;;  %v811_v31 = vsel %vm5168_vm5, %v806_v14, %v810_v45  ;;  %v1522_v43 = vsel %vm5193_vm6, %v4059_v32, %v1521_v39  ;;  %v1523_v53 = vrot.slane %v1521_v39, 4  ;;  %v6576_v58 = vshll.u32 %v5152_v9, 16  ;;  %v5370_v32 = vld [vmem:[%s4966_s13 + $0x44] sm:$0x1] }
  0x3e   : > { %4461 = vmatprep.mubr.msk.bf16.mxu0 %vm463_vm0, %v4075_v34  ;;  %v839_v23 = vrot.slane %v6575_v0, 4  ;;  %v5341_v24 = vcombine.low %v801_v38, %v811_v31  ;;  %v820_v6 = vrot.slane %v819_v54, 4  ;;  %v829_v34 = vor.u32 %v828_v46, %v824_v15 }
  0x3f   : > { %v842_v56 = vrot.slane %v6576_v58, 5  ;;  %v846_v45 = vshll.u32 %v5164_v2, 16  ;;  %v6577_v21 = vshrl.u32 %v5164_v2, 16  ;;  %v856_v38 = vshll.u32 %v5337_v51, 16 }
  0x40   : > { %v825_v1 = vsel %vm5168_vm5, %v820_v6, %v824_v15  ;;  %v830_v25 = vrot.slane %v829_v34, 4  ;;  %v4060_v14 = vrot.slane %v5092_v63, 9  ;;  %v1525_v46 = vsel %vm5193_vm6, %v1523_v53, %v1524_v11 }
  0x41   : > { %v852_v12 = vrot.slane %v6577_v21, 4  ;;  %v843_v7 = vor.u32 %v842_v56, %v839_v23  ;;  %v848_v54 = vrot.slane %v846_v45, 5  ;;  %v1528_v15 = vrot.slane %v5103_v8, 5 }
  0x42   : > { %4428 = vmatmul.mubr.msk.bf16.vlgmr.msra.gmra.mrb[16].mxu1 %vm463_vm0, %v5316_v60  ;;  %v835_v63 = vsel %vm5168_vm5, %v830_v25, %v834_v55  ;;  %v5377_v39 = vcombine.low %v1522_v43, %v1525_v46  ;;  %v858_v31 = vrot.slane %v856_v38, 5  ;;  %v1531_v0 = vrot.slane %v5307_v26, 5 }
  0x43   : > { %4494 = vmatpush3.bf16.msra.mxu1 %v5000_v16  ;;  %4431 = vmatprep.mubr.msk.bf16.mxu1 %vm463_vm0, %v5341_v24  ;;  %v5382_v11 = vcombine.low %v825_v1, %v835_v63  ;;  %v844_v8 = vrot.slane %v843_v7, 4  ;;  %v853_v23 = vor.u32 %v852_v12, %v848_v54  ;;  %v1529_v16 = vsel %vm5193_vm6, %v4060_v14, %v1528_v15 }
  0x44   : > { %4561 = vmatprep.subr.bf16.mxu1 %v5353_v57  ;;  %v1530_v55 = vrot.slane %v1528_v15, 4  ;;  %v6578_v26 = vshrl.u32 %v5182_v13, 16  ;;  %v6579_v34 = vshll.u32 %v5182_v13, 16  ;;  %v870_v53 = vshll.u32 %v5188_v27, 16 }
  0x45   : > { %4462 = vmatmul.mubr.msk.bf16.vlgmr.msra.gmra.mrb[16].mxu0 %vm463_vm0, %v5318_v48  ;;  %v849_v58 = vsel %vm5168_vm5, %v844_v8, %v848_v54  ;;  %v854_v56 = vrot.slane %v853_v23, 4  ;;  %v6580_v45 = vshrl.u32 %v5188_v27, 16  ;;  %v880_v21 = vshll.u32 %v5370_v32, 16 }
  0x46   : > { %4528 = vmatpush3.bf16.msra.mxu0 %v5047_v37  ;;  %4465 = vmatprep.mubr.msk.bf16.mxu0 %vm463_vm0, %v5377_v39  ;;  %v863_v6 = vrot.slane %v6578_v26, 4  ;;  %v866_v43 = vrot.slane %v6579_v34, 5  ;;  %v1532_v12 = vsel %vm5193_vm6, %v1530_v55, %v1531_v0  ;;  %v872_v25 = vrot.slane %v870_v53, 5  ;;  %v5413_v26 = vld [vmem:[%s4966_s13 + $0x50] sm:$0x1] }
  0x47   : > { %v876_v37 = vrot.slane %v6580_v45, 4  ;;  %4595 = vmatprep.subr.bf16.mxu0 %v5362_v44  ;;  %v4061_v38 = vrot.slane %v5152_v9, 9  ;;  %v859_v14 = vsel %vm5168_vm5, %v854_v56, %v858_v31  ;;  %v5406_v46 = vcombine.low %v1529_v16, %v1532_v12 }
  0x48   : > { %v867_v1 = vor.u32 %v866_v43, %v863_v6  ;;  %v882_v7 = vrot.slane %v880_v21, 5  ;;  %v1535_v54 = vrot.slane %v5164_v2, 5  ;;  %v5409_v15 = vcombine.low %v849_v58, %v859_v14 }
  0x49   : > { %v877_v8 = vor.u32 %v876_v37, %v872_v25  ;;  %v1538_v23 = vrot.slane %v5337_v51, 5  ;;  %v6581_v0 = vshrl.u32 %v5231_v59, 16  ;;  %v6582_v2 = vshll.u32 %v5231_v59, 16 }
  0x4a   : > { %v868_v63 = vrot.slane %v867_v1, 4  ;;  %4432 = vmatmul.mubr.msk.bf16.gmra.mrb[20].mxu1 %vm463_vm0, %v5382_v11  ;;  %v1536_v9 = vsel %vm5193_vm6, %v4061_v38, %v1535_v54  ;;  %v1537_v31 = vrot.slane %v1535_v54, 4  ;;  %v894_v34 = vshll.u32 %v5251_v20, 16 }
  0x4b   : > { %v887_v16 = vrot.slane %v6581_v0, 4  ;;  %v890_v55 = vrot.slane %v6582_v2, 5  ;;  %4435 = vmatprep.mubr.msk.bf16.mxu1 %vm463_vm0, %v5409_v15  ;;  %v878_v6 = vrot.slane %v877_v8, 4  ;;  %v6583_v43 = vshrl.u32 %v5251_v20, 16  ;;  %v279_v8 = vld [vmem:[%s4966_s13 + $0x5c] sm:$0x1] }
  0x4c   : > { %v873_v51 = vsel %vm5168_vm5, %v868_v63, %v872_v25  ;;  %v1539_v58 = vsel %vm5193_vm6, %v1537_v31, %v1538_v23  ;;  %v904_v45 = vshll.u32 %v5413_v26, 16  ;;  %v4062_v37 = vrot.slane %v5182_v13, 9 }
  0x4d   : > { %v900_v53 = vrot.slane %v6583_v43, 4  ;;  %4466 = vmatmul.mubr.msk.bf16.gmra.mrb[20].mxu0 %vm463_vm0, %v5406_v46  ;;  %v891_v56 = vor.u32 %v890_v55, %v887_v16  ;;  %v883_v21 = vsel %vm5168_vm5, %v878_v6, %v882_v7  ;;  %v5438_v12 = vcombine.low %v1536_v9, %v1539_v58 }
  0x4e   : > { %v896_v1 = vrot.slane %v894_v34, 5  ;;  %v1542_v25 = vrot.slane %v5188_v27, 5  ;;  %v5441_v38 = vcombine.low %v873_v51, %v883_v21  ;;  %v906_v54 = vrot.slane %v904_v45, 5 }
  0x4f   : > { %v892_v14 = vrot.slane %v891_v56, 4  ;;  %v1545_v63 = vrot.slane %v5370_v32, 5  ;;  %4469 = vmatprep.mubr.msk.bf16.mxu0 %vm463_vm0, %v5438_v12  ;;  %v6584_v9 = vshrl.u32 %v5263_v33, 16  ;;  %v6585_v0 = vshll.u32 %v5263_v33, 16 }
  0x50   : > { %v901_v23 = vor.u32 %v900_v53, %v896_v1  ;;  %v1543_v13 = vsel %vm5193_vm6, %v4062_v37, %v1542_v25  ;;  %v1544_v7 = vrot.slane %v1542_v25, 4  ;;  %v918_v32 = vshll.u32 %v5266_v30, 16  ;;  %v282_v37 = vld [vmem:[%s4966_s13 + $0x68] sm:$0x1] }
  0x51   : > { %v911_v31 = vrot.slane %v6584_v9, 4  ;;  %v897_v27 = vsel %vm5168_vm5, %v892_v14, %v896_v1  ;;  %v914_v16 = vrot.slane %v6585_v0, 5  ;;  %v6586_v2 = vshrl.u32 %v5266_v30, 16 }
  0x52   : > { %v902_v51 = vrot.slane %v901_v23, 4  ;;  %v1546_v6 = vsel %vm5193_vm6, %v1544_v7, %v1545_v63  ;;  %v928_v34 = vshll.u32 %v279_v8, 16  ;;  %v4063_v43 = vrot.slane %v5231_v59, 9  ;;  %4436 = vmatmul.mubr.msk.bf16.gmra.mrb[24].mxu1 %vm463_vm0, %v5441_v38 }
  0x53   : > { %v924_v55 = vrot.slane %v6586_v2, 4  ;;  %v5463_v53 = vcombine.low %v1543_v13, %v1546_v6  ;;  %v915_v58 = vor.u32 %v914_v16, %v911_v31  ;;  %v920_v56 = vrot.slane %v918_v32, 5 }
  0x54   : > { %v1549_v45 = vrot.slane %v5251_v20, 5  ;;  %v907_v21 = vsel %vm5168_vm5, %v902_v51, %v906_v54  ;;  %v930_v1 = vrot.slane %v928_v34, 5  ;;  %v1552_v25 = vrot.slane %v5413_v26, 5 }
  0x55   : > { %v6587_v14 = vor.u32 %v5006_v18, %v5004_v17  ;;  %v5473_v63 = vcombine.low %v897_v27, %v907_v21  ;;  %4470 = vmatmul.mubr.msk.bf16.gmra.mrb[24].mxu0 %vm463_vm0, %v5463_v53  ;;  %v916_v23 = vrot.slane %v915_v58, 4  ;;  %v925_v13 = vor.u32 %v924_v55, %v920_v56  ;;  %v285_v55 = vld [vmem:[%s4966_s13 + $0x74] sm:$0x1] }
  0x56   : > { %v1550_v20 = vsel %vm5193_vm6, %v4063_v43, %v1549_v45  ;;  %v1551_v7 = vrot.slane %v1549_v45, 4  ;;  %v6588_v17 = vor.u32 %v5014_v22, %v5008_v19  ;;  %v952_v54 = vshll.u32 %v282_v37, 16 }
  0x57   : > { %v940_v59 = vrot.slane %v6587_v14, 4  ;;  %4439 = vmatprep.mubr.msk.bf16.mxu1 %vm463_vm0, %v5473_v63  ;;  %v921_v9 = vsel %vm5168_vm5, %v916_v23, %v920_v56  ;;  %v926_v31 = vrot.slane %v925_v13, 4  ;;  %v4064_v27 = vrot.slane %v5263_v33, 9 }
  0x58   : > { %v950_v18 = vrot.slane %v6588_v17, 4  ;;  %v1556_v0 = vrot.slane %v5266_v30, 5  ;;  %v1553_v16 = vsel %vm5193_vm6, %v1551_v7, %v1552_v25  ;;  %v954_v32 = vrot.slane %v952_v54, 5  ;;  %v5528_v17 = vld [vmem:[%s4966_s13 + $0x80] sm:$0x1] }
  0x59   : > { %v945_v26 = vsel %vm5168_vm5, %v940_v59, %v5008_v19  ;;  %v1559_v2 = vrot.slane %v279_v8, 5  ;;  %v6589_v19 = vshrl.u32 %v4975_v5, 16  ;;  %v931_v51 = vsel %vm5168_vm5, %v926_v31, %v930_v1 }
  0x5a   : > { %v5498_v6 = vcombine.low %v1550_v20, %v1553_v16  ;;  %v1557_v34 = vsel %vm5193_vm6, %v4064_v27, %v1556_v0  ;;  %v1558_v33 = vrot.slane %v1556_v0, 4  ;;  %v5502_v30 = vcombine.low %v921_v9, %v931_v51 }
  0x5b   : > { %v959_v22 = vrot.slane %v6589_v19, 4  ;;  %v955_v43 = vsel %vm5168_vm5, %v950_v18, %v954_v32  ;;  %v6590_v8 = vshll.u32 %v4975_v5, 16  ;;  %v966_v56 = vshll.u32 %v4985_v10, 16 }
  0x5c   : > { %4473 = vmatprep.mubr.msk.bf16.mxu0 %vm463_vm0, %v5498_v6  ;;  %v5511_v45 = vcombine.low %v945_v26, %v955_v43  ;;  %v1560_v21 = vsel %vm5193_vm6, %v1558_v33, %v1559_v2  ;;  %v6591_v1 = vshrl.u32 %v4985_v10, 16  ;;  %v976_v14 = vshll.u32 %v285_v55, 16  ;;  %4440 = vmatmul.mubr.msk.bf16.gmra.mrb[28].mxu1 %vm463_vm0, %v5502_v30 }
  0x5d   : > { %v962_v58 = vrot.slane %v6590_v8, 5  ;;  %v5519_v59 = vcombine.low %v1557_v34, %v1560_v21  ;;  %v968_v13 = vrot.slane %v966_v56, 5  ;;  %v6592_v20 = vrot.slane %v4972_v4, 5 }
  0x5e   : > { %v972_v25 = vrot.slane %v6591_v1, 4  ;;  %v6593_v7 = vrot.slane %v4969_v3, 9  ;;  %4443 = vmatprep.mubr.msk.bf16.mxu1 %vm463_vm0, %v5511_v45  ;;  %v978_v18 = vrot.slane %v976_v14, 5  ;;  %v1566_v31 = vrot.slane %v282_v37, 5 }
  0x5f   : > { %v963_v23 = vor.u32 %v962_v58, %v959_v22  ;;  %v6594_v54 = vmov %v6592_v20  ;;  %v6595_v27 = vshrl.u32 %v5041_v36, 16  ;;  %4474 = vmatmul.mubr.msk.bf16.gmra.mrb[28].mxu0 %vm463_vm0, %v5519_v59  ;;  %v6596_v32 = vshll.u32 %v5041_v36, 16 }
  0x60   : > { %v1564_v26 = vsel %vm5193_vm6, %v6593_v7, %v6592_v20  ;;  %v1565_v9 = vrot.slane %v6594_v54, 4  ;;  %v973_v16 = vor.u32 %v972_v25, %v968_v13  ;;  %v990_v19 = vshll.u32 %v5052_v42, 16 }
  0x61   : > { %v983_v0 = vrot.slane %v6595_v27, 4  ;;  %v964_v3 = vrot.slane %v963_v23, 4  ;;  %v986_v2 = vrot.slane %v6596_v32, 5  ;;  %v6597_v4 = vshrl.u32 %v5052_v42, 16 }
  0x62   : > { %v1567_v22 = vsel %vm5193_vm6, %v1565_v9, %v1566_v31  ;;  %v1000_v51 = vshll.u32 %v5528_v17, 16  ;;  %v4066_v34 = vrot.slane %v4975_v5, 9  ;;  %v974_v43 = vrot.slane %v973_v16, 4  ;;  %v291_v5 = vld [vmem:[%s4966_s13 + $0x8c] sm:$0x1] }
  0x63   : > { %v996_v37 = vrot.slane %v6597_v4, 4  ;;  %v969_v33 = vsel %vm5168_vm5, %v964_v3, %v968_v13  ;;  %v5549_v8 = vcombine.low %v1564_v26, %v1567_v22  ;;  %v987_v58 = vor.u32 %v986_v2, %v983_v0 }
  0x64   : > { %v992_v56 = vrot.slane %v990_v19, 5  ;;  %v1002_v21 = vrot.slane %v1000_v51, 5  ;;  %v1570_v1 = vrot.slane %v4985_v10, 5  ;;  %v1573_v25 = vrot.slane %v285_v55, 5 }
  0x65   : > { %v979_v14 = vsel %vm5168_vm5, %v974_v43, %v978_v18  ;;  %4477 = vmatprep.mubr.msk.bf16.mxu0 %vm463_vm0, %v5549_v8  ;;  %v988_v23 = vrot.slane %v987_v58, 4  ;;  %v6598_v20 = vshrl.u32 %v5063_v47, 16  ;;  %v6599_v7 = vshll.u32 %v5063_v47, 16  ;;  %v5582_v58 = vld [vmem:[%s4966_s13 + $0x98] sm:$0x1] }
  0x66   : > { %v5561_v54 = vcombine.low %v969_v33, %v979_v14  ;;  %v997_v9 = vor.u32 %v996_v37, %v992_v56  ;;  %v1571_v10 = vsel %vm5193_vm6, %v4066_v34, %v1570_v1  ;;  %v1572_v55 = vrot.slane %v1570_v1, 4 }
  0x67   : > { %v1007_v13 = vrot.slane %v6598_v20, 4  ;;  %v1010_v26 = vrot.slane %v6599_v7, 5  ;;  %v993_v18 = vsel %vm5168_vm5, %v988_v23, %v992_v56  ;;  %v1014_v27 = vshll.u32 %v5069_v52, 16 }
  0x68   : > { %v6600_v0 = vshrl.u32 %v5069_v52, 16  ;;  %4444 = vmatmul.mubr.msk.bf16.gmra.mrb[32].mxu1 %vm463_vm0, %v5561_v54  ;;  %v998_v16 = vrot.slane %v997_v9, 4  ;;  %v1574_v32 = vsel %vm5193_vm6, %v1572_v55, %v1573_v25  ;;  %v1024_v2 = vshll.u32 %v291_v5, 16 }
  0x69   : > { %v1011_v31 = vor.u32 %v1010_v26, %v1007_v13  ;;  %v4067_v19 = vrot.slane %v5041_v36, 9  ;;  %v5575_v22 = vcombine.low %v1571_v10, %v1574_v32  ;;  %v1016_v37 = vrot.slane %v1014_v27, 5 }
  0x6a   : > { %v1020_v3 = vrot.slane %v6600_v0, 4  ;;  %v1577_v51 = vrot.slane %v5052_v42, 5  ;;  %v1003_v34 = vsel %vm5168_vm5, %v998_v16, %v1002_v21  ;;  %v1026_v33 = vrot.slane %v1024_v2, 5 }
  0x6b   : > { %v1012_v4 = vrot.slane %v1011_v31, 4  ;;  %v1580_v43 = vrot.slane %v5528_v17, 5  ;;  %v6601_v56 = vshrl.u32 %v5113_v28, 16  ;;  %v5586_v25 = vcombine.low %v993_v18, %v1003_v34  ;;  %4478 = vmatmul.mubr.msk.bf16.gmra.mrb[32].mxu0 %vm463_vm0, %v5575_v22 }
  0x6c   : > { %v1021_v42 = vor.u32 %v1020_v3, %v1016_v37  ;;  %v1578_v21 = vsel %vm5193_vm6, %v4067_v19, %v1577_v51  ;;  %v1579_v14 = vrot.slane %v1577_v51, 4  ;;  %v6602_v17 = vshll.u32 %v5113_v28, 16  ;;  %v5613_v19 = vld [vmem:[%s4966_s13 + $0xa4] sm:$0x1] }
  0x6d   : > { %v1031_v1 = vrot.slane %v6601_v56, 4  ;;  %v1017_v36 = vsel %vm5168_vm5, %v1012_v4, %v1016_v37  ;;  %v1038_v20 = vshll.u32 %v5116_v29, 16  ;;  %v6603_v13 = vshrl.u32 %v5116_v29, 16  ;;  %4447 = vmatprep.mubr.msk.bf16.mxu1 %vm463_vm0, %v5586_v25 }
  0x6e   : > { %v1034_v23 = vrot.slane %v6602_v17, 5  ;;  %v1022_v26 = vrot.slane %v1021_v42, 4  ;;  %v1048_v9 = vshll.u32 %v5582_v58, 16  ;;  %v4068_v10 = vrot.slane %v5063_v47, 9 }
  0x6f   : > { %v1044_v7 = vrot.slane %v6603_v13, 4  ;;  %v1584_v55 = vrot.slane %v5069_v52, 5  ;;  %v1581_v18 = vsel %vm5193_vm6, %v1579_v14, %v1580_v43  ;;  %v1040_v27 = vrot.slane %v1038_v20, 5 }
  0x70   : > { %v1035_v31 = vor.u32 %v1034_v23, %v1031_v1  ;;  %v1587_v0 = vrot.slane %v291_v5, 5  ;;  %v1027_v3 = vsel %vm5168_vm5, %v1022_v26, %v1026_v33  ;;  %v5608_v16 = vcombine.low %v1578_v21, %v1581_v18 }
  0x71   : > { %v1050_v32 = vrot.slane %v1048_v9, 5  ;;  %v1585_v2 = vsel %vm5193_vm6, %v4068_v10, %v1584_v55  ;;  %v5615_v47 = vcombine.low %v1017_v36, %v1027_v3  ;;  %v1045_v4 = vor.u32 %v1044_v7, %v1040_v27 }
  0x72   : > { %v1036_v52 = vrot.slane %v1035_v31, 4  ;;  %v1586_v37 = vrot.slane %v1584_v55, 4  ;;  %4481 = vmatprep.mubr.msk.bf16.mxu0 %vm463_vm0, %v5608_v16  ;;  %v6604_v5 = vshrl.u32 %v5127_v41, 16  ;;  %v6605_v34 = vshll.u32 %v5127_v41, 16  ;;  %v300_v55 = vld [vmem:[%s4966_s13 + $0xb0] sm:$0x1] }
  0x73   : > { %v1062_v43 = vshll.u32 %v5140_v49, 16  ;;  %v6606_v56 = vshrl.u32 %v5140_v49, 16  ;;  %4448 = vmatmul.mubr.msk.bf16.gmra.mrb[36].mxu1 %vm463_vm0, %v5615_v47  ;;  %v1046_v42 = vrot.slane %v1045_v4, 4  ;;  %v1072_v14 = vshll.u32 %v5613_v19, 16 }
  0x74   : > { %v1055_v51 = vrot.slane %v6604_v5, 4  ;;  %v1058_v33 = vrot.slane %v6605_v34, 5  ;;  %v1041_v36 = vsel %vm5168_vm5, %v1036_v52, %v1040_v27  ;;  %v1588_v21 = vsel %vm5193_vm6, %v1586_v37, %v1587_v0  ;;  %v6609_v52 = vld [vmem:[#allocation17_spill] sm:$0xff] }
  0x75   : > { %v1068_v1 = vrot.slane %v6606_v56, 4  ;;  %v5633_v17 = vcombine.low %v1585_v2, %v1588_v21  ;;  %v1064_v20 = vrot.slane %v1062_v43, 5  ;;  %v4069_v13 = vrot.slane %v5113_v28, 9 }
  0x76   : > { %v1059_v23 = vor.u32 %v1058_v33, %v1055_v51  ;;  %v1051_v7 = vsel %vm5168_vm5, %v1046_v42, %v1050_v32  ;;  %v1074_v26 = vrot.slane %v1072_v14, 5  ;;  %v1591_v9 = vrot.slane %v5116_v29, 5 }
  0x77   : > { %v1594_v10 = vrot.slane %v5582_v58, 5  ;;  %v5641_v18 = vcombine.low %v1041_v36, %v1051_v7  ;;  %4482 = vmatmul.mubr.msk.bf16.gmra.mrb[36].mxu0 %vm463_vm0, %v5633_v17  ;;  %v1069_v27 = vor.u32 %v1068_v1, %v1064_v20  ;;  %v6607_v0 = vshrl.u32 %v5206_v61, 16 }
  0x78   : > { %v1060_v31 = vrot.slane %v1059_v23, 4  ;;  %v1592_v28 = vsel %vm5193_vm6, %v4069_v13, %v1591_v9  ;;  %v1593_v32 = vrot.slane %v1591_v9, 4  ;;  %v6608_v2 = vshll.u32 %v5206_v61, 16  ;;  %v303_v9 = vld [vmem:[%s4966_s13 + $0xbc] sm:$0x1] }
  0x79   : > { %v1079_v3 = vrot.slane %v6607_v0, 4  ;;  %v1086_v58 = vshll.u32 %v6609_v52, 16  ;;  %4451 = vmatprep.mubr.msk.bf16.mxu1 %vm463_vm0, %v5641_v18  ;;  %v1070_v37 = vrot.slane %v1069_v27, 4  ;;  %v6610_v5 = vshrl.u32 %v6609_v52, 16 }
  0x7a   : > { %v1082_v29 = vrot.slane %v6608_v2, 5  ;;  %v1065_v4 = vsel %vm5168_vm5, %v1060_v31, %v1064_v20  ;;  %v1096_v34 = vshll.u32 %v300_v55, 16  ;;  %v1595_v33 = vsel %vm5193_vm6, %v1593_v32, %v1594_v10 }
  0x7b   : > { %v1092_v51 = vrot.slane %v6610_v5, 4  ;;  %v1088_v56 = vrot.slane %v1086_v58, 5  ;;  %v4070_v1 = vrot.slane %v5127_v41, 9  ;;  %v1075_v36 = vsel %vm5168_vm5, %v1070_v37, %v1074_v26  ;;  %v6611_v26 = vld [vmem:[#allocation19_spill] sm:$0xff] }
  0x7c   : > { %v1083_v43 = vor.u32 %v1082_v29, %v1079_v3  ;;  %v5663_v42 = vcombine.low %v1592_v28, %v1595_v33  ;;  %v1098_v21 = vrot.slane %v1096_v34, 5  ;;  %v1598_v14 = vrot.slane %v5140_v49, 5  ;;  %v6614_v28 = vld [vmem:[#allocation20_spill] sm:$0xff] }
  0x7d   : > { %v5666_v23 = vcombine.low %v1065_v4, %v1075_v36  ;;  %v1093_v13 = vor.u32 %v1092_v51, %v1088_v56  ;;  %v1601_v7 = vrot.slane %v5613_v19, 5  ;;  %v6612_v31 = vshrl.u32 %v6611_v26, 16 }
  0x7e   : > { %v1084_v20 = vrot.slane %v1083_v43, 4  ;;  %4485 = vmatprep.mubr.msk.bf16.mxu0 %vm463_vm0, %v5663_v42  ;;  %v1599_v41 = vsel %vm5193_vm6, %v4070_v1, %v1598_v14  ;;  %v1600_v10 = vrot.slane %v1598_v14, 4  ;;  %v6613_v0 = vshll.u32 %v6611_v26, 16 }
  0x7f   : > { %v1103_v27 = vrot.slane %v6612_v31, 4  ;;  %4452 = vmatmul.mubr.msk.bf16.gmra.mrb[40].mxu1 %vm463_vm0, %v5666_v23  ;;  %v1094_v3 = vrot.slane %v1093_v13, 4  ;;  %v1110_v32 = vshll.u32 %v6614_v28, 16  ;;  %v6615_v2 = vshrl.u32 %v6614_v28, 16 }
  0x80   : > { %v1106_v49 = vrot.slane %v6613_v0, 5  ;;  %v1089_v19 = vsel %vm5168_vm5, %v1084_v20, %v1088_v56  ;;  %v1602_v58 = vsel %vm5193_vm6, %v1600_v10, %v1601_v7  ;;  %v1120_v37 = vshll.u32 %v303_v9, 16 }
  0x81   : > { %v1116_v29 = vrot.slane %v6615_v2, 4  ;;  %v4071_v5 = vrot.slane %v5206_v61, 9  ;;  %v1099_v51 = vsel %vm5168_vm5, %v1094_v3, %v1098_v21  ;;  %v5690_v34 = vcombine.low %v1599_v41, %v1602_v58  ;;  %v5722_v3 = vld [vmem:[%s4966_s13 + $0xc0] sm:$0xf]  ;;  %v6616_v58 = vld [vmem:[#allocation8_spill] sm:$0xff] }
  0x82   : > { %v1107_v4 = vor.u32 %v1106_v49, %v1103_v27  ;;  %v1112_v33 = vrot.slane %v1110_v32, 5  ;;  %v1605_v43 = vrot.slane %v6609_v52, 5  ;;  %v5693_v56 = vcombine.low %v1089_v19, %v1099_v51  ;;  %v5730_v32 = vld [vmem:[%s4966_s13 + $0xc8] sm:$0x1] }
  0x83   : > { %v1122_v36 = vrot.slane %v1120_v37, 5  ;;  %v1608_v14 = vrot.slane %v300_v55, 5  ;;  %4486 = vmatmul.mubr.msk.bf16.gmra.mrb[40].mxu0 %vm463_vm0, %v5690_v34  ;;  %v4072_v21 = vrot.slane %v6611_v26, 9  ;;  %v1612_v52 = vrot.slane %v6614_v28, 5  ;;  %v5725_v28 = vld [vmem:[%s4966_s13 + $0xc4] sm:$0xf] }
  0x84   : > { %v1108_v1 = vrot.slane %v1107_v4, 4  ;;  %v1117_v20 = vor.u32 %v1116_v29, %v1112_v33  ;;  %v1606_v61 = vsel %vm5193_vm6, %v4071_v5, %v1605_v43  ;;  %v1607_v13 = vrot.slane %v1605_v43, 4  ;;  %4455 = vmatprep.mubr.msk.bf16.mxu1 %vm463_vm0, %v5693_v56 }
  0x85   : > { %v1615_v7 = vrot.slane %v303_v9, 5  ;;  %v1613_v26 = vsel %vm5193_vm6, %v4072_v21, %v1612_v52  ;;  %v1614_v27 = vrot.slane %v1612_v52, 4  ;;  %v4148_v2 = vrot.slane %v5722_v3, 9  ;;  %v6624_v21 = vld [vmem:[#allocation9_spill] sm:$0xff]  ;;  %v6625_v52 = vld [vmem:[#allocation10_spill] sm:$0xff] }
  0x86   : > { %v1113_v55 = vsel %vm5168_vm5, %v1108_v1, %v1112_v33  ;;  %v1118_v41 = vrot.slane %v1117_v20, 4  ;;  %v1609_v10 = vsel %vm5193_vm6, %v1607_v13, %v1608_v14  ;;  %v2552_v29 = vrot.slane %v5725_v28, 5  ;;  %v4782_v1 = vld [vmem:[%s6510_s1 + $0x38] sm:$0xff]   ;;  %v6618_v14 = vld [vmem:[#allocation12_spill] sm:$0xff]  ;;  %v6619_v20 = vld [vmem:[#allocation15_spill] sm:$0xff] }
  0x87   : > { %v5707_v31 = vcombine.low %v1606_v61, %v1609_v10  ;;  %v1616_v9 = vsel %vm5193_vm6, %v1614_v27, %v1615_v7  ;;  %v4865_v4 = vmov 0.0   ;;  %v2555_v37 = vrot.slane %v5730_v32, 5  ;;  %v6620_v61 = vld [vmem:[#allocation16_spill] sm:$0xff]  ;;  %v6623_v13 = vld [vmem:[#allocation7_spill] sm:$0xff] }
  0x88   : > { %v1123_v0 = vsel %vm5168_vm5, %v1118_v41, %v1122_v36  ;;  %v5719_v19 = vcombine.low %v1613_v26, %v1616_v9  ;;  %329 = vst.msk [vmem:[#allocation2 + $0x90] sm:$0xff] %vm310_vm7, %v4865_v4  ;;  %311 = vst.msk [vmem:[#allocation2] sm:$0xff] %vm310_vm7, %v4865_v4  ;;  %v2553_v5 = vsel %vm5193_vm6, %v4148_v2, %v2552_v29  ;;  %v2554_v51 = vrot.slane %v2552_v29, 4  ;;  %v6617_v36 = vld [vmem:[#allocation11_spill] sm:$0xff]  ;;  %v6626_v2 = vld [vmem:[#allocation13_spill] sm:$0xff] }
  0x89   : > { %v5713_v49 = vcombine.low %v1113_v55, %v1123_v0  ;;  %4489 = vmatprep.mubr.msk.bf16.mxu0 %vm463_vm0, %v5707_v31  ;;  %312 = vst.msk [vmem:[#allocation2 + $0x8] sm:$0xff] %vm310_vm7, %v4865_v4  ;;  %313 = vst.msk [vmem:[#allocation2 + $0x10] sm:$0xff] %vm310_vm7, %v4865_v4  ;;  %v2254_v7 = vshrl.u32 %v5722_v3, 16  ;;  %v2257_v55 = vshll.u32 %v5722_v3, 16  ;;  %v2267_v41 = vshrl.u32 %v5725_v28, 16  ;;  %v6627_v29 = vld [vmem:[#allocation14_spill] sm:$0xff] }
  0x8a   : > { %314 = vst.msk [vmem:[#allocation2 + $0x18] sm:$0xff] %vm310_vm7, %v4865_v4  ;;  %315 = vst.msk [vmem:[#allocation2 + $0x20] sm:$0xff] %vm310_vm7, %v4865_v4  ;;  %v2556_v33 = vsel %vm5193_vm6, %v2554_v51, %v2555_v37  ;;  %v2263_v10 = vshll.u32 %v5725_v28, 16  ;;  %v2273_v37 = vshll.u32 %v5730_v32, 16 }
  0x8b   : > { %4456 = vmatmul.mubr.msk.bf16.gmra.mrb[44].mxu1 %vm463_vm0, %v5713_v49  ;;  %4490 = vmatmul.mubr.msk.bf16.gmra.mrb[44].mxu0 %vm463_vm0, %v5719_v19  ;;  %316 = vst.msk [vmem:[#allocation2 + $0x28] sm:$0xff] %vm310_vm7, %v4865_v4  ;;  %317 = vst.msk [vmem:[#allocation2 + $0x30] sm:$0xff] %vm310_vm7, %v4865_v4  ;;  %v5777_v43 = vcombine.low %v2553_v5, %v2556_v33  ;;  %v2256_v26 = vrot.slane %v2254_v7, 4  ;;  %v2259_v27 = vrot.slane %v2257_v55, 5  ;;  %v2269_v9 = vrot.slane %v2267_v41, 4  ;;  %v6628_v7 = vld [vmem:[#allocation18_spill] sm:$0xff] }
  0x8c   : > { %4495 = vmatprep.mubr.msk.bf16.mxu1 %vm463_vm0, %v6616_v58  ;;  %318 = vst.msk [vmem:[#allocation2 + $0x38] sm:$0xff] %vm310_vm7, %v4865_v4  ;;  %319 = vst.msk [vmem:[#allocation2 + $0x40] sm:$0xff] %vm310_vm7, %v4865_v4  ;;  %4529 = vmatprep.mubr.msk.bf16.mxu0 %vm463_vm0, %v5316_v60  ;;  %v4783_v60 = vld [vmem:[%s6510_s1 + $0x40] sm:$0xff]   ;;  %v2265_v0 = vrot.slane %v2263_v10, 5  ;;  %v2275_v33 = vrot.slane %v2273_v37, 5  ;;  %v5854_v41 = vcombine.low %v5722_v3, %v5725_v28 }
  0x8d   : > { %320 = vst.msk [vmem:[#allocation2 + $0x48] sm:$0xff] %vm310_vm7, %v4865_v4  ;;  %321 = vst.msk [vmem:[#allocation2 + $0x50] sm:$0xff] %vm310_vm7, %v4865_v4  ;;  %v2260_v58 = vor.u32 %v2259_v27, %v2256_v26 }
  0x8e   : > { %322 = vst.msk [vmem:[#allocation2 + $0x58] sm:$0xff] %vm310_vm7, %v4865_v4  ;;  %323 = vst.msk [vmem:[#allocation2 + $0x60] sm:$0xff] %vm310_vm7, %v4865_v4 }
  0x8f   : > { %324 = vst.msk [vmem:[#allocation2 + $0x68] sm:$0xff] %vm310_vm7, %v4865_v4  ;;  %325 = vst.msk [vmem:[#allocation2 + $0x70] sm:$0xff] %vm310_vm7, %v4865_v4  ;;  %v2261_v5 = vrot.slane %v2260_v58, 4 }
  0x90   : > { %326 = vst.msk [vmem:[#allocation2 + $0x78] sm:$0xff] %vm310_vm7, %v4865_v4  ;;  %327 = vst.msk [vmem:[#allocation2 + $0x80] sm:$0xff] %vm310_vm7, %v4865_v4 }
  0x91   : > { %328 = vst.msk [vmem:[#allocation2 + $0x88] sm:$0xff] %vm310_vm7, %v4865_v4  ;;  %330 = vst.msk [vmem:[#allocation2 + $0x98] sm:$0xff] %vm310_vm7, %v4865_v4  ;;  %v2266_v55 = vsel %vm5168_vm5, %v2261_v5, %v2265_v0  ;;  %v346_v26 = vld [vmem:[#allocation2 + $0x18] sm:$0xff] }
  0x92   : > { %331 = vst.msk [vmem:[#allocation2 + $0xa0] sm:$0xff] %vm310_vm7, %v4865_v4  ;;  %332 = vst.msk [vmem:[#allocation2 + $0xa8] sm:$0xff] %vm310_vm7, %v4865_v4 }
  0x93   : > { %333 = vst.msk [vmem:[#allocation2 + $0xb0] sm:$0xff] %vm310_vm7, %v4865_v4  ;;  %334 = vst.msk [vmem:[#allocation2 + $0xb8] sm:$0xff] %vm310_vm7, %v4865_v4  ;;  %4496 = vmatmul.mubr.msk.bf16.vlgmr.msra.gmra.mrb[48].mxu1 %vm463_vm0, %v6617_v36  ;;  %4530 = vmatmul.mubr.msk.bf16.vlgmr.msra.gmra.mrb[48].mxu0 %vm463_vm0, %v5341_v24 }
  0x94   : > { %335 = vst.msk [vmem:[#allocation2 + $0xc0] sm:$0xff] %vm310_vm7, %v4865_v4  ;;  %336 = vst.msk [vmem:[#allocation2 + $0xc8] sm:$0xff] %vm310_vm7, %v4865_v4  ;;  %4562 = vmatpush3.bf16.msra.mxu1 %v5353_v57  ;;  %4499 = vmatprep.mubr.msk.bf16.mxu1 %vm463_vm0, %v6618_v14  ;;  %v6621_v57 = vld [vmem:[#allocation21_spill] sm:$0xff] }
  0x95   : > { %337 = vst.msk [vmem:[#allocation2 + $0xd0] sm:$0xff] %vm310_vm7, %v4865_v4  ;;  %338 = vst.msk [vmem:[#allocation2 + $0xd8] sm:$0xff] %vm310_vm7, %v4865_v4  ;;  %4629 = vmatprep.subr.bf16.mxu1 %v4782_v1  ;;  %4596 = vmatpush3.bf16.msra.mxu0 %v5362_v44  ;;  %v6622_v44 = vld [vmem:[#allocation6_spill] sm:$0xff] }
  0x96   : > { %339 = vst.msk [vmem:[#allocation2 + $0xe0] sm:$0xff] %vm310_vm7, %v4865_v4  ;;  %340 = vst.msk [vmem:[#allocation2 + $0xe8] sm:$0xff] %vm310_vm7, %v4865_v4  ;;  %4533 = vmatprep.mubr.msk.bf16.mxu0 %vm463_vm0, %v5382_v11  ;;  %4663 = vmatprep.subr.bf16.mxu0 %v4783_v60 }
  0x97   : > { %341 = vst.msk [vmem:[#allocation2 + $0xf0] sm:$0xff] %vm310_vm7, %v4865_v4  ;;  %342 = vst.msk [vmem:[#allocation2 + $0xf8] sm:$0xff] %vm310_vm7, %v4865_v4  ;;  %v2270_v4 = vor.u32 %v2269_v9, %v2265_v0  ;;  %v344_v9 = vld [vmem:[#allocation2 + $0x8] sm:$0xff] }
  0x98   : > { %v362_v28 = vld [vmem:[#allocation2 + $0x98] sm:$0xff] }
  0x99   : > { %v2271_v51 = vrot.slane %v2270_v4, 4 }
  0x9a   : > { %v365_v5 = vld [vmem:[#allocation2 + $0xb0] sm:$0xff] }
  0x9b   : > { %4500 = vmatmul.mubr.msk.bf16.gmra.mrb[52].mxu1 %vm463_vm0, %v6619_v20  ;;  %4534 = vmatmul.mubr.msk.bf16.gmra.mrb[52].mxu0 %vm463_vm0, %v5409_v15  ;;  %v2276_v32 = vsel %vm5168_vm5, %v2271_v51, %v2275_v33  ;;  %v363_v51 = vld [vmem:[#allocation2 + $0xa0] sm:$0xff] }
  0x9c   : > { %4503 = vmatprep.mubr.msk.bf16.mxu1 %vm463_vm0, %v6620_v61  ;;  %4537 = vmatprep.mubr.msk.bf16.mxu0 %vm463_vm0, %v5441_v38  ;;  %v5856_v10 = vcombine.low %v2266_v55, %v2276_v32  ;;  %v5929_v55 = vld [vmem:[%s4966_s13 + $0xcc] sm:$0xf]  ;;  %v349_v32 = vld [vmem:[#allocation2 + $0x30] sm:$0xff] }
  0xa3   : > { %4504 = vmatmul.mubr.msk.bf16.gmra.mrb[56].mxu1 %vm463_vm0, %v6621_v57  ;;  %4538 = vmatmul.mubr.msk.bf16.gmra.mrb[56].mxu0 %vm463_vm0, %v5473_v63 }
  0xa4   : > { %4507 = vmatprep.mubr.msk.bf16.mxu1 %vm463_vm0, %v5278_v50  ;;  %4541 = vmatprep.mubr.msk.bf16.mxu0 %vm463_vm0, %v5502_v30 }
  0xab   : > { %4508 = vmatmul.mubr.msk.bf16.gmra.mrb[60].mxu1 %vm463_vm0, %v6622_v44  ;;  %4542 = vmatmul.mubr.msk.bf16.gmra.mrb[60].mxu0 %vm463_vm0, %v5511_v45 }
  0xac   : > { %4511 = vmatprep.mubr.msk.bf16.mxu1 %vm463_vm0, %v6623_v13  ;;  %4545 = vmatprep.mubr.msk.bf16.mxu0 %vm463_vm0, %v5561_v54 }
  0xb3   : > { %4512 = vmatmul.mubr.msk.bf16.gmra.mrb[64].mxu1 %vm463_vm0, %v6624_v21  ;;  %4546 = vmatmul.mubr.msk.bf16.gmra.mrb[64].mxu0 %vm463_vm0, %v5586_v25 }
  0xb4   : > { %4515 = vmatprep.mubr.msk.bf16.mxu1 %vm463_vm0, %v6625_v52  ;;  %4549 = vmatprep.mubr.msk.bf16.mxu0 %vm463_vm0, %v5615_v47 }
  0xbb   : > { %4516 = vmatmul.mubr.msk.bf16.gmra.mrb[68].mxu1 %vm463_vm0, %v6626_v2  ;;  %4550 = vmatmul.mubr.msk.bf16.gmra.mrb[68].mxu0 %vm463_vm0, %v5641_v18 }
  0xbc   : > { %4519 = vmatprep.mubr.msk.bf16.mxu1 %vm463_vm0, %v6627_v29  ;;  %4553 = vmatprep.mubr.msk.bf16.mxu0 %vm463_vm0, %v5666_v23 }
  0xc3   : > { %4520 = vmatmul.mubr.msk.bf16.gmra.mrb[72].mxu1 %vm463_vm0, %v6628_v7  ;;  %4554 = vmatmul.mubr.msk.bf16.gmra.mrb[72].mxu0 %vm463_vm0, %v5693_v56 }
  0xc4   : > { %4523 = vmatprep.mubr.msk.bf16.mxu1 %vm463_vm0, %v5247_v40  ;;  %4557 = vmatprep.mubr.msk.bf16.mxu0 %vm463_vm0, %v5713_v49 }
  0xcb   : > { %4524 = vmatmul.mubr.msk.bf16.gmra.mrb[76].mxu1 %vm463_vm0, %v5854_v41  ;;  %4558 = vmatmul.mubr.msk.bf16.gmra.mrb[76].mxu0 %vm463_vm0, %v5856_v10 }
  0xcc   : > { %4563 = vmatprep.mubr.msk.bf16.mxu1 %vm463_vm0, %v5318_v48  ;;  %4597 = vmatprep.mubr.msk.bf16.mxu0 %vm463_vm0, %v6617_v36  ;;  %v359_v48 = vld [vmem:[#allocation2 + $0x80] sm:$0xff] }
  0xd3   : > { %4564 = vmatmul.mubr.msk.bf16.vlgmr.msra.gmra.mrb[80].mxu1 %vm463_vm0, %v5377_v39  ;;  %4598 = vmatmul.mubr.msk.bf16.vlgmr.msra.gmra.mrb[80].mxu0 %vm463_vm0, %v6618_v14 }
  0xd4   : > { %4630 = vmatpush3.bf16.msra.mxu1 %v4782_v1  ;;  %4567 = vmatprep.mubr.msk.bf16.mxu1 %vm463_vm0, %v5406_v46 }
  0xd5   : > { %4664 = vmatpush3.bf16.msra.mxu0 %v4783_v60  ;;  %4601 = vmatprep.mubr.msk.bf16.mxu0 %vm463_vm0, %v6619_v20  ;;  %v360_v60 = vld [vmem:[#allocation2 + $0x88] sm:$0xff] }
  0xdb   : > { %4568 = vmatmul.mubr.msk.bf16.gmra.mrb[84].mxu1 %vm463_vm0, %v5438_v12  ;;  %4602 = vmatmul.mubr.msk.bf16.gmra.mrb[84].mxu0 %vm463_vm0, %v6620_v61  ;;  %v345_v61 = vld [vmem:[#allocation2 + $0x10] sm:$0xff] }
  0xdc   : > { %4571 = vmatprep.mubr.msk.bf16.mxu1 %vm463_vm0, %v5463_v53  ;;  %4605 = vmatprep.mubr.msk.bf16.mxu0 %vm463_vm0, %v6621_v57 }
  0xe3   : > { %4572 = vmatmul.mubr.msk.bf16.gmra.mrb[88].mxu1 %vm463_vm0, %v5498_v6  ;;  %4606 = vmatmul.mubr.msk.bf16.gmra.mrb[88].mxu0 %vm463_vm0, %v5278_v50  ;;  %v361_v50 = vld [vmem:[#allocation2 + $0x90] sm:$0xff] }
  0xe4   : > { %4575 = vmatprep.mubr.msk.bf16.mxu1 %vm463_vm0, %v5519_v59  ;;  %4609 = vmatprep.mubr.msk.bf16.mxu0 %vm463_vm0, %v6622_v44 }
  0xeb   : > { %4576 = vmatmul.mubr.msk.bf16.gmra.mrb[92].mxu1 %vm463_vm0, %v5549_v8  ;;  %4610 = vmatmul.mubr.msk.bf16.gmra.mrb[92].mxu0 %vm463_vm0, %v6623_v13  ;;  %v343_v13 = vld [vmem:[#allocation2] sm:$0xff] }
  0xec   : > { %4579 = vmatprep.mubr.msk.bf16.mxu1 %vm463_vm0, %v5575_v22  ;;  %4613 = vmatprep.mubr.msk.bf16.mxu0 %vm463_vm0, %v6624_v21 }
  0xf3   : > { %4580 = vmatmul.mubr.msk.bf16.gmra.mrb[96].mxu1 %vm463_vm0, %v5608_v16  ;;  %4614 = vmatmul.mubr.msk.bf16.gmra.mrb[96].mxu0 %vm463_vm0, %v6625_v52 }
  0xf4   : > { %4583 = vmatprep.mubr.msk.bf16.mxu1 %vm463_vm0, %v5633_v17  ;;  %4617 = vmatprep.mubr.msk.bf16.mxu0 %vm463_vm0, %v6626_v2  ;;  %v4411_v3 = vpop.f32.mrb[0].mxu1 }
  0xf5   : > { %v691_v1 = vadd.f32 %v4411_v3, %v361_v50  ;;  %v610_v36 = vpop.f32.mrb[1].mxu1  ;;  %v364_v3 = vld [vmem:[#allocation2 + $0xa8] sm:$0xff] }
  0xf6   : > { %v689_v14 = vadd.f32 %v610_v36, %v359_v48  ;;  %v4412_v20 = vpop.f32.mrb[2].mxu1 }
  0xf7   : > { %723 = vst.msk [vmem:[#allocation2 + $0x90] sm:$0xff] %vm310_vm7, %v691_v1  ;;  %v692_v57 = vadd.f32 %v4412_v20, %v362_v28  ;;  %v613_v44 = vpop.f32.mrb[3].mxu1  ;;  %v5934_v28 = vld [vmem:[%s4966_s13 + $0xd0] sm:$0xf]  ;;  %v347_v1 = vld [vmem:[#allocation2 + $0x20] sm:$0xff]  ;;  %v350_v20 = vld [vmem:[#allocation2 + $0x38] sm:$0xff] }
  0xf8   : > { %721 = vst.msk [vmem:[#allocation2 + $0x80] sm:$0xff] %vm310_vm7, %v689_v14  ;;  %v690_v21 = vadd.f32 %v613_v44, %v360_v60  ;;  %v4395_v52 = vpop.f32.mrb[0].mxu0 }
  0xf9   : > { %724 = vst.msk [vmem:[#allocation2 + $0x98] sm:$0xff] %vm310_vm7, %v692_v57  ;;  %v675_v27 = vadd.f32 %v4395_v52, %v345_v61  ;;  %v546_v0 = vpop.f32.mrb[1].mxu0 }
  0xfa   : > { %722 = vst.msk [vmem:[#allocation2 + $0x88] sm:$0xff] %vm310_vm7, %v690_v21  ;;  %v673_v2 = vadd.f32 %v546_v0, %v343_v13  ;;  %v348_v13 = vld [vmem:[#allocation2 + $0x28] sm:$0xff] }
  0xfb   : > { %4584 = vmatmul.mubr.msk.bf16.gmra.mrb[100].mxu1 %vm463_vm0, %v5663_v42  ;;  %4618 = vmatmul.mubr.msk.bf16.gmra.mrb[100].mxu0 %vm463_vm0, %v6627_v29  ;;  %v4396_v29 = vpop.f32.mrb[2].mxu0  ;;  %707 = vst.msk [vmem:[#allocation2 + $0x10] sm:$0xff] %vm310_vm7, %v675_v27 }
  0xfc   : > { %4587 = vmatprep.mubr.msk.bf16.mxu1 %vm463_vm0, %v5690_v34  ;;  %4621 = vmatprep.mubr.msk.bf16.mxu0 %vm463_vm0, %v6628_v7  ;;  %v676_v58 = vadd.f32 %v4396_v29, %v346_v26  ;;  %v549_v4 = vpop.f32.mrb[3].mxu0  ;;  %705 = vst.msk [vmem:[#allocation2] sm:$0xff] %vm310_vm7, %v673_v2  ;;  %v366_v7 = vld [vmem:[#allocation2 + $0xb8] sm:$0xff]  ;;  %v367_v29 = vld [vmem:[#allocation2 + $0xc0] sm:$0xff] }
  0xfd   : > { %v674_v37 = vadd.f32 %v549_v4, %v344_v9  ;;  %v4415_v33 = vpop.f32.mrb[4].mxu1  ;;  %v369_v9 = vld [vmem:[#allocation2 + $0xd0] sm:$0xff]  ;;  %v370_v4 = vld [vmem:[#allocation2 + $0xd8] sm:$0xff] }
  0xfe   : > { %708 = vst.msk [vmem:[#allocation2 + $0x18] sm:$0xff] %vm310_vm7, %v676_v58  ;;  %v695_v50 = vadd.f32 %v4415_v33, %v365_v5  ;;  %v626_v48 = vpop.f32.mrb[5].mxu1  ;;  %v368_v33 = vld [vmem:[#allocation2 + $0xc8] sm:$0xff] }
  0xff   : > { %706 = vst.msk [vmem:[#allocation2 + $0x8] sm:$0xff] %vm310_vm7, %v674_v37  ;;  %v693_v36 = vadd.f32 %v626_v48, %v363_v51  ;;  %v4416_v60 = vpop.f32.mrb[6].mxu1  ;;  %v353_v37 = vld [vmem:[#allocation2 + $0x50] sm:$0xff]  ;;  %v354_v48 = vld [vmem:[#allocation2 + $0x58] sm:$0xff] }
 0x100   : > { %v4399_v14 = vpop.f32.mrb[4].mxu0  ;;  %727 = vst.msk [vmem:[#allocation2 + $0xb0] sm:$0xff] %vm310_vm7, %v695_v50  ;;  %v629_v61 = vpop.f32.mrb[7].mxu1 }
 0x101   : > { %v679_v57 = vadd.f32 %v4399_v14, %v349_v32  ;;  %v562_v44 = vpop.f32.mrb[5].mxu0  ;;  %725 = vst.msk [vmem:[#allocation2 + $0xa0] sm:$0xff] %vm310_vm7, %v693_v36  ;;  %v694_v21 = vadd.f32 %v629_v61, %v364_v3  ;;  %v352_v14 = vld [vmem:[#allocation2 + $0x48] sm:$0xff] }
 0x102   : > { %v677_v52 = vadd.f32 %v562_v44, %v347_v1  ;;  %v4400_v26 = vpop.f32.mrb[6].mxu0  ;;  %v373_v44 = vld [vmem:[#allocation2 + $0xf0] sm:$0xff] }
 0x103   : > { %4588 = vmatmul.mubr.msk.bf16.gmra.mrb[104].mxu1 %vm463_vm0, %v5707_v31  ;;  %4622 = vmatmul.mubr.msk.bf16.gmra.mrb[104].mxu0 %vm463_vm0, %v5247_v40  ;;  %v696_v40 = vadd.f32 %v4416_v60, %v366_v7  ;;  %711 = vst.msk [vmem:[#allocation2 + $0x30] sm:$0xff] %vm310_vm7, %v679_v57  ;;  %v680_v27 = vadd.f32 %v4400_v26, %v350_v20  ;;  %v565_v0 = vpop.f32.mrb[7].mxu0  ;;  %726 = vst.msk [vmem:[#allocation2 + $0xa8] sm:$0xff] %vm310_vm7, %v694_v21  ;;  %v351_v7 = vld [vmem:[#allocation2 + $0x40] sm:$0xff] }
 0x104   : > { %4591 = vmatprep.mubr.msk.bf16.mxu1 %vm463_vm0, %v5719_v19  ;;  %4625 = vmatprep.mubr.msk.bf16.mxu0 %vm463_vm0, %v5854_v41  ;;  %v4171_v41 = vcombine.low %v5929_v55, %v5934_v28  ;;  %709 = vst.msk [vmem:[#allocation2 + $0x20] sm:$0xff] %vm310_vm7, %v677_v52  ;;  %v678_v2 = vadd.f32 %v565_v0, %v348_v13  ;;  %v371_v21 = vld [vmem:[#allocation2 + $0xe0] sm:$0xff]  ;;  %v374_v52 = vld [vmem:[#allocation2 + $0xf8] sm:$0xff]  ;;  %v372_v0 = vld [vmem:[#allocation2 + $0xe8] sm:$0xff] }
 0x105   : > { %728 = vst.msk [vmem:[#allocation2 + $0xb8] sm:$0xff] %vm310_vm7, %v696_v40  ;;  %712 = vst.msk [vmem:[#allocation2 + $0x38] sm:$0xff] %vm310_vm7, %v680_v27  ;;  %v4419_v58 = vpop.f32.mrb[8].mxu1 }
 0x106   : > { %710 = vst.msk [vmem:[#allocation2 + $0x28] sm:$0xff] %vm310_vm7, %v678_v2  ;;  %v699_v5 = vadd.f32 %v4419_v58, %v369_v9  ;;  %v642_v51 = vpop.f32.mrb[9].mxu1  ;;  %v355_v9 = vld [vmem:[#allocation2 + $0x60] sm:$0xff]  ;;  %v358_v58 = vld [vmem:[#allocation2 + $0x78] sm:$0xff] }
 0x107   : > { %v697_v32 = vadd.f32 %v642_v51, %v367_v29  ;;  %v4420_v50 = vpop.f32.mrb[10].mxu1  ;;  %v356_v51 = vld [vmem:[#allocation2 + $0x68] sm:$0xff] }
 0x108   : > { %731 = vst.msk [vmem:[#allocation2 + $0xd0] sm:$0xff] %vm310_vm7, %v699_v5  ;;  %v700_v3 = vadd.f32 %v4420_v50, %v370_v4  ;;  %v645_v1 = vpop.f32.mrb[11].mxu1 }
 0x109   : > { %729 = vst.msk [vmem:[#allocation2 + $0xc0] sm:$0xff] %vm310_vm7, %v697_v32  ;;  %v698_v20 = vadd.f32 %v645_v1, %v368_v33 }
 0x10a   : > { %732 = vst.msk [vmem:[#allocation2 + $0xd8] sm:$0xff] %vm310_vm7, %v700_v3 }
 0x10b   : > { %4592 = vmatmul.mubr.msk.bf16.gmra.mrb[108].mxu1 %vm463_vm0, %v5777_v43  ;;  %4626 = vmatmul.mubr.msk.bf16.gmra.mrb[108].mxu0 %vm463_vm0, %v4171_v41  ;;  %730 = vst.msk [vmem:[#allocation2 + $0xc8] sm:$0xff] %vm310_vm7, %v698_v20 }
 0x10c   : > { %4631 = vmatprep.mubr.msk.bf16.mxu1 %vm463_vm0, %v5341_v24  ;;  %4665 = vmatprep.mubr.msk.bf16.mxu0 %vm463_vm0, %v5377_v39  ;;  %v4403_v24 = vpop.f32.mrb[8].mxu0 }
 0x10d   : > { %v683_v36 = vadd.f32 %v4403_v24, %v353_v37  ;;  %v578_v60 = vpop.f32.mrb[9].mxu0  ;;  %v4423_v41 = vpop.f32.mrb[12].mxu1 }
 0x10e   : > { %v681_v40 = vadd.f32 %v578_v60, %v351_v7  ;;  %v4404_v61 = vpop.f32.mrb[10].mxu0  ;;  %v703_v26 = vadd.f32 %v4423_v41, %v373_v44  ;;  %v658_v27 = vpop.f32.mrb[13].mxu1 }
 0x10f   : > { %715 = vst.msk [vmem:[#allocation2 + $0x50] sm:$0xff] %vm310_vm7, %v683_v36  ;;  %v684_v39 = vadd.f32 %v4404_v61, %v354_v48  ;;  %v581_v57 = vpop.f32.mrb[11].mxu0  ;;  %v701_v2 = vadd.f32 %v658_v27, %v371_v21  ;;  %v1126_v48 = vld [vmem:[#allocation2 + $0x10] sm:$0xff]  ;;  %v1124_v36 = vld [vmem:[#allocation2] sm:$0xff]  ;;  %v1125_v61 = vld [vmem:[#allocation2 + $0x8] sm:$0xff] }
 0x110   : > { %713 = vst.msk [vmem:[#allocation2 + $0x40] sm:$0xff] %vm310_vm7, %v681_v40  ;;  %v682_v13 = vadd.f32 %v581_v57, %v352_v14  ;;  %v4407_v29 = vpop.f32.mrb[12].mxu0  ;;  %735 = vst.msk [vmem:[#allocation2 + $0xf0] sm:$0xff] %vm310_vm7, %v703_v26  ;;  %v1127_v14 = vld [vmem:[#allocation2 + $0x18] sm:$0xff] }
 0x111   : > { %716 = vst.msk [vmem:[#allocation2 + $0x58] sm:$0xff] %vm310_vm7, %v684_v39  ;;  %v594_v5 = vpop.f32.mrb[13].mxu0  ;;  %733 = vst.msk [vmem:[#allocation2 + $0xe0] sm:$0xff] %vm310_vm7, %v701_v2 }
 0x112   : > { %714 = vst.msk [vmem:[#allocation2 + $0x48] sm:$0xff] %vm310_vm7, %v682_v13  ;;  %v685_v7 = vadd.f32 %v594_v5, %v355_v9  ;;  %v4408_v32 = vpop.f32.mrb[14].mxu0 }
 0x113   : > { %4632 = vmatmul.mubr.msk.bf16.vlgmr.msra.gmra.mrb[112].mxu1 %vm463_vm0, %v5382_v11  ;;  %4666 = vmatmul.mubr.msk.bf16.vlgmr.msra.gmra.mrb[112].mxu0 %vm463_vm0, %v5406_v46  ;;  %v357_v11 = vld [vmem:[#allocation2 + $0x70] sm:$0xff]  ;;  %v597_v50 = vpop.f32.mrb[15].mxu0 }
 0x114   : > { %4635 = vmatprep.mubr.msk.bf16.mxu1 %vm463_vm0, %v5409_v15  ;;  %4669 = vmatprep.mubr.msk.bf16.mxu0 %vm463_vm0, %v5438_v12  ;;  %v4424_v15 = vpop.f32.mrb[14].mxu1  ;;  %v687_v37 = vadd.f32 %v4407_v29, %v357_v11  ;;  %v688_v12 = vadd.f32 %v4408_v32, %v358_v58  ;;  %717 = vst.msk [vmem:[#allocation2 + $0x60] sm:$0xff] %vm310_vm7, %v685_v7  ;;  %v1129_v29 = vld [vmem:[#allocation2 + $0x28] sm:$0xff] }
 0x115   : > { %v704_v4 = vadd.f32 %v4424_v15, %v374_v52  ;;  %v661_v46 = vpop.f32.mrb[15].mxu1  ;;  %v686_v24 = vadd.f32 %v597_v50, %v356_v51  ;;  %v1128_v52 = vld [vmem:[#allocation2 + $0x20] sm:$0xff] }
 0x116   : > { %v702_v33 = vadd.f32 %v661_v46, %v372_v0  ;;  %719 = vst.msk [vmem:[#allocation2 + $0x70] sm:$0xff] %vm310_vm7, %v687_v37  ;;  %720 = vst.msk [vmem:[#allocation2 + $0x78] sm:$0xff] %vm310_vm7, %v688_v12  ;;  %v4429_v3 = vpop.f32.mrb[16].mxu1  ;;  %v1131_v0 = vld [vmem:[#allocation2 + $0x38] sm:$0xff]  ;;  %v1134_v32 = vld [vmem:[#allocation2 + $0x50] sm:$0xff] }
 0x117   : > { %736 = vst.msk [vmem:[#allocation2 + $0xf8] sm:$0xff] %vm310_vm7, %v704_v4  ;;  %718 = vst.msk [vmem:[#allocation2 + $0x68] sm:$0xff] %vm310_vm7, %v686_v24  ;;  %v1424_v1 = vadd.f32 %v4429_v3, %v1126_v48  ;;  %v1132_v24 = vld [vmem:[#allocation2 + $0x40] sm:$0xff] }
 0x118   : > { %734 = vst.msk [vmem:[#allocation2 + $0xe8] sm:$0xff] %vm310_vm7, %v702_v33  ;;  %v4463_v40 = vpop.f32.mrb[16].mxu0 }
 0x119   : > { %1456 = vst.msk [vmem:[#allocation2 + $0x10] sm:$0xff] %vm310_vm7, %v1424_v1  ;;  %v1135_v1 = vld [vmem:[#allocation2 + $0x58] sm:$0xff] }
 0x11b   : > { %4636 = vmatmul.mubr.msk.bf16.gmra.mrb[116].mxu1 %vm463_vm0, %v5441_v38  ;;  %4670 = vmatmul.mubr.msk.bf16.gmra.mrb[116].mxu0 %vm463_vm0, %v5463_v53  ;;  %v1295_v38 = vpop.f32.mrb[17].mxu1  ;;  %v1788_v53 = vpop.f32.mrb[17].mxu0 }
 0x11c   : > { %4639 = vmatprep.mubr.msk.bf16.mxu1 %vm463_vm0, %v5473_v63  ;;  %4673 = vmatprep.mubr.msk.bf16.mxu0 %vm463_vm0, %v5498_v6  ;;  %v1422_v60 = vadd.f32 %v1295_v38, %v1124_v36  ;;  %v4430_v20 = vpop.f32.mrb[18].mxu1  ;;  %v4464_v44 = vpop.f32.mrb[18].mxu0  ;;  %v1130_v6 = vld [vmem:[#allocation2 + $0x30] sm:$0xff] }
 0x11d   : > { %v1425_v63 = vadd.f32 %v4430_v20, %v1127_v14  ;;  %v1298_v39 = vpop.f32.mrb[19].mxu1  ;;  %v1791_v13 = vpop.f32.mrb[19].mxu0  ;;  %v1133_v20 = vld [vmem:[#allocation2 + $0x48] sm:$0xff] }
 0x11e   : > { %1454 = vst.msk [vmem:[#allocation2] sm:$0xff] %vm310_vm7, %v1422_v60  ;;  %v1423_v57 = vadd.f32 %v1298_v39, %v1125_v61  ;;  %v4433_v21 = vpop.f32.mrb[20].mxu1 }
 0x11f   : > { %1457 = vst.msk [vmem:[#allocation2 + $0x18] sm:$0xff] %vm310_vm7, %v1425_v63  ;;  %v1428_v41 = vadd.f32 %v4433_v21, %v1130_v6  ;;  %v1311_v11 = vpop.f32.mrb[21].mxu1  ;;  %v3107_v6 = vshll.u32 %v5929_v55, 16 }
 0x120   : > { %1455 = vst.msk [vmem:[#allocation2 + $0x8] sm:$0xff] %vm310_vm7, %v1423_v57  ;;  %v1619_v26 = vld [vmem:[#allocation2 + $0x10] sm:$0xff]  ;;  %v1426_v27 = vadd.f32 %v1311_v11, %v1128_v52  ;;  %v4467_v9 = vpop.f32.mrb[20].mxu0  ;;  %v3113_v52 = vshll.u32 %v5934_v28, 16 }
 0x121   : > { %v1917_v2 = vadd.f32 %v4463_v40, %v1619_v26  ;;  %1460 = vst.msk [vmem:[#allocation2 + $0x30] sm:$0xff] %vm310_vm7, %v1428_v41  ;;  %v1804_v58 = vpop.f32.mrb[21].mxu0  ;;  %v3117_v41 = vshrl.u32 %v5934_v28, 16 }
 0x122   : > { %1458 = vst.msk [vmem:[#allocation2 + $0x20] sm:$0xff] %vm310_vm7, %v1426_v27  ;;  %v4468_v5 = vpop.f32.mrb[22].mxu0 }
 0x123   : > { %4640 = vmatmul.mubr.msk.bf16.gmra.mrb[120].mxu1 %vm463_vm0, %v5502_v30  ;;  %4674 = vmatmul.mubr.msk.bf16.gmra.mrb[120].mxu0 %vm463_vm0, %v5519_v59  ;;  %v4434_v30 = vpop.f32.mrb[22].mxu1  ;;  %1949 = vst.msk [vmem:[#allocation2 + $0x10] sm:$0xff] %vm310_vm7, %v1917_v2  ;;  %v1807_v33 = vpop.f32.mrb[23].mxu0  ;;  %v3109_v2 = vrot.slane %v3107_v6, 5 }
 0x124   : > { %4643 = vmatprep.mubr.msk.bf16.mxu1 %vm463_vm0, %v5511_v45  ;;  %4677 = vmatprep.mubr.msk.bf16.mxu0 %vm463_vm0, %v5549_v8  ;;  %v1429_v15 = vadd.f32 %v4434_v30, %v1131_v0  ;;  %v1314_v59 = vpop.f32.mrb[23].mxu1  ;;  %v1136_v0 = vld [vmem:[#allocation2 + $0x60] sm:$0xff] }
 0x125   : > { %v1617_v45 = vld [vmem:[#allocation2] sm:$0xff]  ;;  %v1427_v37 = vadd.f32 %v1314_v59, %v1129_v29  ;;  %v4437_v12 = vpop.f32.mrb[24].mxu1  ;;  %v1139_v29 = vld [vmem:[#allocation2 + $0x78] sm:$0xff] }
 0x126   : > { %v1915_v4 = vadd.f32 %v1788_v53, %v1617_v45  ;;  %v1620_v46 = vld [vmem:[#allocation2 + $0x18] sm:$0xff]  ;;  %1461 = vst.msk [vmem:[#allocation2 + $0x38] sm:$0xff] %vm310_vm7, %v1429_v15  ;;  %v1432_v50 = vadd.f32 %v4437_v12, %v1134_v32 }
 0x127   : > { %v1918_v8 = vadd.f32 %v4464_v44, %v1620_v46  ;;  %v1618_v51 = vld [vmem:[#allocation2 + $0x8] sm:$0xff]  ;;  %1459 = vst.msk [vmem:[#allocation2 + $0x28] sm:$0xff] %vm310_vm7, %v1427_v37 }
 0x128   : > { %1947 = vst.msk [vmem:[#allocation2] sm:$0xff] %vm310_vm7, %v1915_v4  ;;  %v1916_v7 = vadd.f32 %v1791_v13, %v1618_v51  ;;  %v1623_v48 = vld [vmem:[#allocation2 + $0x30] sm:$0xff]  ;;  %v4471_v38 = vpop.f32.mrb[24].mxu0  ;;  %1464 = vst.msk [vmem:[#allocation2 + $0x50] sm:$0xff] %vm310_vm7, %v1432_v50  ;;  %v3104_v13 = vshrl.u32 %v5929_v55, 16  ;;  %v6033_v4 = vrot.slane %v3113_v52, 5 }
 0x129   : > { %1950 = vst.msk [vmem:[#allocation2 + $0x18] sm:$0xff] %vm310_vm7, %v1918_v8  ;;  %v1921_v60 = vadd.f32 %v4467_v9, %v1623_v48  ;;  %v1820_v40 = vpop.f32.mrb[25].mxu0 }
 0x12a   : > { %1948 = vst.msk [vmem:[#allocation2 + $0x8] sm:$0xff] %vm310_vm7, %v1916_v7  ;;  %v4472_v53 = vpop.f32.mrb[26].mxu0  ;;  %v3106_v9 = vrot.slane %v3104_v13, 4 }
 0x12b   : > { %4644 = vmatmul.mubr.msk.bf16.gmra.mrb[124].mxu1 %vm463_vm0, %v5561_v54  ;;  %4678 = vmatmul.mubr.msk.bf16.gmra.mrb[124].mxu0 %vm463_vm0, %v5575_v22  ;;  %v1327_v54 = vpop.f32.mrb[25].mxu1  ;;  %1953 = vst.msk [vmem:[#allocation2 + $0x30] sm:$0xff] %vm310_vm7, %v1921_v60  ;;  %v1823_v44 = vpop.f32.mrb[27].mxu0 }
 0x12c   : > { %4647 = vmatprep.mubr.msk.bf16.mxu1 %vm463_vm0, %v5586_v25  ;;  %4681 = vmatprep.mubr.msk.bf16.mxu0 %vm463_vm0, %v5608_v16  ;;  %v1430_v3 = vadd.f32 %v1327_v54, %v1132_v24  ;;  %v4438_v36 = vpop.f32.mrb[26].mxu1  ;;  %v1621_v25 = vld [vmem:[#allocation2 + $0x20] sm:$0xff]  ;;  %v3110_v48 = vor.u32 %v3109_v2, %v3106_v9 }
 0x12d   : > { %v1433_v14 = vadd.f32 %v4438_v36, %v1135_v1  ;;  %v1330_v22 = vpop.f32.mrb[27].mxu1  ;;  %v1919_v63 = vadd.f32 %v1804_v58, %v1621_v25  ;;  %v1624_v61 = vld [vmem:[#allocation2 + $0x38] sm:$0xff]  ;;  %v1142_v36 = vld [vmem:[#allocation2 + $0x90] sm:$0xff] }
 0x12e   : > { %1462 = vst.msk [vmem:[#allocation2 + $0x40] sm:$0xff] %vm310_vm7, %v1430_v3  ;;  %v1431_v39 = vadd.f32 %v1330_v22, %v1133_v20  ;;  %v1922_v16 = vadd.f32 %v4468_v5, %v1624_v61  ;;  %v1622_v57 = vld [vmem:[#allocation2 + $0x28] sm:$0xff]  ;;  %v3111_v20 = vrot.slane %v3110_v48, 4 }
 0x12f   : > { %1465 = vst.msk [vmem:[#allocation2 + $0x58] sm:$0xff] %vm310_vm7, %v1433_v14  ;;  %1951 = vst.msk [vmem:[#allocation2 + $0x20] sm:$0xff] %vm310_vm7, %v1919_v63  ;;  %v1920_v21 = vadd.f32 %v1807_v33, %v1622_v57  ;;  %v4441_v11 = vpop.f32.mrb[28].mxu1  ;;  %v1627_v26 = vld [vmem:[#allocation2 + $0x50] sm:$0xff]  ;;  %v1137_v5 = vld [vmem:[#allocation2 + $0x68] sm:$0xff] }
 0x130   : > { %1463 = vst.msk [vmem:[#allocation2 + $0x48] sm:$0xff] %vm310_vm7, %v1431_v39  ;;  %1954 = vst.msk [vmem:[#allocation2 + $0x38] sm:$0xff] %vm310_vm7, %v1922_v16  ;;  %v1343_v30 = vpop.f32.mrb[29].mxu1  ;;  %v6037_v33 = vld [vmem:[%s4966_s13 + $0xd4] sm:$0x1] }
 0x131   : > { %1952 = vst.msk [vmem:[#allocation2 + $0x28] sm:$0xff] %vm310_vm7, %v1920_v21  ;;  %v1434_v15 = vadd.f32 %v1343_v30, %v1136_v0  ;;  %v4442_v59 = vpop.f32.mrb[30].mxu1  ;;  %v3123_v1 = vshll.u32 %v6037_v33, 16 }
 0x132   : > { %v4475_v58 = vpop.f32.mrb[28].mxu0  ;;  %v1437_v37 = vadd.f32 %v4442_v59, %v1139_v29  ;;  %v1346_v8 = vpop.f32.mrb[31].mxu1 }
 0x133   : > { %4648 = vmatmul.mubr.msk.bf16.gmra.mrb[128].mxu1 %vm463_vm0, %v5615_v47  ;;  %4682 = vmatmul.mubr.msk.bf16.gmra.mrb[128].mxu0 %vm463_vm0, %v5633_v17  ;;  %v1138_v47 = vld [vmem:[#allocation2 + $0x70] sm:$0xff]  ;;  %v3119_v17 = vrot.slane %v3117_v41, 4  ;;  %v1836_v51 = vpop.f32.mrb[29].mxu0  ;;  %1466 = vst.msk [vmem:[#allocation2 + $0x60] sm:$0xff] %vm310_vm7, %v1434_v15  ;;  %v1435_v12 = vadd.f32 %v1346_v8, %v1137_v5  ;;  %v3405_v41 = vrot.slane %v6037_v33, 5 }
 0x134   : > { %4651 = vmatprep.mubr.msk.bf16.mxu1 %vm463_vm0, %v5641_v18  ;;  %4685 = vmatprep.mubr.msk.bf16.mxu0 %vm463_vm0, %v5663_v42  ;;  %v1436_v27 = vadd.f32 %v4441_v11, %v1138_v47  ;;  %v1925_v18 = vadd.f32 %v4471_v38, %v1627_v26  ;;  %v4476_v50 = vpop.f32.mrb[30].mxu0  ;;  %1469 = vst.msk [vmem:[#allocation2 + $0x78] sm:$0xff] %vm310_vm7, %v1437_v37 }
 0x135   : > { %v1625_v45 = vld [vmem:[#allocation2 + $0x40] sm:$0xff]  ;;  %v1839_v54 = vpop.f32.mrb[31].mxu0  ;;  %1467 = vst.msk [vmem:[#allocation2 + $0x68] sm:$0xff] %vm310_vm7, %v1435_v12  ;;  %v3120_v3 = vor.u32 %v3119_v17, %v6033_v4 }
 0x136   : > { %1468 = vst.msk [vmem:[#allocation2 + $0x70] sm:$0xff] %vm310_vm7, %v1436_v27  ;;  %v1923_v46 = vadd.f32 %v1820_v40, %v1625_v45  ;;  %v1628_v42 = vld [vmem:[#allocation2 + $0x58] sm:$0xff]  ;;  %1957 = vst.msk [vmem:[#allocation2 + $0x50] sm:$0xff] %vm310_vm7, %v1925_v18  ;;  %v3125_v40 = vrot.slane %v3123_v1, 5  ;;  %v1146_v18 = vld [vmem:[#allocation2 + $0xb0] sm:$0xff] }
 0x137   : > { %v1926_v7 = vadd.f32 %v4472_v53, %v1628_v42  ;;  %v1626_v32 = vld [vmem:[#allocation2 + $0x48] sm:$0xff]  ;;  %v3121_v22 = vrot.slane %v3120_v3, 4  ;;  %v1143_v53 = vld [vmem:[#allocation2 + $0x98] sm:$0xff]  ;;  %v1150_v3 = vld [vmem:[#allocation2 + $0xd0] sm:$0xff] }
 0x138   : > { %1955 = vst.msk [vmem:[#allocation2 + $0x40] sm:$0xff] %vm310_vm7, %v1923_v46  ;;  %v1924_v24 = vadd.f32 %v1823_v44, %v1626_v32  ;;  %v1141_v44 = vld [vmem:[#allocation2 + $0x88] sm:$0xff]  ;;  %v1147_v42 = vld [vmem:[#allocation2 + $0xb8] sm:$0xff] }
 0x139   : > { %1958 = vst.msk [vmem:[#allocation2 + $0x58] sm:$0xff] %vm310_vm7, %v1926_v7  ;;  %v3126_v27 = vsel %vm5168_vm5, %v3121_v22, %v3125_v40  ;;  %v1151_v22 = vld [vmem:[#allocation2 + $0xd8] sm:$0xff] }
 0x13a   : > { %1956 = vst.msk [vmem:[#allocation2 + $0x48] sm:$0xff] %vm310_vm7, %v1924_v24  ;;  %v1629_v61 = vld [vmem:[#allocation2 + $0x60] sm:$0xff] }
 0x13b   : > { %4652 = vmatmul.mubr.msk.bf16.gmra.mrb[132].mxu1 %vm463_vm0, %v5666_v23  ;;  %4686 = vmatmul.mubr.msk.bf16.gmra.mrb[132].mxu0 %vm463_vm0, %v5690_v34  ;;  %v3402_v23 = vrot.slane %v5934_v28, 5  ;;  %v4445_v38 = vpop.f32.mrb[32].mxu1  ;;  %v4209_v34 = vrot.slane %v5929_v55, 9  ;;  %v1632_v28 = vld [vmem:[#allocation2 + $0x78] sm:$0xff] }
 0x13c   : > { %4655 = vmatprep.mubr.msk.bf16.mxu1 %vm463_vm0, %v5693_v56  ;;  %4689 = vmatprep.mubr.msk.bf16.mxu0 %vm463_vm0, %v5707_v31  ;;  %v1440_v25 = vadd.f32 %v4445_v38, %v1142_v36  ;;  %v1140_v56 = vld [vmem:[#allocation2 + $0x80] sm:$0xff]  ;;  %v1359_v14 = vpop.f32.mrb[33].mxu1  ;;  %v1927_v31 = vadd.f32 %v1836_v51, %v1629_v61  ;;  %v1930_v52 = vadd.f32 %v4476_v50, %v1632_v28  ;;  %v1630_v55 = vld [vmem:[#allocation2 + $0x68] sm:$0xff] }
 0x13d   : > { %v1631_v60 = vld [vmem:[#allocation2 + $0x70] sm:$0xff]  ;;  %v1438_v39 = vadd.f32 %v1359_v14, %v1140_v56  ;;  %v4446_v16 = vpop.f32.mrb[34].mxu1  ;;  %v3404_v21 = vrot.slane %v3402_v23, 4  ;;  %v1928_v26 = vadd.f32 %v1839_v54, %v1630_v55  ;;  %v1145_v51 = vld [vmem:[#allocation2 + $0xa8] sm:$0xff] }
 0x13e   : > { %v1929_v63 = vadd.f32 %v4475_v58, %v1631_v60  ;;  %1472 = vst.msk [vmem:[#allocation2 + $0x90] sm:$0xff] %vm310_vm7, %v1440_v25  ;;  %v1441_v57 = vadd.f32 %v4446_v16, %v1143_v53  ;;  %v1362_v13 = vpop.f32.mrb[35].mxu1  ;;  %v4479_v6 = vpop.f32.mrb[32].mxu0  ;;  %1959 = vst.msk [vmem:[#allocation2 + $0x60] sm:$0xff] %vm310_vm7, %v1927_v31  ;;  %v1144_v58 = vld [vmem:[#allocation2 + $0xa0] sm:$0xff]  ;;  %v1149_v53 = vld [vmem:[#allocation2 + $0xc8] sm:$0xff] }
 0x13f   : > { %1470 = vst.msk [vmem:[#allocation2 + $0x80] sm:$0xff] %vm310_vm7, %v1438_v39  ;;  %v1439_v47 = vadd.f32 %v1362_v13, %v1141_v44  ;;  %v1852_v11 = vpop.f32.mrb[33].mxu0  ;;  %1962 = vst.msk [vmem:[#allocation2 + $0x78] sm:$0xff] %vm310_vm7, %v1930_v52  ;;  %v3406_v62 = vsel %vm5193_vm6, %v3404_v21, %v3405_v41  ;;  %v1148_v60 = vld [vmem:[#allocation2 + $0xc0] sm:$0xff]  ;;  %v1154_v41 = vld [vmem:[#allocation2 + $0xf0] sm:$0xff] }
 0x140   : > { %1961 = vst.msk [vmem:[#allocation2 + $0x70] sm:$0xff] %vm310_vm7, %v1929_v63  ;;  %1473 = vst.msk [vmem:[#allocation2 + $0x98] sm:$0xff] %vm310_vm7, %v1441_v57  ;;  %v4480_v0 = vpop.f32.mrb[34].mxu0 }
 0x141   : > { %1471 = vst.msk [vmem:[#allocation2 + $0x88] sm:$0xff] %vm310_vm7, %v1439_v47  ;;  %v1855_v30 = vpop.f32.mrb[35].mxu0  ;;  %1960 = vst.msk [vmem:[#allocation2 + $0x68] sm:$0xff] %vm310_vm7, %v1928_v26  ;;  %v1152_v26 = vld [vmem:[#allocation2 + $0xe0] sm:$0xff] }
 0x143   : > { %4656 = vmatmul.mubr.msk.bf16.gmra.mrb[136].mxu1 %vm463_vm0, %v5713_v49  ;;  %v3116_v49 = vsel %vm5168_vm5, %v3111_v20, %v6033_v4  ;;  %4690 = vmatmul.mubr.msk.bf16.gmra.mrb[136].mxu0 %vm463_vm0, %v5719_v19 }
 0x144   : > { %4659 = vmatprep.mubr.msk.bf16.mxu1 %vm463_vm0, %v5856_v10  ;;  %4693 = vmatprep.mubr.msk.bf16.mxu0 %vm463_vm0, %v5777_v43  ;;  %v3403_v10 = vsel %vm5193_vm6, %v4209_v34, %v3402_v23  ;;  %v4191_v9 = vcombine.low %v3116_v49, %v3126_v27 }
 0x145   : > { %v1635_v2 = vld [vmem:[#allocation2 + $0x90] sm:$0xff]  ;;  %v4212_v15 = vcombine.low %v3403_v10, %v3406_v62  ;;  %v1155_v62 = vld [vmem:[#allocation2 + $0xf8] sm:$0xff] }
 0x146   : > { %v4449_v45 = vpop.f32.mrb[36].mxu1  ;;  %v1933_v29 = vadd.f32 %v4479_v6, %v1635_v2  ;;  %v1633_v19 = vld [vmem:[#allocation2 + $0x80] sm:$0xff] }
 0x147   : > { %v1444_v59 = vadd.f32 %v4449_v45, %v1146_v18  ;;  %v1375_v4 = vpop.f32.mrb[37].mxu1  ;;  %v1931_v17 = vadd.f32 %v1852_v11, %v1633_v19  ;;  %v1636_v46 = vld [vmem:[#allocation2 + $0x98] sm:$0xff] }
 0x148   : > { %v1442_v43 = vadd.f32 %v1375_v4, %v1144_v58  ;;  %v4450_v37 = vpop.f32.mrb[38].mxu1  ;;  %1965 = vst.msk [vmem:[#allocation2 + $0x90] sm:$0xff] %vm310_vm7, %v1933_v29  ;;  %v1934_v35 = vadd.f32 %v4480_v0, %v1636_v46  ;;  %v1634_v8 = vld [vmem:[#allocation2 + $0x88] sm:$0xff] }
 0x149   : > { %1476 = vst.msk [vmem:[#allocation2 + $0xb0] sm:$0xff] %vm310_vm7, %v1444_v59  ;;  %v1445_v5 = vadd.f32 %v4450_v37, %v1147_v42  ;;  %v1378_v33 = vpop.f32.mrb[39].mxu1  ;;  %1963 = vst.msk [vmem:[#allocation2 + $0x80] sm:$0xff] %vm310_vm7, %v1931_v17  ;;  %v1932_v32 = vadd.f32 %v1855_v30, %v1634_v8  ;;  %v1153_v29 = vld [vmem:[#allocation2 + $0xe8] sm:$0xff]  ;;  %v1981_v17 = vld [vmem:[#allocation2 + $0x10] sm:$0xff] }
 0x14a   : > { %v4483_v7 = vpop.f32.mrb[36].mxu0  ;;  %1474 = vst.msk [vmem:[#allocation2 + $0xa0] sm:$0xff] %vm310_vm7, %v1442_v43  ;;  %v1443_v12 = vadd.f32 %v1378_v33, %v1145_v51  ;;  %1966 = vst.msk [vmem:[#allocation2 + $0x98] sm:$0xff] %vm310_vm7, %v1934_v35  ;;  %v1979_v42 = vld [vmem:[#allocation2] sm:$0xff]  ;;  %v1982_v8 = vld [vmem:[#allocation2 + $0x18] sm:$0xff] }
 0x14b   : > { %4660 = vmatmul.mubr.msk.bf16.gmra.mrb[140].mxu1 %vm463_vm0, %v4191_v9  ;;  %4694 = vmatmul.mubr.msk.bf16.gmra.mrb[140].mxu0 %vm463_vm0, %v4212_v15  ;;  %v1868_v50 = vpop.f32.mrb[37].mxu0  ;;  %1477 = vst.msk [vmem:[#allocation2 + $0xb8] sm:$0xff] %vm310_vm7, %v1445_v5  ;;  %1964 = vst.msk [vmem:[#allocation2 + $0x88] sm:$0xff] %vm310_vm7, %v1932_v32 }
 0x14c   : > { %v4484_v24 = vpop.f32.mrb[38].mxu0  ;;  %1475 = vst.msk [vmem:[#allocation2 + $0xa8] sm:$0xff] %vm310_vm7, %v1443_v12 }
 0x14d   : > { %v1871_v54 = vpop.f32.mrb[39].mxu0 }
 0x150   : > { %v1639_v48 = vld [vmem:[#allocation2 + $0xb0] sm:$0xff] }
 0x151   : > { %v1937_v23 = vadd.f32 %v4483_v7, %v1639_v48  ;;  %v1637_v38 = vld [vmem:[#allocation2 + $0xa0] sm:$0xff] }
 0x152   : > { %v4453_v1 = vpop.f32.mrb[40].mxu1  ;;  %v1935_v56 = vadd.f32 %v1868_v50, %v1637_v38  ;;  %v1640_v20 = vld [vmem:[#allocation2 + $0xb8] sm:$0xff]  ;;  %v1980_v50 = vld [vmem:[#allocation2 + $0x8] sm:$0xff] }
 0x153   : > { %v1448_v36 = vadd.f32 %v4453_v1, %v1150_v3  ;;  %v1391_v25 = vpop.f32.mrb[41].mxu1  ;;  %1969 = vst.msk [vmem:[#allocation2 + $0xb0] sm:$0xff] %vm310_vm7, %v1937_v23  ;;  %v1938_v63 = vadd.f32 %v4484_v24, %v1640_v20  ;;  %v1638_v39 = vld [vmem:[#allocation2 + $0xa8] sm:$0xff] }
 0x154   : > { %v1446_v14 = vadd.f32 %v1391_v25, %v1148_v60  ;;  %v4454_v40 = vpop.f32.mrb[42].mxu1  ;;  %1967 = vst.msk [vmem:[#allocation2 + $0xa0] sm:$0xff] %vm310_vm7, %v1935_v56  ;;  %v1936_v34 = vadd.f32 %v1871_v54, %v1638_v39  ;;  %v1985_v56 = vld [vmem:[#allocation2 + $0x30] sm:$0xff]  ;;  %v1986_v39 = vld [vmem:[#allocation2 + $0x38] sm:$0xff] }
 0x155   : > { %1480 = vst.msk [vmem:[#allocation2 + $0xd0] sm:$0xff] %vm310_vm7, %v1448_v36  ;;  %v1449_v61 = vadd.f32 %v4454_v40, %v1151_v22  ;;  %v1394_v16 = vpop.f32.mrb[43].mxu1  ;;  %1970 = vst.msk [vmem:[#allocation2 + $0xb8] sm:$0xff] %vm310_vm7, %v1938_v63  ;;  %v1983_v22 = vld [vmem:[#allocation2 + $0x20] sm:$0xff] }
 0x156   : > { %1478 = vst.msk [vmem:[#allocation2 + $0xc0] sm:$0xff] %vm310_vm7, %v1446_v14  ;;  %v1447_v31 = vadd.f32 %v1394_v16, %v1149_v53  ;;  %v4487_v28 = vpop.f32.mrb[40].mxu0  ;;  %1968 = vst.msk [vmem:[#allocation2 + $0xa8] sm:$0xff] %vm310_vm7, %v1936_v34 }
 0x157   : > { %1481 = vst.msk [vmem:[#allocation2 + $0xd8] sm:$0xff] %vm310_vm7, %v1449_v61  ;;  %v1884_v57 = vpop.f32.mrb[41].mxu0 }
 0x158   : > { %1479 = vst.msk [vmem:[#allocation2 + $0xc8] sm:$0xff] %vm310_vm7, %v1447_v31  ;;  %v4488_v44 = vpop.f32.mrb[42].mxu0 }
 0x159   : > { %v1887_v13 = vpop.f32.mrb[43].mxu0 }
 0x15c   : > { %v1643_v6 = vld [vmem:[#allocation2 + $0xd0] sm:$0xff] }
 0x15d   : > { %v1941_v21 = vadd.f32 %v4487_v28, %v1643_v6  ;;  %v1641_v55 = vld [vmem:[#allocation2 + $0xc0] sm:$0xff] }
 0x15e   : > { %v4457_v52 = vpop.f32.mrb[44].mxu1  ;;  %v1939_v11 = vadd.f32 %v1884_v57, %v1641_v55  ;;  %v1644_v27 = vld [vmem:[#allocation2 + $0xd8] sm:$0xff]  ;;  %v4491_v0 = vpop.f32.mrb[44].mxu0  ;;  %v1984_v57 = vld [vmem:[#allocation2 + $0x28] sm:$0xff] }
 0x15f   : > { %v1452_v47 = vadd.f32 %v4457_v52, %v1154_v41  ;;  %v1407_v49 = vpop.f32.mrb[45].mxu1  ;;  %1973 = vst.msk [vmem:[#allocation2 + $0xd0] sm:$0xff] %vm310_vm7, %v1941_v21  ;;  %v1942_v10 = vadd.f32 %v4488_v44, %v1644_v27  ;;  %v1642_v2 = vld [vmem:[#allocation2 + $0xc8] sm:$0xff]  ;;  %v1900_v18 = vpop.f32.mrb[45].mxu0 }
 0x160   : > { %v1450_v30 = vadd.f32 %v1407_v49, %v1152_v26  ;;  %v4458_v9 = vpop.f32.mrb[46].mxu1  ;;  %1971 = vst.msk [vmem:[#allocation2 + $0xc0] sm:$0xff] %vm310_vm7, %v1939_v11  ;;  %v1940_v15 = vadd.f32 %v1887_v13, %v1642_v2  ;;  %v4492_v19 = vpop.f32.mrb[46].mxu0  ;;  %v1989_v49 = vld [vmem:[#allocation2 + $0x50] sm:$0xff]  ;;  %v1990_v2 = vld [vmem:[#allocation2 + $0x58] sm:$0xff] }
 0x161   : > { %1484 = vst.msk [vmem:[#allocation2 + $0xf0] sm:$0xff] %vm310_vm7, %v1452_v47  ;;  %v1453_v45 = vadd.f32 %v4458_v9, %v1155_v62  ;;  %v1410_v59 = vpop.f32.mrb[47].mxu1  ;;  %1974 = vst.msk [vmem:[#allocation2 + $0xd8] sm:$0xff] %vm310_vm7, %v1942_v10  ;;  %v1903_v4 = vpop.f32.mrb[47].mxu0 }
 0x162   : > { %1482 = vst.msk [vmem:[#allocation2 + $0xe0] sm:$0xff] %vm310_vm7, %v1450_v30  ;;  %v1451_v58 = vadd.f32 %v1410_v59, %v1153_v29  ;;  %1972 = vst.msk [vmem:[#allocation2 + $0xc8] sm:$0xff] %vm310_vm7, %v1940_v15  ;;  %v1987_v30 = vld [vmem:[#allocation2 + $0x40] sm:$0xff] }
 0x163   : > { %1485 = vst.msk [vmem:[#allocation2 + $0xf8] sm:$0xff] %vm310_vm7, %v1453_v45 }
 0x164   : > { %1483 = vst.msk [vmem:[#allocation2 + $0xe8] sm:$0xff] %vm310_vm7, %v1451_v58 }
 0x166   : > { %v4497_v43 = vpop.f32.mrb[48].mxu1  ;;  %v4531_v33 = vpop.f32.mrb[48].mxu0 }
 0x167   : > { %v2191_v46 = vadd.f32 %v4497_v43, %v1981_v17  ;;  %v2062_v37 = vpop.f32.mrb[49].mxu1  ;;  %v2358_v54 = vpop.f32.mrb[49].mxu0 }
 0x168   : > { %v1647_v35 = vld [vmem:[#allocation2 + $0xf0] sm:$0xff]  ;;  %v2189_v5 = vadd.f32 %v2062_v37, %v1979_v42  ;;  %v4498_v51 = vpop.f32.mrb[50].mxu1  ;;  %v4532_v23 = vpop.f32.mrb[50].mxu0 }
 0x169   : > { %v1945_v7 = vadd.f32 %v4491_v0, %v1647_v35  ;;  %v1645_v32 = vld [vmem:[#allocation2 + $0xe0] sm:$0xff]  ;;  %2223 = vst.msk [vmem:[#allocation2 + $0x10] sm:$0xff] %vm310_vm7, %v2191_v46  ;;  %v2192_v12 = vadd.f32 %v4498_v51, %v1982_v8  ;;  %v2065_v24 = vpop.f32.mrb[51].mxu1  ;;  %v2361_v60 = vpop.f32.mrb[51].mxu0  ;;  %v1993_v51 = vld [vmem:[#allocation2 + $0x70] sm:$0xff] }
 0x16a   : > { %v1943_v48 = vadd.f32 %v1900_v18, %v1645_v32  ;;  %v1648_v3 = vld [vmem:[#allocation2 + $0xf8] sm:$0xff]  ;;  %2221 = vst.msk [vmem:[#allocation2] sm:$0xff] %vm310_vm7, %v2189_v5  ;;  %v2190_v1 = vadd.f32 %v2065_v24, %v1980_v50  ;;  %v1991_v32 = vld [vmem:[#allocation2 + $0x60] sm:$0xff] }
 0x16b   : > { %1977 = vst.msk [vmem:[#allocation2 + $0xf0] sm:$0xff] %vm310_vm7, %v1945_v7  ;;  %v1946_v36 = vadd.f32 %v4492_v19, %v1648_v3  ;;  %v1646_v38 = vld [vmem:[#allocation2 + $0xe8] sm:$0xff]  ;;  %2224 = vst.msk [vmem:[#allocation2 + $0x18] sm:$0xff] %vm310_vm7, %v2192_v12 }
 0x16c   : > { %1975 = vst.msk [vmem:[#allocation2 + $0xe0] sm:$0xff] %vm310_vm7, %v1943_v48  ;;  %v1944_v25 = vadd.f32 %v1903_v4, %v1646_v38  ;;  %2222 = vst.msk [vmem:[#allocation2 + $0x8] sm:$0xff] %vm310_vm7, %v2190_v1  ;;  %v1988_v19 = vld [vmem:[#allocation2 + $0x48] sm:$0xff] }
 0x16d   : > { %1978 = vst.msk [vmem:[#allocation2 + $0xf8] sm:$0xff] %vm310_vm7, %v1946_v36  ;;  %v1992_v38 = vld [vmem:[#allocation2 + $0x68] sm:$0xff] }
 0x16e   : > { %1976 = vst.msk [vmem:[#allocation2 + $0xe8] sm:$0xff] %vm310_vm7, %v1944_v25  ;;  %v4501_v14 = vpop.f32.mrb[52].mxu1  ;;  %v4535_v16 = vpop.f32.mrb[52].mxu0 }
 0x16f   : > { %v2195_v20 = vadd.f32 %v4501_v14, %v1985_v56  ;;  %v2078_v40 = vpop.f32.mrb[53].mxu1  ;;  %v2374_v13 = vpop.f32.mrb[53].mxu0 }
 0x170   : > { %v2279_v63 = vld [vmem:[#allocation2 + $0x10] sm:$0xff]  ;;  %v2193_v61 = vadd.f32 %v2078_v40, %v1983_v22  ;;  %v4502_v53 = vpop.f32.mrb[54].mxu1  ;;  %v4536_v52 = vpop.f32.mrb[54].mxu0 }
 0x171   : > { %v2487_v34 = vadd.f32 %v4531_v33, %v2279_v63  ;;  %2227 = vst.msk [vmem:[#allocation2 + $0x30] sm:$0xff] %vm310_vm7, %v2195_v20  ;;  %v2277_v31 = vld [vmem:[#allocation2] sm:$0xff]  ;;  %v2196_v28 = vadd.f32 %v4502_v53, %v1986_v39  ;;  %v2081_v44 = vpop.f32.mrb[55].mxu1  ;;  %v2377_v11 = vpop.f32.mrb[55].mxu0  ;;  %v1997_v53 = vld [vmem:[#allocation2 + $0x90] sm:$0xff] }
 0x172   : > { %v2485_v6 = vadd.f32 %v2358_v54, %v2277_v31  ;;  %2225 = vst.msk [vmem:[#allocation2 + $0x20] sm:$0xff] %vm310_vm7, %v2193_v61  ;;  %v2280_v21 = vld [vmem:[#allocation2 + $0x18] sm:$0xff]  ;;  %v2194_v41 = vadd.f32 %v2081_v44, %v1984_v57  ;;  %v1995_v31 = vld [vmem:[#allocation2 + $0x80] sm:$0xff] }
 0x173   : > { %2519 = vst.msk [vmem:[#allocation2 + $0x10] sm:$0xff] %vm310_vm7, %v2487_v34  ;;  %v2488_v55 = vadd.f32 %v4532_v23, %v2280_v21  ;;  %2228 = vst.msk [vmem:[#allocation2 + $0x38] sm:$0xff] %vm310_vm7, %v2196_v28  ;;  %v2278_v47 = vld [vmem:[#allocation2 + $0x8] sm:$0xff]  ;;  %v1994_v54 = vld [vmem:[#allocation2 + $0x78] sm:$0xff] }
 0x174   : > { %2517 = vst.msk [vmem:[#allocation2] sm:$0xff] %vm310_vm7, %v2485_v6  ;;  %v2486_v26 = vadd.f32 %v2361_v60, %v2278_v47  ;;  %2226 = vst.msk [vmem:[#allocation2 + $0x28] sm:$0xff] %vm310_vm7, %v2194_v41  ;;  %v1996_v47 = vld [vmem:[#allocation2 + $0x88] sm:$0xff] }
 0x175   : > { %2520 = vst.msk [vmem:[#allocation2 + $0x18] sm:$0xff] %vm310_vm7, %v2488_v55 }
 0x176   : > { %2518 = vst.msk [vmem:[#allocation2 + $0x8] sm:$0xff] %vm310_vm7, %v2486_v26  ;;  %v4505_v27 = vpop.f32.mrb[56].mxu1  ;;  %v4539_v45 = vpop.f32.mrb[56].mxu0 }
 0x177   : > { %v2199_v0 = vadd.f32 %v4505_v27, %v1989_v49  ;;  %v2094_v10 = vpop.f32.mrb[57].mxu1  ;;  %v2390_v4 = vpop.f32.mrb[57].mxu0 }
 0x178   : > { %v2283_v62 = vld [vmem:[#allocation2 + $0x30] sm:$0xff]  ;;  %v2197_v9 = vadd.f32 %v2094_v10, %v1987_v30  ;;  %v4506_v18 = vpop.f32.mrb[58].mxu1  ;;  %v4540_v42 = vpop.f32.mrb[58].mxu0 }
 0x179   : > { %v2491_v15 = vadd.f32 %v4535_v16, %v2283_v62  ;;  %2231 = vst.msk [vmem:[#allocation2 + $0x50] sm:$0xff] %vm310_vm7, %v2199_v0  ;;  %v2281_v29 = vld [vmem:[#allocation2 + $0x20] sm:$0xff]  ;;  %v2200_v59 = vadd.f32 %v4506_v18, %v1990_v2  ;;  %v2097_v58 = vpop.f32.mrb[59].mxu1  ;;  %v2393_v5 = vpop.f32.mrb[59].mxu0  ;;  %v2001_v18 = vld [vmem:[#allocation2 + $0xb0] sm:$0xff] }
 0x17a   : > { %v2489_v17 = vadd.f32 %v2374_v13, %v2281_v29  ;;  %2229 = vst.msk [vmem:[#allocation2 + $0x40] sm:$0xff] %vm310_vm7, %v2197_v9  ;;  %v2284_v43 = vld [vmem:[#allocation2 + $0x38] sm:$0xff]  ;;  %v2198_v46 = vadd.f32 %v2097_v58, %v1988_v19  ;;  %v1999_v29 = vld [vmem:[#allocation2 + $0xa0] sm:$0xff] }
 0x17b   : > { %2523 = vst.msk [vmem:[#allocation2 + $0x30] sm:$0xff] %vm310_vm7, %v2491_v15  ;;  %v2492_v37 = vadd.f32 %v4536_v52, %v2284_v43  ;;  %2232 = vst.msk [vmem:[#allocation2 + $0x58] sm:$0xff] %vm310_vm7, %v2200_v59  ;;  %v2282_v35 = vld [vmem:[#allocation2 + $0x28] sm:$0xff]  ;;  %v1998_v13 = vld [vmem:[#allocation2 + $0x98] sm:$0xff] }
 0x17c   : > { %2521 = vst.msk [vmem:[#allocation2 + $0x20] sm:$0xff] %vm310_vm7, %v2489_v17  ;;  %v2490_v8 = vadd.f32 %v2377_v11, %v2282_v35  ;;  %2230 = vst.msk [vmem:[#allocation2 + $0x48] sm:$0xff] %vm310_vm7, %v2198_v46  ;;  %v2000_v35 = vld [vmem:[#allocation2 + $0xa8] sm:$0xff] }
 0x17d   : > { %2524 = vst.msk [vmem:[#allocation2 + $0x38] sm:$0xff] %vm310_vm7, %v2492_v37 }
 0x17e   : > { %2522 = vst.msk [vmem:[#allocation2 + $0x28] sm:$0xff] %vm310_vm7, %v2490_v8  ;;  %v4509_v33 = vpop.f32.mrb[60].mxu1  ;;  %v4543_v3 = vpop.f32.mrb[60].mxu0 }
 0x17f   : > { %v2203_v7 = vadd.f32 %v4509_v33, %v1993_v51  ;;  %v2110_v12 = vpop.f32.mrb[61].mxu1  ;;  %v2406_v25 = vpop.f32.mrb[61].mxu0 }
 0x180   : > { %v2287_v50 = vld [vmem:[#allocation2 + $0x50] sm:$0xff]  ;;  %v2201_v24 = vadd.f32 %v2110_v12, %v1991_v32  ;;  %v4510_v48 = vpop.f32.mrb[62].mxu1  ;;  %v4544_v22 = vpop.f32.mrb[62].mxu0 }
 0x181   : > { %v2495_v1 = vadd.f32 %v4539_v45, %v2287_v50  ;;  %2235 = vst.msk [vmem:[#allocation2 + $0x70] sm:$0xff] %vm310_vm7, %v2203_v7  ;;  %v2285_v23 = vld [vmem:[#allocation2 + $0x40] sm:$0xff]  ;;  %v2204_v36 = vadd.f32 %v4510_v48, %v1994_v54  ;;  %v2113_v60 = vpop.f32.mrb[63].mxu1  ;;  %v2409_v61 = vpop.f32.mrb[63].mxu0  ;;  %v2005_v48 = vld [vmem:[#allocation2 + $0xd0] sm:$0xff] }
 0x182   : > { %v2493_v56 = vadd.f32 %v2390_v4, %v2285_v23  ;;  %2233 = vst.msk [vmem:[#allocation2 + $0x60] sm:$0xff] %vm310_vm7, %v2201_v24  ;;  %v2288_v14 = vld [vmem:[#allocation2 + $0x58] sm:$0xff]  ;;  %v2202_v20 = vadd.f32 %v2113_v60, %v1992_v38  ;;  %v2003_v23 = vld [vmem:[#allocation2 + $0xc0] sm:$0xff] }
 0x183   : > { %2527 = vst.msk [vmem:[#allocation2 + $0x50] sm:$0xff] %vm310_vm7, %v2495_v1  ;;  %v2496_v40 = vadd.f32 %v4540_v42, %v2288_v14  ;;  %2236 = vst.msk [vmem:[#allocation2 + $0x78] sm:$0xff] %vm310_vm7, %v2204_v36  ;;  %v2286_v63 = vld [vmem:[#allocation2 + $0x48] sm:$0xff]  ;;  %v2002_v4 = vld [vmem:[#allocation2 + $0xb8] sm:$0xff] }
 0x184   : > { %2525 = vst.msk [vmem:[#allocation2 + $0x40] sm:$0xff] %vm310_vm7, %v2493_v56  ;;  %v2494_v39 = vadd.f32 %v2393_v5, %v2286_v63  ;;  %2234 = vst.msk [vmem:[#allocation2 + $0x68] sm:$0xff] %vm310_vm7, %v2202_v20  ;;  %v2004_v63 = vld [vmem:[#allocation2 + $0xc8] sm:$0xff] }
 0x185   : > { %2528 = vst.msk [vmem:[#allocation2 + $0x58] sm:$0xff] %vm310_vm7, %v2496_v40 }
 0x186   : > { %2526 = vst.msk [vmem:[#allocation2 + $0x48] sm:$0xff] %vm310_vm7, %v2494_v39  ;;  %v4513_v16 = vpop.f32.mrb[64].mxu1  ;;  %v4547_v21 = vpop.f32.mrb[64].mxu0 }
 0x187   : > { %v2207_v34 = vadd.f32 %v4513_v16, %v1997_v53  ;;  %v2126_v28 = vpop.f32.mrb[65].mxu1  ;;  %v2422_v26 = vpop.f32.mrb[65].mxu0 }
 0x188   : > { %v2291_v57 = vld [vmem:[#allocation2 + $0x70] sm:$0xff]  ;;  %v2205_v44 = vadd.f32 %v2126_v28, %v1995_v31  ;;  %v4514_v6 = vpop.f32.mrb[66].mxu1  ;;  %v4548_v30 = vpop.f32.mrb[66].mxu0 }
 0x189   : > { %v2499_v41 = vadd.f32 %v4543_v3, %v2291_v57  ;;  %2239 = vst.msk [vmem:[#allocation2 + $0x90] sm:$0xff] %vm310_vm7, %v2207_v34  ;;  %v2289_v52 = vld [vmem:[#allocation2 + $0x60] sm:$0xff]  ;;  %v2208_v55 = vadd.f32 %v4514_v6, %v1998_v13  ;;  %v2129_v11 = vpop.f32.mrb[67].mxu1  ;;  %v2425_v9 = vpop.f32.mrb[67].mxu0  ;;  %v2009_v6 = vld [vmem:[#allocation2 + $0xf0] sm:$0xff] }
 0x18a   : > { %v2497_v49 = vadd.f32 %v2406_v25, %v2289_v52  ;;  %2237 = vst.msk [vmem:[#allocation2 + $0x80] sm:$0xff] %vm310_vm7, %v2205_v44  ;;  %v2292_v27 = vld [vmem:[#allocation2 + $0x78] sm:$0xff]  ;;  %v2206_v0 = vadd.f32 %v2129_v11, %v1996_v47  ;;  %v2007_v52 = vld [vmem:[#allocation2 + $0xe0] sm:$0xff] }
 0x18b   : > { %2531 = vst.msk [vmem:[#allocation2 + $0x70] sm:$0xff] %vm310_vm7, %v2499_v41  ;;  %v2500_v10 = vadd.f32 %v4544_v22, %v2292_v27  ;;  %2240 = vst.msk [vmem:[#allocation2 + $0x98] sm:$0xff] %vm310_vm7, %v2208_v55  ;;  %v2290_v62 = vld [vmem:[#allocation2 + $0x68] sm:$0xff]  ;;  %v2006_v25 = vld [vmem:[#allocation2 + $0xd8] sm:$0xff] }
 0x18c   : > { %2529 = vst.msk [vmem:[#allocation2 + $0x60] sm:$0xff] %vm310_vm7, %v2497_v49  ;;  %v2498_v2 = vadd.f32 %v2409_v61, %v2290_v62  ;;  %2238 = vst.msk [vmem:[#allocation2 + $0x88] sm:$0xff] %vm310_vm7, %v2206_v0  ;;  %v2008_v62 = vld [vmem:[#allocation2 + $0xe8] sm:$0xff] }
 0x18d   : > { %2532 = vst.msk [vmem:[#allocation2 + $0x78] sm:$0xff] %vm310_vm7, %v2500_v10 }
 0x18e   : > { %2530 = vst.msk [vmem:[#allocation2 + $0x68] sm:$0xff] %vm310_vm7, %v2498_v2  ;;  %v4517_v45 = vpop.f32.mrb[68].mxu1  ;;  %v4551_v43 = vpop.f32.mrb[68].mxu0 }
 0x18f   : > { %v2211_v15 = vadd.f32 %v4517_v45, %v2001_v18  ;;  %v2142_v59 = vpop.f32.mrb[69].mxu1  ;;  %v2438_v8 = vpop.f32.mrb[69].mxu0 }
 0x190   : > { %v2295_v19 = vld [vmem:[#allocation2 + $0x90] sm:$0xff]  ;;  %v2209_v58 = vadd.f32 %v2142_v59, %v1999_v29  ;;  %v4518_v17 = vpop.f32.mrb[70].mxu1  ;;  %v4552_v32 = vpop.f32.mrb[70].mxu0 }
 0x191   : > { %v2503_v46 = vadd.f32 %v4547_v21, %v2295_v19  ;;  %2243 = vst.msk [vmem:[#allocation2 + $0xb0] sm:$0xff] %vm310_vm7, %v2211_v15  ;;  %v2293_v42 = vld [vmem:[#allocation2 + $0x80] sm:$0xff]  ;;  %v2212_v37 = vadd.f32 %v4518_v17, %v2002_v4  ;;  %v2145_v5 = vpop.f32.mrb[71].mxu1  ;;  %v2441_v24 = vpop.f32.mrb[71].mxu0  ;;  %v2559_v17 = vld [vmem:[#allocation2 + $0x10] sm:$0xff] }
 0x192   : > { %v2501_v51 = vadd.f32 %v2422_v26, %v2293_v42  ;;  %2241 = vst.msk [vmem:[#allocation2 + $0xa0] sm:$0xff] %vm310_vm7, %v2209_v58  ;;  %v2296_v33 = vld [vmem:[#allocation2 + $0x98] sm:$0xff]  ;;  %v2210_v7 = vadd.f32 %v2145_v5, %v2000_v35  ;;  %v2557_v42 = vld [vmem:[#allocation2] sm:$0xff] }
 0x193   : > { %2535 = vst.msk [vmem:[#allocation2 + $0x90] sm:$0xff] %vm310_vm7, %v2503_v46  ;;  %v2504_v12 = vadd.f32 %v4548_v30, %v2296_v33  ;;  %2244 = vst.msk [vmem:[#allocation2 + $0xb8] sm:$0xff] %vm310_vm7, %v2212_v37  ;;  %v2294_v50 = vld [vmem:[#allocation2 + $0x88] sm:$0xff]  ;;  %v2010_v26 = vld [vmem:[#allocation2 + $0xf8] sm:$0xff] }
 0x194   : > { %2533 = vst.msk [vmem:[#allocation2 + $0x80] sm:$0xff] %vm310_vm7, %v2501_v51  ;;  %v2502_v54 = vadd.f32 %v2425_v9, %v2294_v50  ;;  %2242 = vst.msk [vmem:[#allocation2 + $0xa8] sm:$0xff] %vm310_vm7, %v2210_v7  ;;  %v2558_v50 = vld [vmem:[#allocation2 + $0x8] sm:$0xff] }
 0x195   : > { %2536 = vst.msk [vmem:[#allocation2 + $0x98] sm:$0xff] %vm310_vm7, %v2504_v12 }
 0x196   : > { %2534 = vst.msk [vmem:[#allocation2 + $0x88] sm:$0xff] %vm310_vm7, %v2502_v54  ;;  %v4521_v3 = vpop.f32.mrb[72].mxu1  ;;  %v4555_v14 = vpop.f32.mrb[72].mxu0 }
 0x197   : > { %v2215_v1 = vadd.f32 %v4521_v3, %v2005_v48  ;;  %v2158_v36 = vpop.f32.mrb[73].mxu1  ;;  %v2454_v39 = vpop.f32.mrb[73].mxu0 }
 0x198   : > { %v2299_v38 = vld [vmem:[#allocation2 + $0xb0] sm:$0xff]  ;;  %v2213_v60 = vadd.f32 %v2158_v36, %v2003_v23  ;;  %v4522_v56 = vpop.f32.mrb[74].mxu1  ;;  %v4556_v31 = vpop.f32.mrb[74].mxu0 }
 0x199   : > { %v2507_v20 = vadd.f32 %v4551_v43, %v2299_v38  ;;  %2247 = vst.msk [vmem:[#allocation2 + $0xd0] sm:$0xff] %vm310_vm7, %v2215_v1  ;;  %v2297_v22 = vld [vmem:[#allocation2 + $0xa0] sm:$0xff]  ;;  %v2216_v40 = vadd.f32 %v4522_v56, %v2006_v25  ;;  %v2161_v61 = vpop.f32.mrb[75].mxu1  ;;  %v2457_v44 = vpop.f32.mrb[75].mxu0  ;;  %v2563_v56 = vld [vmem:[#allocation2 + $0x30] sm:$0xff] }
 0x19a   : > { %v2505_v53 = vadd.f32 %v2438_v8, %v2297_v22  ;;  %2245 = vst.msk [vmem:[#allocation2 + $0xc0] sm:$0xff] %vm310_vm7, %v2213_v60  ;;  %v2300_v16 = vld [vmem:[#allocation2 + $0xb8] sm:$0xff]  ;;  %v2214_v34 = vadd.f32 %v2161_v61, %v2004_v63  ;;  %v2561_v22 = vld [vmem:[#allocation2 + $0x20] sm:$0xff] }
 0x19b   : > { %2539 = vst.msk [vmem:[#allocation2 + $0xb0] sm:$0xff] %vm310_vm7, %v2507_v20  ;;  %v2508_v28 = vadd.f32 %v4552_v32, %v2300_v16  ;;  %2248 = vst.msk [vmem:[#allocation2 + $0xd8] sm:$0xff] %vm310_vm7, %v2216_v40  ;;  %v2298_v57 = vld [vmem:[#allocation2 + $0xa8] sm:$0xff]  ;;  %v2560_v8 = vld [vmem:[#allocation2 + $0x18] sm:$0xff] }
 0x19c   : > { %2537 = vst.msk [vmem:[#allocation2 + $0xa0] sm:$0xff] %vm310_vm7, %v2505_v53  ;;  %v2506_v13 = vadd.f32 %v2441_v24, %v2298_v57  ;;  %2246 = vst.msk [vmem:[#allocation2 + $0xc8] sm:$0xff] %vm310_vm7, %v2214_v34  ;;  %v2562_v57 = vld [vmem:[#allocation2 + $0x28] sm:$0xff] }
 0x19d   : > { %2540 = vst.msk [vmem:[#allocation2 + $0xb8] sm:$0xff] %vm310_vm7, %v2508_v28 }
 0x19e   : > { %2538 = vst.msk [vmem:[#allocation2 + $0xa8] sm:$0xff] %vm310_vm7, %v2506_v13  ;;  %v4525_v21 = vpop.f32.mrb[76].mxu1  ;;  %v4559_v27 = vpop.f32.mrb[76].mxu0 }
 0x19f   : > { %v2219_v41 = vadd.f32 %v4525_v21, %v2009_v6  ;;  %v2174_v55 = vpop.f32.mrb[77].mxu1  ;;  %v2470_v2 = vpop.f32.mrb[77].mxu0 }
 0x1a0   : > { %v2303_v47 = vld [vmem:[#allocation2 + $0xd0] sm:$0xff]  ;;  %v2217_v11 = vadd.f32 %v2174_v55, %v2007_v52  ;;  %v4526_v49 = vpop.f32.mrb[78].mxu1  ;;  %v4560_v29 = vpop.f32.mrb[78].mxu0 }
 0x1a1   : > { %v2511_v0 = vadd.f32 %v4555_v14, %v2303_v47  ;;  %2251 = vst.msk [vmem:[#allocation2 + $0xf0] sm:$0xff] %vm310_vm7, %v2219_v41  ;;  %v2301_v30 = vld [vmem:[#allocation2 + $0xc0] sm:$0xff]  ;;  %v2220_v10 = vadd.f32 %v4526_v49, %v2010_v26  ;;  %v2177_v9 = vpop.f32.mrb[79].mxu1  ;;  %v2473_v58 = vpop.f32.mrb[79].mxu0  ;;  %v2567_v49 = vld [vmem:[#allocation2 + $0x50] sm:$0xff] }
 0x1a2   : > { %v2509_v18 = vadd.f32 %v2454_v39, %v2301_v30  ;;  %2249 = vst.msk [vmem:[#allocation2 + $0xe0] sm:$0xff] %vm310_vm7, %v2217_v11  ;;  %v2304_v45 = vld [vmem:[#allocation2 + $0xd8] sm:$0xff]  ;;  %v2218_v15 = vadd.f32 %v2177_v9, %v2008_v62  ;;  %v2565_v30 = vld [vmem:[#allocation2 + $0x40] sm:$0xff] }
 0x1a3   : > { %2543 = vst.msk [vmem:[#allocation2 + $0xd0] sm:$0xff] %vm310_vm7, %v2511_v0  ;;  %v2512_v59 = vadd.f32 %v4556_v31, %v2304_v45  ;;  %2252 = vst.msk [vmem:[#allocation2 + $0xf8] sm:$0xff] %vm310_vm7, %v2220_v10  ;;  %v2302_v19 = vld [vmem:[#allocation2 + $0xc8] sm:$0xff]  ;;  %v2564_v39 = vld [vmem:[#allocation2 + $0x38] sm:$0xff] }
 0x1a4   : > { %2541 = vst.msk [vmem:[#allocation2 + $0xc0] sm:$0xff] %vm310_vm7, %v2509_v18  ;;  %v2510_v4 = vadd.f32 %v2457_v44, %v2302_v19  ;;  %2250 = vst.msk [vmem:[#allocation2 + $0xe8] sm:$0xff] %vm310_vm7, %v2218_v15  ;;  %v2566_v19 = vld [vmem:[#allocation2 + $0x48] sm:$0xff] }
 0x1a5   : > { %2544 = vst.msk [vmem:[#allocation2 + $0xd8] sm:$0xff] %vm310_vm7, %v2512_v59 }
 0x1a6   : > { %2542 = vst.msk [vmem:[#allocation2 + $0xc8] sm:$0xff] %vm310_vm7, %v2510_v4  ;;  %v4565_v43 = vpop.f32.mrb[80].mxu1  ;;  %v4599_v33 = vpop.f32.mrb[80].mxu0 }
 0x1a7   : > { %v2767_v46 = vadd.f32 %v4565_v43, %v2559_v17  ;;  %v2638_v37 = vpop.f32.mrb[81].mxu1  ;;  %v2912_v54 = vpop.f32.mrb[81].mxu0 }
 0x1a8   : > { %v2307_v35 = vld [vmem:[#allocation2 + $0xf0] sm:$0xff]  ;;  %v2765_v5 = vadd.f32 %v2638_v37, %v2557_v42  ;;  %v4566_v51 = vpop.f32.mrb[82].mxu1  ;;  %v4600_v23 = vpop.f32.mrb[82].mxu0 }
 0x1a9   : > { %v2515_v7 = vadd.f32 %v4559_v27, %v2307_v35  ;;  %v2305_v32 = vld [vmem:[#allocation2 + $0xe0] sm:$0xff]  ;;  %2799 = vst.msk [vmem:[#allocation2 + $0x10] sm:$0xff] %vm310_vm7, %v2767_v46  ;;  %v2768_v12 = vadd.f32 %v4566_v51, %v2560_v8  ;;  %v2641_v24 = vpop.f32.mrb[83].mxu1  ;;  %v2915_v60 = vpop.f32.mrb[83].mxu0  ;;  %v2571_v51 = vld [vmem:[#allocation2 + $0x70] sm:$0xff] }
 0x1aa   : > { %v2513_v48 = vadd.f32 %v2470_v2, %v2305_v32  ;;  %v2308_v3 = vld [vmem:[#allocation2 + $0xf8] sm:$0xff]  ;;  %2797 = vst.msk [vmem:[#allocation2] sm:$0xff] %vm310_vm7, %v2765_v5  ;;  %v2766_v1 = vadd.f32 %v2641_v24, %v2558_v50  ;;  %v2569_v32 = vld [vmem:[#allocation2 + $0x60] sm:$0xff] }
 0x1ab   : > { %2547 = vst.msk [vmem:[#allocation2 + $0xf0] sm:$0xff] %vm310_vm7, %v2515_v7  ;;  %v2516_v36 = vadd.f32 %v4560_v29, %v2308_v3  ;;  %v2306_v38 = vld [vmem:[#allocation2 + $0xe8] sm:$0xff]  ;;  %2800 = vst.msk [vmem:[#allocation2 + $0x18] sm:$0xff] %vm310_vm7, %v2768_v12  ;;  %v2568_v2 = vld [vmem:[#allocation2 + $0x58] sm:$0xff] }
 0x1ac   : > { %2545 = vst.msk [vmem:[#allocation2 + $0xe0] sm:$0xff] %vm310_vm7, %v2513_v48  ;;  %v2514_v25 = vadd.f32 %v2473_v58, %v2306_v38  ;;  %2798 = vst.msk [vmem:[#allocation2 + $0x8] sm:$0xff] %vm310_vm7, %v2766_v1  ;;  %v2570_v38 = vld [vmem:[#allocation2 + $0x68] sm:$0xff] }
 0x1ad   : > { %2548 = vst.msk [vmem:[#allocation2 + $0xf8] sm:$0xff] %vm310_vm7, %v2516_v36 }
 0x1ae   : > { %2546 = vst.msk [vmem:[#allocation2 + $0xe8] sm:$0xff] %vm310_vm7, %v2514_v25  ;;  %v4569_v14 = vpop.f32.mrb[84].mxu1  ;;  %v4603_v16 = vpop.f32.mrb[84].mxu0 }
 0x1af   : > { %v2771_v20 = vadd.f32 %v4569_v14, %v2563_v56  ;;  %v2654_v40 = vpop.f32.mrb[85].mxu1  ;;  %v2928_v13 = vpop.f32.mrb[85].mxu0 }
 0x1b0   : > { %v2831_v63 = vld [vmem:[#allocation2 + $0x10] sm:$0xff]  ;;  %v2769_v61 = vadd.f32 %v2654_v40, %v2561_v22  ;;  %v4570_v53 = vpop.f32.mrb[86].mxu1  ;;  %v4604_v52 = vpop.f32.mrb[86].mxu0 }
 0x1b1   : > { %v3041_v34 = vadd.f32 %v4599_v33, %v2831_v63  ;;  %2803 = vst.msk [vmem:[#allocation2 + $0x30] sm:$0xff] %vm310_vm7, %v2771_v20  ;;  %v2829_v31 = vld [vmem:[#allocation2] sm:$0xff]  ;;  %v2772_v28 = vadd.f32 %v4570_v53, %v2564_v39  ;;  %v2657_v44 = vpop.f32.mrb[87].mxu1  ;;  %v2931_v11 = vpop.f32.mrb[87].mxu0  ;;  %v2575_v53 = vld [vmem:[#allocation2 + $0x90] sm:$0xff] }
 0x1b2   : > { %v3039_v6 = vadd.f32 %v2912_v54, %v2829_v31  ;;  %2801 = vst.msk [vmem:[#allocation2 + $0x20] sm:$0xff] %vm310_vm7, %v2769_v61  ;;  %v2832_v21 = vld [vmem:[#allocation2 + $0x18] sm:$0xff]  ;;  %v2770_v41 = vadd.f32 %v2657_v44, %v2562_v57  ;;  %v2573_v31 = vld [vmem:[#allocation2 + $0x80] sm:$0xff] }
 0x1b3   : > { %3073 = vst.msk [vmem:[#allocation2 + $0x10] sm:$0xff] %vm310_vm7, %v3041_v34  ;;  %v3042_v55 = vadd.f32 %v4600_v23, %v2832_v21  ;;  %2804 = vst.msk [vmem:[#allocation2 + $0x38] sm:$0xff] %vm310_vm7, %v2772_v28  ;;  %v2830_v47 = vld [vmem:[#allocation2 + $0x8] sm:$0xff]  ;;  %v2572_v54 = vld [vmem:[#allocation2 + $0x78] sm:$0xff] }
 0x1b4   : > { %3071 = vst.msk [vmem:[#allocation2] sm:$0xff] %vm310_vm7, %v3039_v6  ;;  %v3040_v26 = vadd.f32 %v2915_v60, %v2830_v47  ;;  %2802 = vst.msk [vmem:[#allocation2 + $0x28] sm:$0xff] %vm310_vm7, %v2770_v41  ;;  %v2574_v47 = vld [vmem:[#allocation2 + $0x88] sm:$0xff] }
 0x1b5   : > { %3074 = vst.msk [vmem:[#allocation2 + $0x18] sm:$0xff] %vm310_vm7, %v3042_v55 }
 0x1b6   : > { %3072 = vst.msk [vmem:[#allocation2 + $0x8] sm:$0xff] %vm310_vm7, %v3040_v26  ;;  %v4573_v27 = vpop.f32.mrb[88].mxu1  ;;  %v4607_v45 = vpop.f32.mrb[88].mxu0 }
 0x1b7   : > { %v2775_v0 = vadd.f32 %v4573_v27, %v2567_v49  ;;  %v2670_v10 = vpop.f32.mrb[89].mxu1  ;;  %v2944_v4 = vpop.f32.mrb[89].mxu0 }
 0x1b8   : > { %v2835_v62 = vld [vmem:[#allocation2 + $0x30] sm:$0xff]  ;;  %v2773_v9 = vadd.f32 %v2670_v10, %v2565_v30  ;;  %v4574_v18 = vpop.f32.mrb[90].mxu1  ;;  %v4608_v42 = vpop.f32.mrb[90].mxu0 }
 0x1b9   : > { %v3045_v15 = vadd.f32 %v4603_v16, %v2835_v62  ;;  %2807 = vst.msk [vmem:[#allocation2 + $0x50] sm:$0xff] %vm310_vm7, %v2775_v0  ;;  %v2833_v29 = vld [vmem:[#allocation2 + $0x20] sm:$0xff]  ;;  %v2776_v59 = vadd.f32 %v4574_v18, %v2568_v2  ;;  %v2673_v58 = vpop.f32.mrb[91].mxu1  ;;  %v2947_v5 = vpop.f32.mrb[91].mxu0  ;;  %v2579_v18 = vld [vmem:[#allocation2 + $0xb0] sm:$0xff] }
 0x1ba   : > { %v3043_v17 = vadd.f32 %v2928_v13, %v2833_v29  ;;  %2805 = vst.msk [vmem:[#allocation2 + $0x40] sm:$0xff] %vm310_vm7, %v2773_v9  ;;  %v2836_v43 = vld [vmem:[#allocation2 + $0x38] sm:$0xff]  ;;  %v2774_v46 = vadd.f32 %v2673_v58, %v2566_v19  ;;  %v2577_v29 = vld [vmem:[#allocation2 + $0xa0] sm:$0xff] }
 0x1bb   : > { %3077 = vst.msk [vmem:[#allocation2 + $0x30] sm:$0xff] %vm310_vm7, %v3045_v15  ;;  %v3046_v37 = vadd.f32 %v4604_v52, %v2836_v43  ;;  %2808 = vst.msk [vmem:[#allocation2 + $0x58] sm:$0xff] %vm310_vm7, %v2776_v59  ;;  %v2834_v35 = vld [vmem:[#allocation2 + $0x28] sm:$0xff]  ;;  %v2576_v13 = vld [vmem:[#allocation2 + $0x98] sm:$0xff] }
 0x1bc   : > { %3075 = vst.msk [vmem:[#allocation2 + $0x20] sm:$0xff] %vm310_vm7, %v3043_v17  ;;  %v3044_v8 = vadd.f32 %v2931_v11, %v2834_v35  ;;  %2806 = vst.msk [vmem:[#allocation2 + $0x48] sm:$0xff] %vm310_vm7, %v2774_v46  ;;  %v2578_v35 = vld [vmem:[#allocation2 + $0xa8] sm:$0xff] }
 0x1bd   : > { %3078 = vst.msk [vmem:[#allocation2 + $0x38] sm:$0xff] %vm310_vm7, %v3046_v37 }
 0x1be   : > { %3076 = vst.msk [vmem:[#allocation2 + $0x28] sm:$0xff] %vm310_vm7, %v3044_v8  ;;  %v4577_v33 = vpop.f32.mrb[92].mxu1  ;;  %v4611_v3 = vpop.f32.mrb[92].mxu0 }
 0x1bf   : > { %v2779_v7 = vadd.f32 %v4577_v33, %v2571_v51  ;;  %v2686_v12 = vpop.f32.mrb[93].mxu1  ;;  %v2960_v25 = vpop.f32.mrb[93].mxu0 }
 0x1c0   : > { %v2839_v50 = vld [vmem:[#allocation2 + $0x50] sm:$0xff]  ;;  %v2777_v24 = vadd.f32 %v2686_v12, %v2569_v32  ;;  %v4578_v48 = vpop.f32.mrb[94].mxu1  ;;  %v4612_v22 = vpop.f32.mrb[94].mxu0 }
 0x1c1   : > { %v3049_v1 = vadd.f32 %v4607_v45, %v2839_v50  ;;  %2811 = vst.msk [vmem:[#allocation2 + $0x70] sm:$0xff] %vm310_vm7, %v2779_v7  ;;  %v2837_v23 = vld [vmem:[#allocation2 + $0x40] sm:$0xff]  ;;  %v2780_v36 = vadd.f32 %v4578_v48, %v2572_v54  ;;  %v2689_v60 = vpop.f32.mrb[95].mxu1  ;;  %v2963_v61 = vpop.f32.mrb[95].mxu0  ;;  %v2583_v48 = vld [vmem:[#allocation2 + $0xd0] sm:$0xff] }
 0x1c2   : > { %v3047_v56 = vadd.f32 %v2944_v4, %v2837_v23  ;;  %2809 = vst.msk [vmem:[#allocation2 + $0x60] sm:$0xff] %vm310_vm7, %v2777_v24  ;;  %v2840_v14 = vld [vmem:[#allocation2 + $0x58] sm:$0xff]  ;;  %v2778_v20 = vadd.f32 %v2689_v60, %v2570_v38  ;;  %v2581_v23 = vld [vmem:[#allocation2 + $0xc0] sm:$0xff] }
 0x1c3   : > { %3081 = vst.msk [vmem:[#allocation2 + $0x50] sm:$0xff] %vm310_vm7, %v3049_v1  ;;  %v3050_v40 = vadd.f32 %v4608_v42, %v2840_v14  ;;  %2812 = vst.msk [vmem:[#allocation2 + $0x78] sm:$0xff] %vm310_vm7, %v2780_v36  ;;  %v2838_v63 = vld [vmem:[#allocation2 + $0x48] sm:$0xff]  ;;  %v2580_v4 = vld [vmem:[#allocation2 + $0xb8] sm:$0xff] }
 0x1c4   : > { %3079 = vst.msk [vmem:[#allocation2 + $0x40] sm:$0xff] %vm310_vm7, %v3047_v56  ;;  %v3048_v39 = vadd.f32 %v2947_v5, %v2838_v63  ;;  %2810 = vst.msk [vmem:[#allocation2 + $0x68] sm:$0xff] %vm310_vm7, %v2778_v20  ;;  %v2582_v63 = vld [vmem:[#allocation2 + $0xc8] sm:$0xff] }
 0x1c5   : > { %3082 = vst.msk [vmem:[#allocation2 + $0x58] sm:$0xff] %vm310_vm7, %v3050_v40 }
 0x1c6   : > { %3080 = vst.msk [vmem:[#allocation2 + $0x48] sm:$0xff] %vm310_vm7, %v3048_v39  ;;  %v4581_v16 = vpop.f32.mrb[96].mxu1  ;;  %v4615_v21 = vpop.f32.mrb[96].mxu0 }
 0x1c7   : > { %v2783_v34 = vadd.f32 %v4581_v16, %v2575_v53  ;;  %v2702_v28 = vpop.f32.mrb[97].mxu1  ;;  %v2976_v26 = vpop.f32.mrb[97].mxu0 }
 0x1c8   : > { %v2843_v57 = vld [vmem:[#allocation2 + $0x70] sm:$0xff]  ;;  %v2781_v44 = vadd.f32 %v2702_v28, %v2573_v31  ;;  %v4582_v6 = vpop.f32.mrb[98].mxu1  ;;  %v4616_v30 = vpop.f32.mrb[98].mxu0 }
 0x1c9   : > { %v3053_v41 = vadd.f32 %v4611_v3, %v2843_v57  ;;  %2815 = vst.msk [vmem:[#allocation2 + $0x90] sm:$0xff] %vm310_vm7, %v2783_v34  ;;  %v2841_v52 = vld [vmem:[#allocation2 + $0x60] sm:$0xff]  ;;  %v2784_v55 = vadd.f32 %v4582_v6, %v2576_v13  ;;  %v2705_v11 = vpop.f32.mrb[99].mxu1  ;;  %v2979_v9 = vpop.f32.mrb[99].mxu0  ;;  %v2587_v6 = vld [vmem:[#allocation2 + $0xf0] sm:$0xff] }
 0x1ca   : > { %v3051_v49 = vadd.f32 %v2960_v25, %v2841_v52  ;;  %2813 = vst.msk [vmem:[#allocation2 + $0x80] sm:$0xff] %vm310_vm7, %v2781_v44  ;;  %v2844_v27 = vld [vmem:[#allocation2 + $0x78] sm:$0xff]  ;;  %v2782_v0 = vadd.f32 %v2705_v11, %v2574_v47  ;;  %v2585_v52 = vld [vmem:[#allocation2 + $0xe0] sm:$0xff] }
 0x1cb   : > { %3085 = vst.msk [vmem:[#allocation2 + $0x70] sm:$0xff] %vm310_vm7, %v3053_v41  ;;  %v3054_v10 = vadd.f32 %v4612_v22, %v2844_v27  ;;  %2816 = vst.msk [vmem:[#allocation2 + $0x98] sm:$0xff] %vm310_vm7, %v2784_v55  ;;  %v2842_v62 = vld [vmem:[#allocation2 + $0x68] sm:$0xff]  ;;  %v2584_v25 = vld [vmem:[#allocation2 + $0xd8] sm:$0xff] }
 0x1cc   : > { %3083 = vst.msk [vmem:[#allocation2 + $0x60] sm:$0xff] %vm310_vm7, %v3051_v49  ;;  %v3052_v2 = vadd.f32 %v2963_v61, %v2842_v62  ;;  %2814 = vst.msk [vmem:[#allocation2 + $0x88] sm:$0xff] %vm310_vm7, %v2782_v0  ;;  %v2586_v62 = vld [vmem:[#allocation2 + $0xe8] sm:$0xff] }
 0x1cd   : > { %3086 = vst.msk [vmem:[#allocation2 + $0x78] sm:$0xff] %vm310_vm7, %v3054_v10 }
 0x1ce   : > { %3084 = vst.msk [vmem:[#allocation2 + $0x68] sm:$0xff] %vm310_vm7, %v3052_v2  ;;  %v4585_v45 = vpop.f32.mrb[100].mxu1  ;;  %v4619_v43 = vpop.f32.mrb[100].mxu0 }
 0x1cf   : > { %v2787_v15 = vadd.f32 %v4585_v45, %v2579_v18  ;;  %v2718_v59 = vpop.f32.mrb[101].mxu1  ;;  %v2992_v8 = vpop.f32.mrb[101].mxu0 }
 0x1d0   : > { %v2847_v19 = vld [vmem:[#allocation2 + $0x90] sm:$0xff]  ;;  %v2785_v58 = vadd.f32 %v2718_v59, %v2577_v29  ;;  %v4586_v17 = vpop.f32.mrb[102].mxu1  ;;  %v4620_v32 = vpop.f32.mrb[102].mxu0 }
 0x1d1   : > { %v3057_v46 = vadd.f32 %v4615_v21, %v2847_v19  ;;  %2819 = vst.msk [vmem:[#allocation2 + $0xb0] sm:$0xff] %vm310_vm7, %v2787_v15  ;;  %v2845_v42 = vld [vmem:[#allocation2 + $0x80] sm:$0xff]  ;;  %v2788_v37 = vadd.f32 %v4586_v17, %v2580_v4  ;;  %v2721_v5 = vpop.f32.mrb[103].mxu1  ;;  %v2995_v24 = vpop.f32.mrb[103].mxu0  ;;  %v3129_v17 = vld [vmem:[#allocation2 + $0x10] sm:$0xff] }
 0x1d2   : > { %v3055_v51 = vadd.f32 %v2976_v26, %v2845_v42  ;;  %2817 = vst.msk [vmem:[#allocation2 + $0xa0] sm:$0xff] %vm310_vm7, %v2785_v58  ;;  %v2848_v33 = vld [vmem:[#allocation2 + $0x98] sm:$0xff]  ;;  %v2786_v7 = vadd.f32 %v2721_v5, %v2578_v35  ;;  %v3127_v42 = vld [vmem:[#allocation2] sm:$0xff] }
 0x1d3   : > { %3089 = vst.msk [vmem:[#allocation2 + $0x90] sm:$0xff] %vm310_vm7, %v3057_v46  ;;  %v3058_v12 = vadd.f32 %v4616_v30, %v2848_v33  ;;  %2820 = vst.msk [vmem:[#allocation2 + $0xb8] sm:$0xff] %vm310_vm7, %v2788_v37  ;;  %v2846_v50 = vld [vmem:[#allocation2 + $0x88] sm:$0xff]  ;;  %v2588_v26 = vld [vmem:[#allocation2 + $0xf8] sm:$0xff] }
 0x1d4   : > { %3087 = vst.msk [vmem:[#allocation2 + $0x80] sm:$0xff] %vm310_vm7, %v3055_v51  ;;  %v3056_v54 = vadd.f32 %v2979_v9, %v2846_v50  ;;  %2818 = vst.msk [vmem:[#allocation2 + $0xa8] sm:$0xff] %vm310_vm7, %v2786_v7  ;;  %v3128_v50 = vld [vmem:[#allocation2 + $0x8] sm:$0xff] }
 0x1d5   : > { %3090 = vst.msk [vmem:[#allocation2 + $0x98] sm:$0xff] %vm310_vm7, %v3058_v12 }
 0x1d6   : > { %3088 = vst.msk [vmem:[#allocation2 + $0x88] sm:$0xff] %vm310_vm7, %v3056_v54  ;;  %v4589_v3 = vpop.f32.mrb[104].mxu1  ;;  %v4623_v14 = vpop.f32.mrb[104].mxu0 }
 0x1d7   : > { %v2791_v1 = vadd.f32 %v4589_v3, %v2583_v48  ;;  %v2734_v36 = vpop.f32.mrb[105].mxu1  ;;  %v3008_v39 = vpop.f32.mrb[105].mxu0 }
 0x1d8   : > { %v2851_v38 = vld [vmem:[#allocation2 + $0xb0] sm:$0xff]  ;;  %v2789_v60 = vadd.f32 %v2734_v36, %v2581_v23  ;;  %v4590_v56 = vpop.f32.mrb[106].mxu1  ;;  %v4624_v31 = vpop.f32.mrb[106].mxu0 }
 0x1d9   : > { %v3061_v20 = vadd.f32 %v4619_v43, %v2851_v38  ;;  %2823 = vst.msk [vmem:[#allocation2 + $0xd0] sm:$0xff] %vm310_vm7, %v2791_v1  ;;  %v2849_v22 = vld [vmem:[#allocation2 + $0xa0] sm:$0xff]  ;;  %v2792_v40 = vadd.f32 %v4590_v56, %v2584_v25  ;;  %v2737_v61 = vpop.f32.mrb[107].mxu1  ;;  %v3011_v44 = vpop.f32.mrb[107].mxu0  ;;  %v3133_v56 = vld [vmem:[#allocation2 + $0x30] sm:$0xff] }
 0x1da   : > { %v3059_v53 = vadd.f32 %v2992_v8, %v2849_v22  ;;  %2821 = vst.msk [vmem:[#allocation2 + $0xc0] sm:$0xff] %vm310_vm7, %v2789_v60  ;;  %v2852_v16 = vld [vmem:[#allocation2 + $0xb8] sm:$0xff]  ;;  %v2790_v34 = vadd.f32 %v2737_v61, %v2582_v63  ;;  %v3131_v22 = vld [vmem:[#allocation2 + $0x20] sm:$0xff] }
 0x1db   : > { %3093 = vst.msk [vmem:[#allocation2 + $0xb0] sm:$0xff] %vm310_vm7, %v3061_v20  ;;  %v3062_v28 = vadd.f32 %v4620_v32, %v2852_v16  ;;  %2824 = vst.msk [vmem:[#allocation2 + $0xd8] sm:$0xff] %vm310_vm7, %v2792_v40  ;;  %v2850_v57 = vld [vmem:[#allocation2 + $0xa8] sm:$0xff]  ;;  %v3130_v8 = vld [vmem:[#allocation2 + $0x18] sm:$0xff] }
 0x1dc   : > { %3091 = vst.msk [vmem:[#allocation2 + $0xa0] sm:$0xff] %vm310_vm7, %v3059_v53  ;;  %v3060_v13 = vadd.f32 %v2995_v24, %v2850_v57  ;;  %2822 = vst.msk [vmem:[#allocation2 + $0xc8] sm:$0xff] %vm310_vm7, %v2790_v34  ;;  %v3132_v57 = vld [vmem:[#allocation2 + $0x28] sm:$0xff] }
 0x1dd   : > { %3094 = vst.msk [vmem:[#allocation2 + $0xb8] sm:$0xff] %vm310_vm7, %v3062_v28 }
 0x1de   : > { %3092 = vst.msk [vmem:[#allocation2 + $0xa8] sm:$0xff] %vm310_vm7, %v3060_v13  ;;  %v4593_v21 = vpop.f32.mrb[108].mxu1  ;;  %v4627_v27 = vpop.f32.mrb[108].mxu0 }
 0x1df   : > { %v2795_v41 = vadd.f32 %v4593_v21, %v2587_v6  ;;  %v2750_v55 = vpop.f32.mrb[109].mxu1  ;;  %v3024_v2 = vpop.f32.mrb[109].mxu0 }
 0x1e0   : > { %v2855_v47 = vld [vmem:[#allocation2 + $0xd0] sm:$0xff]  ;;  %v2793_v11 = vadd.f32 %v2750_v55, %v2585_v52  ;;  %v4594_v49 = vpop.f32.mrb[110].mxu1  ;;  %v4628_v29 = vpop.f32.mrb[110].mxu0 }
 0x1e1   : > { %v3065_v0 = vadd.f32 %v4623_v14, %v2855_v47  ;;  %2827 = vst.msk [vmem:[#allocation2 + $0xf0] sm:$0xff] %vm310_vm7, %v2795_v41  ;;  %v2853_v30 = vld [vmem:[#allocation2 + $0xc0] sm:$0xff]  ;;  %v2796_v10 = vadd.f32 %v4594_v49, %v2588_v26  ;;  %v2753_v9 = vpop.f32.mrb[111].mxu1  ;;  %v3027_v58 = vpop.f32.mrb[111].mxu0  ;;  %v3137_v49 = vld [vmem:[#allocation2 + $0x50] sm:$0xff] }
 0x1e2   : > { %v3063_v18 = vadd.f32 %v3008_v39, %v2853_v30  ;;  %2825 = vst.msk [vmem:[#allocation2 + $0xe0] sm:$0xff] %vm310_vm7, %v2793_v11  ;;  %v2856_v45 = vld [vmem:[#allocation2 + $0xd8] sm:$0xff]  ;;  %v2794_v15 = vadd.f32 %v2753_v9, %v2586_v62  ;;  %v3135_v30 = vld [vmem:[#allocation2 + $0x40] sm:$0xff] }
 0x1e3   : > { %3097 = vst.msk [vmem:[#allocation2 + $0xd0] sm:$0xff] %vm310_vm7, %v3065_v0  ;;  %v3066_v59 = vadd.f32 %v4624_v31, %v2856_v45  ;;  %2828 = vst.msk [vmem:[#allocation2 + $0xf8] sm:$0xff] %vm310_vm7, %v2796_v10  ;;  %v2854_v19 = vld [vmem:[#allocation2 + $0xc8] sm:$0xff]  ;;  %v3134_v39 = vld [vmem:[#allocation2 + $0x38] sm:$0xff] }
 0x1e4   : > { %3095 = vst.msk [vmem:[#allocation2 + $0xc0] sm:$0xff] %vm310_vm7, %v3063_v18  ;;  %v3064_v4 = vadd.f32 %v3011_v44, %v2854_v19  ;;  %2826 = vst.msk [vmem:[#allocation2 + $0xe8] sm:$0xff] %vm310_vm7, %v2794_v15  ;;  %v6258_v62 = vld [vmem:[%s6511_s2] ss:$0 sm:$0xff]  ;;  %v3138_v18 = vld [vmem:[#allocation2 + $0x58] sm:$0xff] }
 0x1e5   : > { %3098 = vst.msk [vmem:[#allocation2 + $0xd8] sm:$0xff] %vm310_vm7, %v3066_v59 }
 0x1e6   : > { %3096 = vst.msk [vmem:[#allocation2 + $0xc8] sm:$0xff] %vm310_vm7, %v3064_v4  ;;  %v4633_v43 = vpop.f32.mrb[112].mxu1  ;;  %v4667_v33 = vpop.f32.mrb[112].mxu0 }
 0x1e7   : > { %v3337_v46 = vadd.f32 %v4633_v43, %v3129_v17  ;;  %v3208_v37 = vpop.f32.mrb[113].mxu1  ;;  %v3488_v54 = vpop.f32.mrb[113].mxu0 }
 0x1e8   : > { %v2859_v35 = vld [vmem:[#allocation2 + $0xf0] sm:$0xff]  ;;  %v3335_v5 = vadd.f32 %v3208_v37, %v3127_v42  ;;  %v4634_v51 = vpop.f32.mrb[114].mxu1  ;;  %v4668_v23 = vpop.f32.mrb[114].mxu0 }
 0x1e9   : > { %v3069_v7 = vadd.f32 %v4627_v27, %v2859_v35  ;;  %v2857_v32 = vld [vmem:[#allocation2 + $0xe0] sm:$0xff]  ;;  %3369 = vst.msk [vmem:[#allocation2 + $0x10] sm:$0xff] %vm310_vm7, %v3337_v46  ;;  %v3338_v12 = vadd.f32 %v4634_v51, %v3130_v8  ;;  %v3211_v24 = vpop.f32.mrb[115].mxu1  ;;  %v3491_v60 = vpop.f32.mrb[115].mxu0 }
 0x1ea   : > { %v3067_v48 = vadd.f32 %v3024_v2, %v2857_v32  ;;  %v2860_v3 = vld [vmem:[#allocation2 + $0xf8] sm:$0xff]  ;;  %3367 = vst.msk [vmem:[#allocation2] sm:$0xff] %vm310_vm7, %v3335_v5  ;;  %v3336_v1 = vadd.f32 %v3211_v24, %v3128_v50  ;;  %v6264_v46 = vld [vmem:[%s6512_s3] ss:$0 sm:$0xff] }
 0x1eb   : > { %3101 = vst.msk [vmem:[#allocation2 + $0xf0] sm:$0xff] %vm310_vm7, %v3069_v7  ;;  %v3070_v36 = vadd.f32 %v4628_v29, %v2860_v3  ;;  %v2858_v38 = vld [vmem:[#allocation2 + $0xe8] sm:$0xff]  ;;  %3370 = vst.msk [vmem:[#allocation2 + $0x18] sm:$0xff] %vm310_vm7, %v3338_v12 }
 0x1ec   : > { %3099 = vst.msk [vmem:[#allocation2 + $0xe0] sm:$0xff] %vm310_vm7, %v3067_v48  ;;  %v3068_v25 = vadd.f32 %v3027_v58, %v2858_v38  ;;  %3368 = vst.msk [vmem:[#allocation2 + $0x8] sm:$0xff] %vm310_vm7, %v3336_v1  ;;  %v3136_v58 = vld [vmem:[#allocation2 + $0x48] sm:$0xff] }
 0x1ed   : > { %3102 = vst.msk [vmem:[#allocation2 + $0xf8] sm:$0xff] %vm310_vm7, %v3070_v36  ;;  %v3141_v36 = vld [vmem:[#allocation2 + $0x70] sm:$0xff] }
 0x1ee   : > { %3100 = vst.msk [vmem:[#allocation2 + $0xe8] sm:$0xff] %vm310_vm7, %v3068_v25  ;;  %v4637_v14 = vpop.f32.mrb[116].mxu1  ;;  %v4671_v16 = vpop.f32.mrb[116].mxu0 }
 0x1ef   : > { %v3341_v20 = vadd.f32 %v4637_v14, %v3133_v56  ;;  %v3224_v40 = vpop.f32.mrb[117].mxu1  ;;  %v3504_v13 = vpop.f32.mrb[117].mxu0  ;;  %v3139_v14 = vld [vmem:[#allocation2 + $0x60] sm:$0xff] }
 0x1f0   : > { %v3409_v63 = vld [vmem:[#allocation2 + $0x10] sm:$0xff]  ;;  %v3339_v61 = vadd.f32 %v3224_v40, %v3131_v22  ;;  %v4638_v53 = vpop.f32.mrb[118].mxu1  ;;  %v4672_v52 = vpop.f32.mrb[118].mxu0 }
 0x1f1   : > { %v3617_v34 = vadd.f32 %v4667_v33, %v3409_v63  ;;  %3373 = vst.msk [vmem:[#allocation2 + $0x30] sm:$0xff] %vm310_vm7, %v3341_v20  ;;  %v3407_v31 = vld [vmem:[#allocation2] sm:$0xff]  ;;  %v3342_v28 = vadd.f32 %v4638_v53, %v3134_v39  ;;  %v3227_v44 = vpop.f32.mrb[119].mxu1  ;;  %v3507_v11 = vpop.f32.mrb[119].mxu0  ;;  %v3142_v39 = vld [vmem:[#allocation2 + $0x78] sm:$0xff] }
 0x1f2   : > { %v3615_v6 = vadd.f32 %v3488_v54, %v3407_v31  ;;  %3371 = vst.msk [vmem:[#allocation2 + $0x20] sm:$0xff] %vm310_vm7, %v3339_v61  ;;  %v3410_v21 = vld [vmem:[#allocation2 + $0x18] sm:$0xff]  ;;  %v3340_v41 = vadd.f32 %v3227_v44, %v3132_v57  ;;  %v3140_v44 = vld [vmem:[#allocation2 + $0x68] sm:$0xff] }
 0x1f3   : > { %3649 = vst.msk [vmem:[#allocation2 + $0x10] sm:$0xff] %vm310_vm7, %v3617_v34  ;;  %v3618_v55 = vadd.f32 %v4668_v23, %v3410_v21  ;;  %3374 = vst.msk [vmem:[#allocation2 + $0x38] sm:$0xff] %vm310_vm7, %v3342_v28  ;;  %v3408_v47 = vld [vmem:[#allocation2 + $0x8] sm:$0xff] }
 0x1f4   : > { %3647 = vst.msk [vmem:[#allocation2] sm:$0xff] %vm310_vm7, %v3615_v6  ;;  %v3616_v26 = vadd.f32 %v3491_v60, %v3408_v47  ;;  %3372 = vst.msk [vmem:[#allocation2 + $0x28] sm:$0xff] %vm310_vm7, %v3340_v41 }
 0x1f5   : > { %3650 = vst.msk [vmem:[#allocation2 + $0x18] sm:$0xff] %vm310_vm7, %v3618_v55 }
 0x1f6   : > { %3648 = vst.msk [vmem:[#allocation2 + $0x8] sm:$0xff] %vm310_vm7, %v3616_v26  ;;  %v4641_v27 = vpop.f32.mrb[120].mxu1  ;;  %v4675_v15 = vpop.f32.mrb[120].mxu0 }
 0x1f7   : > { %v3345_v0 = vadd.f32 %v4641_v27, %v3137_v49  ;;  %v3240_v10 = vpop.f32.mrb[121].mxu1  ;;  %v3520_v17 = vpop.f32.mrb[121].mxu0 }
 0x1f8   : > { %v3413_v9 = vld [vmem:[#allocation2 + $0x30] sm:$0xff]  ;;  %v3343_v2 = vadd.f32 %v3240_v10, %v3135_v30  ;;  %v4642_v45 = vpop.f32.mrb[122].mxu1  ;;  %v4676_v5 = vpop.f32.mrb[122].mxu0 }
 0x1f9   : > { %v3621_v29 = vadd.f32 %v4671_v16, %v3413_v9  ;;  %3377 = vst.msk [vmem:[#allocation2 + $0x50] sm:$0xff] %vm310_vm7, %v3345_v0  ;;  %v3411_v59 = vld [vmem:[#allocation2 + $0x20] sm:$0xff]  ;;  %v3346_v19 = vadd.f32 %v4642_v45, %v3138_v18  ;;  %v3243_v4 = vpop.f32.mrb[123].mxu1  ;;  %v3523_v32 = vpop.f32.mrb[123].mxu0 }
 0x1fa   : > { %v3681_v43 = vld [vmem:[#allocation2 + $0x10] sm:$0xff]  ;;  %v3619_v42 = vadd.f32 %v3504_v13, %v3411_v59  ;;  %3375 = vst.msk [vmem:[#allocation2 + $0x40] sm:$0xff] %vm310_vm7, %v3343_v2  ;;  %v3414_v37 = vld [vmem:[#allocation2 + $0x38] sm:$0xff]  ;;  %v3344_v35 = vadd.f32 %v3243_v4, %v3136_v58 }
 0x1fb   : > { %v3720_v8 = vmul.f32 %v6258_v62, %v3681_v43  ;;  %v3679_v51 = vld [vmem:[#allocation2] sm:$0xff]  ;;  %3653 = vst.msk [vmem:[#allocation2 + $0x30] sm:$0xff] %vm310_vm7, %v3621_v29  ;;  %v3622_v33 = vadd.f32 %v4672_v52, %v3414_v37  ;;  %3378 = vst.msk [vmem:[#allocation2 + $0x58] sm:$0xff] %vm310_vm7, %v3346_v19  ;;  %v3412_v7 = vld [vmem:[#allocation2 + $0x28] sm:$0xff] }
 0x1fc   : > { %v3718_v12 = vmul.f32 %v6258_v62, %v3679_v51  ;;  %v3682_v50 = vld [vmem:[#allocation2 + $0x18] sm:$0xff]  ;;  %3651 = vst.msk [vmem:[#allocation2 + $0x20] sm:$0xff] %vm310_vm7, %v3619_v42  ;;  %v3620_v24 = vadd.f32 %v3507_v11, %v3412_v7  ;;  %3376 = vst.msk [vmem:[#allocation2 + $0x48] sm:$0xff] %vm310_vm7, %v3344_v35  ;;  %v3145_v19 = vld [vmem:[#allocation2 + $0x90] sm:$0xff] }
 0x1fd   : > { %v3759_v54 = vadd.f32 %v6264_v46, %v3720_v8  ;;  %v3721_v48 = vmul.f32 %v6258_v62, %v3682_v50  ;;  %v3680_v3 = vld [vmem:[#allocation2 + $0x8] sm:$0xff]  ;;  %3654 = vst.msk [vmem:[#allocation2 + $0x38] sm:$0xff] %vm310_vm7, %v3622_v33  ;;  %v3143_v42 = vld [vmem:[#allocation2 + $0x80] sm:$0xff]  ;;  %v3146_v33 = vld [vmem:[#allocation2 + $0x98] sm:$0xff] }
 0x1fe   : > { %v3757_v1 = vadd.f32 %v6264_v46, %v3718_v12  ;;  %v3719_v23 = vmul.f32 %v6258_v62, %v3680_v3  ;;  %3652 = vst.msk [vmem:[#allocation2 + $0x28] sm:$0xff] %vm310_vm7, %v3620_v24  ;;  %v4645_v38 = vpop.f32.mrb[124].mxu1  ;;  %v4679_v16 = vpop.f32.mrb[124].mxu0 }
 0x1ff   : > { %v3791_v60 = vmax.f32 %v3759_v54, 0.0  ;;  %v3760_v25 = vadd.f32 %v6264_v46, %v3721_v48  ;;  %v3349_v56 = vadd.f32 %v4645_v38, %v3141_v36  ;;  %v3256_v20 = vpop.f32.mrb[125].mxu1  ;;  %v3536_v6 = vpop.f32.mrb[125].mxu0  ;;  %v3144_v48 = vld [vmem:[#allocation2 + $0x88] sm:$0xff] }
 0x200   : > { %v3789_v22 = vmax.f32 %v3757_v1, 0.0  ;;  %v3758_v40 = vadd.f32 %v6264_v46, %v3719_v23  ;;  %v3417_v63 = vld [vmem:[#allocation2 + $0x50] sm:$0xff]  ;;  %v3347_v61 = vadd.f32 %v3256_v20, %v3139_v14  ;;  %v4646_v53 = vpop.f32.mrb[126].mxu1  ;;  %v4680_v11 = vpop.f32.mrb[126].mxu0 }
 0x201   : > { %3823 = vst.msk [vmem:[%s6286_s22 + $0x10] sm:$0xff] %vm310_vm7, %v3791_v60  ;;  %v3792_v34 = vmax.f32 %v3760_v25, 0.0  ;;  %v3625_v31 = vadd.f32 %v4675_v15, %v3417_v63  ;;  %3381 = vst.msk [vmem:[#allocation2 + $0x70] sm:$0xff] %vm310_vm7, %v3349_v56  ;;  %v3415_v28 = vld [vmem:[#allocation2 + $0x40] sm:$0xff]  ;;  %v3350_v57 = vadd.f32 %v4646_v53, %v3142_v39  ;;  %v3259_v13 = vpop.f32.mrb[127].mxu1  ;;  %v3539_v30 = vpop.f32.mrb[127].mxu0 }
 0x202   : > { %3821 = vst.msk [vmem:[%s6286_s22] sm:$0xff] %vm310_vm7, %v3789_v22  ;;  %v3790_v21 = vmax.f32 %v3758_v40, 0.0  ;;  %v3685_v41 = vld [vmem:[#allocation2 + $0x30] sm:$0xff]  ;;  %v3623_v52 = vadd.f32 %v3520_v17, %v3415_v28  ;;  %3379 = vst.msk [vmem:[#allocation2 + $0x60] sm:$0xff] %vm310_vm7, %v3347_v61  ;;  %v3418_v55 = vld [vmem:[#allocation2 + $0x58] sm:$0xff]  ;;  %v3348_v47 = vadd.f32 %v3259_v13, %v3140_v44 }
 0x203   : > { %3824 = vst.msk [vmem:[%s6286_s22 + $0x18] sm:$0xff] %vm310_vm7, %v3792_v34  ;;  %v3724_v26 = vmul.f32 %v6258_v62, %v3685_v41  ;;  %v3683_v49 = vld [vmem:[#allocation2 + $0x20] sm:$0xff]  ;;  %3657 = vst.msk [vmem:[#allocation2 + $0x50] sm:$0xff] %vm310_vm7, %v3625_v31  ;;  %v3626_v27 = vadd.f32 %v4676_v5, %v3418_v55  ;;  %v3416_v0 = vld [vmem:[#allocation2 + $0x48] sm:$0xff] }
 0x204   : > { %3382 = vst.msk [vmem:[#allocation2 + $0x78] sm:$0xff] %vm310_vm7, %v3350_v57  ;;  %3822 = vst.msk [vmem:[%s6286_s22 + $0x8] sm:$0xff] %vm310_vm7, %v3790_v21  ;;  %v3722_v10 = vmul.f32 %v6258_v62, %v3683_v49  ;;  %v3686_v9 = vld [vmem:[#allocation2 + $0x38] sm:$0xff]  ;;  %v3624_v2 = vadd.f32 %v3523_v32, %v3416_v0  ;;  %v3149_v44 = vld [vmem:[#allocation2 + $0xb0] sm:$0xff] }
 0x205   : > { %3655 = vst.msk [vmem:[#allocation2 + $0x40] sm:$0xff] %vm310_vm7, %v3623_v52  ;;  %3380 = vst.msk [vmem:[#allocation2 + $0x68] sm:$0xff] %vm310_vm7, %v3348_v47  ;;  %v3763_v18 = vadd.f32 %v6264_v46, %v3724_v26  ;;  %v3725_v45 = vmul.f32 %v6258_v62, %v3686_v9  ;;  %v3684_v15 = vld [vmem:[#allocation2 + $0x28] sm:$0xff]  ;;  %v3147_v52 = vld [vmem:[#allocation2 + $0xa0] sm:$0xff] }
 0x206   : > { %3658 = vst.msk [vmem:[#allocation2 + $0x58] sm:$0xff] %vm310_vm7, %v3626_v27  ;;  %v3761_v29 = vadd.f32 %v6264_v46, %v3722_v10  ;;  %v3723_v59 = vmul.f32 %v6258_v62, %v3684_v15  ;;  %3656 = vst.msk [vmem:[#allocation2 + $0x48] sm:$0xff] %vm310_vm7, %v3624_v2  ;;  %v4649_v58 = vpop.f32.mrb[128].mxu1  ;;  %v4683_v32 = vpop.f32.mrb[128].mxu0  ;;  %v3150_v27 = vld [vmem:[#allocation2 + $0xb8] sm:$0xff] }
 0x207   : > { %v3795_v4 = vmax.f32 %v3763_v18, 0.0  ;;  %v3764_v17 = vadd.f32 %v6264_v46, %v3725_v45  ;;  %v3353_v43 = vadd.f32 %v4649_v58, %v3145_v19  ;;  %v3272_v37 = vpop.f32.mrb[129].mxu1  ;;  %v3552_v1 = vpop.f32.mrb[129].mxu0  ;;  %v3148_v45 = vld [vmem:[#allocation2 + $0xa8] sm:$0xff] }
 0x208   : > { %v3793_v35 = vmax.f32 %v3761_v29, 0.0  ;;  %v3762_v5 = vadd.f32 %v6264_v46, %v3723_v59  ;;  %v3421_v8 = vld [vmem:[#allocation2 + $0x70] sm:$0xff]  ;;  %v3351_v51 = vadd.f32 %v3272_v37, %v3143_v42  ;;  %v4650_v7 = vpop.f32.mrb[130].mxu1  ;;  %v4684_v56 = vpop.f32.mrb[130].mxu0 }
 0x209   : > { %3827 = vst.msk [vmem:[%s6286_s22 + $0x30] sm:$0xff] %vm310_vm7, %v3795_v4  ;;  %v3796_v12 = vmax.f32 %v3764_v17, 0.0  ;;  %v3629_v50 = vadd.f32 %v4679_v16, %v3421_v8  ;;  %3385 = vst.msk [vmem:[#allocation2 + $0x90] sm:$0xff] %vm310_vm7, %v3353_v43  ;;  %v3419_v24 = vld [vmem:[#allocation2 + $0x60] sm:$0xff]  ;;  %v3354_v54 = vadd.f32 %v4650_v7, %v3146_v33  ;;  %v3275_v3 = vpop.f32.mrb[131].mxu1  ;;  %v3555_v63 = vpop.f32.mrb[131].mxu0 }
 0x20a   : > { %3825 = vst.msk [vmem:[%s6286_s22 + $0x20] sm:$0xff] %vm310_vm7, %v3793_v35  ;;  %v3794_v23 = vmax.f32 %v3762_v5, 0.0  ;;  %v3689_v36 = vld [vmem:[#allocation2 + $0x50] sm:$0xff]  ;;  %v3627_v38 = vadd.f32 %v3536_v6, %v3419_v24  ;;  %3383 = vst.msk [vmem:[#allocation2 + $0x80] sm:$0xff] %vm310_vm7, %v3351_v51  ;;  %v3352_v25 = vadd.f32 %v3275_v3, %v3144_v48 }
 0x20b   : > { %v3422_v60 = vld [vmem:[#allocation2 + $0x78] sm:$0xff]  ;;  %3828 = vst.msk [vmem:[%s6286_s22 + $0x38] sm:$0xff] %vm310_vm7, %v3796_v12  ;;  %v3728_v14 = vmul.f32 %v6258_v62, %v3689_v36  ;;  %3661 = vst.msk [vmem:[#allocation2 + $0x70] sm:$0xff] %vm310_vm7, %v3629_v50  ;;  %v3153_v48 = vld [vmem:[#allocation2 + $0xd0] sm:$0xff] }
 0x20c   : > { %v3687_v20 = vld [vmem:[#allocation2 + $0x40] sm:$0xff]  ;;  %v3630_v22 = vadd.f32 %v4680_v11, %v3422_v60  ;;  %3386 = vst.msk [vmem:[#allocation2 + $0x98] sm:$0xff] %vm310_vm7, %v3354_v54  ;;  %v3420_v40 = vld [vmem:[#allocation2 + $0x68] sm:$0xff]  ;;  %3826 = vst.msk [vmem:[%s6286_s22 + $0x28] sm:$0xff] %vm310_vm7, %v3794_v23 }
 0x20d   : > { %v3726_v61 = vmul.f32 %v6258_v62, %v3687_v20  ;;  %v3690_v39 = vld [vmem:[#allocation2 + $0x58] sm:$0xff]  ;;  %3659 = vst.msk [vmem:[#allocation2 + $0x60] sm:$0xff] %vm310_vm7, %v3627_v38  ;;  %v3628_v53 = vadd.f32 %v3539_v30, %v3420_v40  ;;  %3384 = vst.msk [vmem:[#allocation2 + $0x88] sm:$0xff] %vm310_vm7, %v3352_v25  ;;  %v3767_v16 = vadd.f32 %v6264_v46, %v3728_v14  ;;  %v3688_v31 = vld [vmem:[#allocation2 + $0x48] sm:$0xff] }
 0x20e   : > { %v3729_v34 = vmul.f32 %v6258_v62, %v3690_v39  ;;  %3662 = vst.msk [vmem:[#allocation2 + $0x78] sm:$0xff] %vm310_vm7, %v3630_v22  ;;  %v3727_v57 = vmul.f32 %v6258_v62, %v3688_v31  ;;  %v4653_v13 = vpop.f32.mrb[132].mxu1  ;;  %v4687_v30 = vpop.f32.mrb[132].mxu0  ;;  %v3151_v38 = vld [vmem:[#allocation2 + $0xc0] sm:$0xff]  ;;  %v3154_v22 = vld [vmem:[#allocation2 + $0xd8] sm:$0xff] }
 0x20f   : > { %v3765_v28 = vadd.f32 %v6264_v46, %v3726_v61  ;;  %3660 = vst.msk [vmem:[#allocation2 + $0x68] sm:$0xff] %vm310_vm7, %v3628_v53  ;;  %v3799_v6 = vmax.f32 %v3767_v16, 0.0  ;;  %v3357_v41 = vadd.f32 %v4653_v13, %v3149_v44  ;;  %v3288_v55 = vpop.f32.mrb[133].mxu1  ;;  %v3568_v29 = vpop.f32.mrb[133].mxu0 }
 0x210   : > { %v3768_v21 = vadd.f32 %v6264_v46, %v3729_v34  ;;  %v3766_v11 = vadd.f32 %v6264_v46, %v3727_v57  ;;  %v3425_v26 = vld [vmem:[#allocation2 + $0x90] sm:$0xff]  ;;  %v3355_v49 = vadd.f32 %v3288_v55, %v3147_v52  ;;  %v4654_v0 = vpop.f32.mrb[134].mxu1  ;;  %v4688_v43 = vpop.f32.mrb[134].mxu0  ;;  %v3152_v34 = vld [vmem:[#allocation2 + $0xc8] sm:$0xff] }
 0x211   : > { %v3797_v47 = vmax.f32 %v3765_v28, 0.0  ;;  %3831 = vst.msk [vmem:[%s6286_s22 + $0x50] sm:$0xff] %vm310_vm7, %v3799_v6  ;;  %v3633_v9 = vadd.f32 %v4683_v32, %v3425_v26  ;;  %3389 = vst.msk [vmem:[#allocation2 + $0xb0] sm:$0xff] %vm310_vm7, %v3357_v41  ;;  %v3423_v2 = vld [vmem:[#allocation2 + $0x80] sm:$0xff]  ;;  %v3358_v18 = vadd.f32 %v4654_v0, %v3150_v27  ;;  %v3291_v15 = vpop.f32.mrb[135].mxu1  ;;  %v3571_v8 = vpop.f32.mrb[135].mxu0 }
 0x212   : > { %v3800_v10 = vmax.f32 %v3768_v21, 0.0  ;;  %v3798_v59 = vmax.f32 %v3766_v11, 0.0  ;;  %v3693_v19 = vld [vmem:[#allocation2 + $0x70] sm:$0xff]  ;;  %v3631_v58 = vadd.f32 %v3552_v1, %v3423_v2  ;;  %3387 = vst.msk [vmem:[#allocation2 + $0xa0] sm:$0xff] %vm310_vm7, %v3355_v49  ;;  %v3356_v17 = vadd.f32 %v3291_v15, %v3148_v45 }
 0x213   : > { %3829 = vst.msk [vmem:[%s6286_s22 + $0x40] sm:$0xff] %vm310_vm7, %v3797_v47  ;;  %v3426_v4 = vld [vmem:[#allocation2 + $0x98] sm:$0xff]  ;;  %v3732_v42 = vmul.f32 %v6258_v62, %v3693_v19  ;;  %3665 = vst.msk [vmem:[#allocation2 + $0x90] sm:$0xff] %vm310_vm7, %v3633_v9  ;;  %v3157_v45 = vld [vmem:[#allocation2 + $0xf0] sm:$0xff] }
 0x214   : > { %3832 = vst.msk [vmem:[%s6286_s22 + $0x58] sm:$0xff] %vm310_vm7, %v3800_v10  ;;  %v3691_v37 = vld [vmem:[#allocation2 + $0x60] sm:$0xff]  ;;  %v3634_v35 = vadd.f32 %v4684_v56, %v3426_v4  ;;  %3390 = vst.msk [vmem:[#allocation2 + $0xb8] sm:$0xff] %vm310_vm7, %v3358_v18  ;;  %v3424_v5 = vld [vmem:[#allocation2 + $0x88] sm:$0xff] }
 0x215   : > { %3830 = vst.msk [vmem:[%s6286_s22 + $0x48] sm:$0xff] %vm310_vm7, %v3798_v59  ;;  %v3730_v51 = vmul.f32 %v6258_v62, %v3691_v37  ;;  %v3694_v33 = vld [vmem:[#allocation2 + $0x78] sm:$0xff]  ;;  %3663 = vst.msk [vmem:[#allocation2 + $0x80] sm:$0xff] %vm310_vm7, %v3631_v58  ;;  %v3632_v7 = vadd.f32 %v3555_v63, %v3424_v5  ;;  %v3771_v32 = vadd.f32 %v6264_v46, %v3732_v42  ;;  %v3155_v58 = vld [vmem:[#allocation2 + $0xe0] sm:$0xff] }
 0x216   : > { %3388 = vst.msk [vmem:[#allocation2 + $0xa8] sm:$0xff] %vm310_vm7, %v3356_v17  ;;  %v3733_v12 = vmul.f32 %v6258_v62, %v3694_v33  ;;  %v3692_v50 = vld [vmem:[#allocation2 + $0x68] sm:$0xff]  ;;  %3666 = vst.msk [vmem:[#allocation2 + $0x98] sm:$0xff] %vm310_vm7, %v3634_v35  ;;  %v4657_v3 = vpop.f32.mrb[136].mxu1  ;;  %v4691_v63 = vpop.f32.mrb[136].mxu0  ;;  %v3158_v35 = vld [vmem:[#allocation2 + $0xf8] sm:$0xff] }
 0x217   : > { %v3769_v24 = vadd.f32 %v6264_v46, %v3730_v51  ;;  %v3731_v54 = vmul.f32 %v6258_v62, %v3692_v50  ;;  %3664 = vst.msk [vmem:[#allocation2 + $0x88] sm:$0xff] %vm310_vm7, %v3632_v7  ;;  %v3803_v1 = vmax.f32 %v3771_v32, 0.0  ;;  %v3361_v36 = vadd.f32 %v4657_v3, %v3153_v48  ;;  %v3304_v60 = vpop.f32.mrb[137].mxu1  ;;  %v3584_v28 = vpop.f32.mrb[137].mxu0 }
 0x218   : > { %v3772_v23 = vadd.f32 %v6264_v46, %v3733_v12  ;;  %v3429_v14 = vld [vmem:[#allocation2 + $0xb0] sm:$0xff]  ;;  %v3359_v20 = vadd.f32 %v3304_v60, %v3151_v38  ;;  %v4658_v40 = vpop.f32.mrb[138].mxu1  ;;  %v4692_v41 = vpop.f32.mrb[138].mxu0  ;;  %v3156_v12 = vld [vmem:[#allocation2 + $0xe8] sm:$0xff] }
 0x219   : > { %v3801_v25 = vmax.f32 %v3769_v24, 0.0  ;;  %v3770_v56 = vadd.f32 %v6264_v46, %v3731_v54  ;;  %3835 = vst.msk [vmem:[%s6286_s22 + $0x70] sm:$0xff] %vm310_vm7, %v3803_v1  ;;  %v3637_v39 = vadd.f32 %v4687_v30, %v3429_v14  ;;  %3393 = vst.msk [vmem:[#allocation2 + $0xd0] sm:$0xff] %vm310_vm7, %v3361_v36  ;;  %v3427_v53 = vld [vmem:[#allocation2 + $0xa0] sm:$0xff]  ;;  %v3362_v16 = vadd.f32 %v4658_v40, %v3154_v22  ;;  %v3307_v31 = vpop.f32.mrb[139].mxu1  ;;  %v3587_v26 = vpop.f32.mrb[139].mxu0 }
 0x21a   : > { %v3804_v61 = vmax.f32 %v3772_v23, 0.0  ;;  %v3697_v44 = vld [vmem:[#allocation2 + $0x90] sm:$0xff]  ;;  %v3635_v13 = vadd.f32 %v3568_v29, %v3427_v53  ;;  %3391 = vst.msk [vmem:[#allocation2 + $0xc0] sm:$0xff] %vm310_vm7, %v3359_v20  ;;  %v3360_v21 = vadd.f32 %v3307_v31, %v3152_v34 }
 0x21b   : > { %3833 = vst.msk [vmem:[%s6286_s22 + $0x60] sm:$0xff] %vm310_vm7, %v3801_v25  ;;  %v3802_v57 = vmax.f32 %v3770_v56, 0.0  ;;  %v3430_v6 = vld [vmem:[#allocation2 + $0xb8] sm:$0xff]  ;;  %v3736_v52 = vmul.f32 %v6258_v62, %v3697_v44  ;;  %3669 = vst.msk [vmem:[#allocation2 + $0xb0] sm:$0xff] %vm310_vm7, %v3637_v39 }
 0x21c   : > { %3836 = vst.msk [vmem:[%s6286_s22 + $0x78] sm:$0xff] %vm310_vm7, %v3804_v61  ;;  %v3695_v55 = vld [vmem:[#allocation2 + $0x80] sm:$0xff]  ;;  %v3638_v47 = vadd.f32 %v4688_v43, %v3430_v6  ;;  %3394 = vst.msk [vmem:[#allocation2 + $0xd8] sm:$0xff] %vm310_vm7, %v3362_v16 }
 0x21d   : > { %v3428_v11 = vld [vmem:[#allocation2 + $0xa8] sm:$0xff]  ;;  %3834 = vst.msk [vmem:[%s6286_s22 + $0x68] sm:$0xff] %vm310_vm7, %v3802_v57  ;;  %v3734_v49 = vmul.f32 %v6258_v62, %v3695_v55  ;;  %v3698_v27 = vld [vmem:[#allocation2 + $0x98] sm:$0xff]  ;;  %3667 = vst.msk [vmem:[#allocation2 + $0xa0] sm:$0xff] %vm310_vm7, %v3635_v13  ;;  %v3775_v30 = vadd.f32 %v6264_v46, %v3736_v52 }
 0x21e   : > { %v3636_v0 = vadd.f32 %v3571_v8, %v3428_v11  ;;  %3392 = vst.msk [vmem:[#allocation2 + $0xc8] sm:$0xff] %vm310_vm7, %v3360_v21  ;;  %v3737_v10 = vmul.f32 %v6258_v62, %v3698_v27  ;;  %v3696_v9 = vld [vmem:[#allocation2 + $0x88] sm:$0xff]  ;;  %3670 = vst.msk [vmem:[#allocation2 + $0xb8] sm:$0xff] %vm310_vm7, %v3638_v47  ;;  %v4661_v15 = vpop.f32.mrb[140].mxu1  ;;  %v4695_v8 = vpop.f32.mrb[140].mxu0 }
 0x21f   : > { %v3773_v2 = vadd.f32 %v6264_v46, %v3734_v49  ;;  %v3735_v18 = vmul.f32 %v6258_v62, %v3696_v9  ;;  %v3807_v29 = vmax.f32 %v3775_v30, 0.0  ;;  %v3365_v19 = vadd.f32 %v4661_v15, %v3157_v45  ;;  %v3320_v4 = vpop.f32.mrb[141].mxu1  ;;  %v3600_v24 = vpop.f32.mrb[141].mxu0 }
 0x220   : > { %3668 = vst.msk [vmem:[#allocation2 + $0xa8] sm:$0xff] %vm310_vm7, %v3636_v0  ;;  %v3776_v59 = vadd.f32 %v6264_v46, %v3737_v10  ;;  %v3433_v42 = vld [vmem:[#allocation2 + $0xd0] sm:$0xff]  ;;  %v3363_v37 = vadd.f32 %v3320_v4, %v3155_v58  ;;  %v4662_v5 = vpop.f32.mrb[142].mxu1  ;;  %v4696_v36 = vpop.f32.mrb[142].mxu0 }
 0x221   : > { %v3805_v17 = vmax.f32 %v3773_v2, 0.0  ;;  %v3774_v43 = vadd.f32 %v6264_v46, %v3735_v18  ;;  %3839 = vst.msk [vmem:[%s6286_s22 + $0x90] sm:$0xff] %vm310_vm7, %v3807_v29  ;;  %v3641_v33 = vadd.f32 %v4691_v63, %v3433_v42  ;;  %3397 = vst.msk [vmem:[#allocation2 + $0xf0] sm:$0xff] %vm310_vm7, %v3365_v19  ;;  %v3431_v7 = vld [vmem:[#allocation2 + $0xc0] sm:$0xff]  ;;  %v3366_v32 = vadd.f32 %v4662_v5, %v3158_v35  ;;  %v3323_v50 = vpop.f32.mrb[143].mxu1  ;;  %v3603_v14 = vpop.f32.mrb[143].mxu0 }
 0x222   : > { %v3808_v51 = vmax.f32 %v3776_v59, 0.0  ;;  %v3701_v48 = vld [vmem:[#allocation2 + $0xb0] sm:$0xff]  ;;  %v3639_v3 = vadd.f32 %v3584_v28, %v3431_v7  ;;  %3395 = vst.msk [vmem:[#allocation2 + $0xe0] sm:$0xff] %vm310_vm7, %v3363_v37  ;;  %v3364_v23 = vadd.f32 %v3323_v50, %v3156_v12 }
 0x223   : > { %3837 = vst.msk [vmem:[%s6286_s22 + $0x80] sm:$0xff] %vm310_vm7, %v3805_v17  ;;  %v3806_v54 = vmax.f32 %v3774_v43, 0.0  ;;  %v3434_v1 = vld [vmem:[#allocation2 + $0xd8] sm:$0xff]  ;;  %v3740_v38 = vmul.f32 %v6258_v62, %v3701_v48  ;;  %3673 = vst.msk [vmem:[#allocation2 + $0xd0] sm:$0xff] %vm310_vm7, %v3641_v33 }
 0x224   : > { %3840 = vst.msk [vmem:[%s6286_s22 + $0x98] sm:$0xff] %vm310_vm7, %v3808_v51  ;;  %v3699_v60 = vld [vmem:[#allocation2 + $0xa0] sm:$0xff]  ;;  %v3642_v25 = vadd.f32 %v4692_v41, %v3434_v1  ;;  %3398 = vst.msk [vmem:[#allocation2 + $0xf8] sm:$0xff] %vm310_vm7, %v3366_v32 }
 0x225   : > { %v3432_v56 = vld [vmem:[#allocation2 + $0xc8] sm:$0xff]  ;;  %3838 = vst.msk [vmem:[%s6286_s22 + $0x88] sm:$0xff] %vm310_vm7, %v3806_v54  ;;  %v3738_v20 = vmul.f32 %v6258_v62, %v3699_v60  ;;  %v3702_v22 = vld [vmem:[#allocation2 + $0xb8] sm:$0xff]  ;;  %3671 = vst.msk [vmem:[#allocation2 + $0xc0] sm:$0xff] %vm310_vm7, %v3639_v3  ;;  %v3779_v63 = vadd.f32 %v6264_v46, %v3740_v38 }
 0x226   : > { %v3640_v40 = vadd.f32 %v3587_v26, %v3432_v56  ;;  %3396 = vst.msk [vmem:[#allocation2 + $0xe8] sm:$0xff] %vm310_vm7, %v3364_v23  ;;  %v3741_v61 = vmul.f32 %v6258_v62, %v3702_v22  ;;  %3674 = vst.msk [vmem:[#allocation2 + $0xd8] sm:$0xff] %vm310_vm7, %v3642_v25 }
 0x227   : > { %v3700_v39 = vld [vmem:[#allocation2 + $0xa8] sm:$0xff]  ;;  %v3777_v53 = vadd.f32 %v6264_v46, %v3738_v20  ;;  %v3811_v34 = vmax.f32 %v3779_v63, 0.0 }
 0x228   : > { %v3739_v16 = vmul.f32 %v6258_v62, %v3700_v39  ;;  %3672 = vst.msk [vmem:[#allocation2 + $0xc8] sm:$0xff] %vm310_vm7, %v3640_v40  ;;  %v3780_v31 = vadd.f32 %v6264_v46, %v3741_v61  ;;  %v3437_v44 = vld [vmem:[#allocation2 + $0xf0] sm:$0xff] }
 0x229   : > { %v3809_v28 = vmax.f32 %v3777_v53, 0.0  ;;  %3843 = vst.msk [vmem:[%s6286_s22 + $0xb0] sm:$0xff] %vm310_vm7, %v3811_v34  ;;  %v3645_v6 = vadd.f32 %v4695_v8, %v3437_v44  ;;  %v3435_v21 = vld [vmem:[#allocation2 + $0xe0] sm:$0xff] }
 0x22a   : > { %v3778_v57 = vadd.f32 %v6264_v46, %v3739_v16  ;;  %v3812_v13 = vmax.f32 %v3780_v31, 0.0  ;;  %v3705_v52 = vld [vmem:[#allocation2 + $0xd0] sm:$0xff]  ;;  %v3643_v55 = vadd.f32 %v3600_v24, %v3435_v21 }
 0x22b   : > { %3841 = vst.msk [vmem:[%s6286_s22 + $0xa0] sm:$0xff] %vm310_vm7, %v3809_v28  ;;  %v3438_v47 = vld [vmem:[#allocation2 + $0xf8] sm:$0xff]  ;;  %v3744_v11 = vmul.f32 %v6258_v62, %v3705_v52  ;;  %3677 = vst.msk [vmem:[#allocation2 + $0xf0] sm:$0xff] %vm310_vm7, %v3645_v6 }
 0x22c   : > { %v3810_v41 = vmax.f32 %v3778_v57, 0.0  ;;  %3844 = vst.msk [vmem:[%s6286_s22 + $0xb8] sm:$0xff] %vm310_vm7, %v3812_v13  ;;  %v3703_v26 = vld [vmem:[#allocation2 + $0xc0] sm:$0xff]  ;;  %v3646_v49 = vadd.f32 %v4696_v36, %v3438_v47  ;;  %3675 = vst.msk [vmem:[#allocation2 + $0xe0] sm:$0xff] %vm310_vm7, %v3643_v55 }
 0x22d   : > { %v3436_v27 = vld [vmem:[#allocation2 + $0xe8] sm:$0xff]  ;;  %v3742_v0 = vmul.f32 %v6258_v62, %v3703_v26  ;;  %v3706_v30 = vld [vmem:[#allocation2 + $0xd8] sm:$0xff]  ;;  %v3783_v9 = vadd.f32 %v6264_v46, %v3744_v11 }
 0x22e   : > { %3842 = vst.msk [vmem:[%s6286_s22 + $0xa8] sm:$0xff] %vm310_vm7, %v3810_v41  ;;  %v3644_v10 = vadd.f32 %v3603_v14, %v3436_v27  ;;  %v3745_v2 = vmul.f32 %v6258_v62, %v3706_v30  ;;  %3678 = vst.msk [vmem:[#allocation2 + $0xf8] sm:$0xff] %vm310_vm7, %v3646_v49 }
 0x22f   : > { %v3704_v18 = vld [vmem:[#allocation2 + $0xc8] sm:$0xff]  ;;  %v3781_v45 = vadd.f32 %v6264_v46, %v3742_v0  ;;  %v3815_v29 = vmax.f32 %v3783_v9, 0.0 }
 0x230   : > { %v3743_v15 = vmul.f32 %v6258_v62, %v3704_v18  ;;  %3676 = vst.msk [vmem:[#allocation2 + $0xe8] sm:$0xff] %vm310_vm7, %v3644_v10  ;;  %v3784_v59 = vadd.f32 %v6264_v46, %v3745_v2 }
 0x231   : > { %v3813_v19 = vmax.f32 %v3781_v45, 0.0  ;;  %3847 = vst.msk [vmem:[%s6286_s22 + $0xd0] sm:$0xff] %vm310_vm7, %v3815_v29 }
 0x232   : > { %v3782_v58 = vadd.f32 %v6264_v46, %v3743_v15  ;;  %v3816_v4 = vmax.f32 %v3784_v59, 0.0  ;;  %v3709_v43 = vld [vmem:[#allocation2 + $0xf0] sm:$0xff] }
 0x233   : > { %3845 = vst.msk [vmem:[%s6286_s22 + $0xc0] sm:$0xff] %vm310_vm7, %v3813_v19  ;;  %v3748_v42 = vmul.f32 %v6258_v62, %v3709_v43  ;;  %v3707_v37 = vld [vmem:[#allocation2 + $0xe0] sm:$0xff] }
 0x234   : > { %v3814_v17 = vmax.f32 %v3782_v58, 0.0  ;;  %3848 = vst.msk [vmem:[%s6286_s22 + $0xd8] sm:$0xff] %vm310_vm7, %v3816_v4  ;;  %v3746_v35 = vmul.f32 %v6258_v62, %v3707_v37 }
 0x235   : > { %v3710_v5 = vld [vmem:[#allocation2 + $0xf8] sm:$0xff]  ;;  %v3787_v8 = vadd.f32 %v6264_v46, %v3748_v42 }
 0x236   : > { %3846 = vst.msk [vmem:[%s6286_s22 + $0xc8] sm:$0xff] %vm310_vm7, %v3814_v17  ;;  %v3749_v51 = vmul.f32 %v6258_v62, %v3710_v5  ;;  %v3785_v7 = vadd.f32 %v6264_v46, %v3746_v35 }
 0x237   : > { %v3708_v33 = vld [vmem:[#allocation2 + $0xe8] sm:$0xff]  ;;  %v3819_v12 = vmax.f32 %v3787_v8, 0.0 }
 0x238   : > { %v3747_v32 = vmul.f32 %v6258_v62, %v3708_v33  ;;  %v3788_v50 = vadd.f32 %v6264_v46, %v3749_v51  ;;  %v3817_v24 = vmax.f32 %v3785_v7, 0.0 }
 0x239   : > { %3851 = vst.msk [vmem:[%s6286_s22 + $0xf0] sm:$0xff] %vm310_vm7, %v3819_v12 }
 0x23a   : > { %v3786_v54 = vadd.f32 %v6264_v46, %v3747_v32  ;;  %v3820_v48 = vmax.f32 %v3788_v50, 0.0  ;;  %3849 = vst.msk [vmem:[%s6286_s22 + $0xe0] sm:$0xff] %vm310_vm7, %v3817_v24 }
 0x23c   : > { %v3818_v62 = vmax.f32 %v3786_v54, 0.0  ;;  %3852 = vst.msk [vmem:[%s6286_s22 + $0xf8] sm:$0xff] %vm310_vm7, %v3820_v48 }
 0x23e   : > { %3850 = vst.msk [vmem:[%s6286_s22 + $0xe8] sm:$0xff] %vm310_vm7, %v3818_v62 }
 0x23f   : > { %4798 = shalt.err (!%p4795_p5)
}
 0x240   : > { %s4799_s10 = scalar_lea.hbm %s6451_s5, 4096  ;;  %s4803_s13 = scalar_lea.hbm %s6513_s4, 8192 }
 0x241   : > { %p4800_p6 = scmp.ne.s32.totalorder %s6451_s5, %s4799_s10  ;;  %p4804_p10 = scmp.lt.u32.totalorder %s6451_s5, %s6513_s4 }
 0x242   : > { %p4805_p11 = scmp.lt.u32.totalorder %s4803_s13, %s4799_s10  ;;  %p4807_p13 = scmp.lt.u32.totalorder %s4799_s10, %s6451_s5 }
 0x243   : > { %p4801_p7 = pnand %p4800_p6, %p4934_p4 }
 0x244   : > { %p4806_p12 = por %p4805_p11, %p4804_p10 }
 0x245   : > { %p4802_p9 = pneg %p4801_p7 }
 0x246   : > { %p4808_p0 = por %p4807_p13, %p4806_p12 }
 0x248   : > { %p4809_p1 = pnand %p4808_p0, %p4802_p9 }
 0x24a   : > { %4812 = shalt.err (!%p4809_p1)
}
 0x24b   : > { %s4867_s22 = smov 128   ;;  %s4868_s24 = smov 8  }
 0x24c   : > { %4700 = dma.vmem_to_hbm [thread:$0]  (%p4934_p4), %s6453_s26, 4096, %s6451_s5, %s6463_s18, %s4867_s22, %s4867_s22, %s4868_s24  }
 0x24d PF: > { %p4706_p2 = scmp.ge.s32.totalorder %s4863_s20, 2  ;;  %s3883_s29 = sand.u32 1, %s4843_s15  }
 0x24e   : > { %s3884_s30 = scalar_lea.sflag [#allocation4], %s3883_s29 }
 0x24f   : > { %p4703_p3 = pnand %p4706_p2, %p4941_p8 }
 0x251   : > { %4838 = dma.done.wait (!%p4703_p3), %s3884_s30, 4096  }
 0x252   : > { %4840 = vsyncadd (!%p4703_p3), %s3884_s30, 4294963200  ;;  %s17_s20 = sadd.s32 1, %s4863_s20   ;;  %s6629_s15 = smov %s4847_s16 }
 0x253   : > { %p14_p5 = scmp.ge.s32.totalorder %s17_s20, 4   ;;  %s6630_s16 = smov %s4851_s17 }
 0x254   : > { %s6631_s17 = smov %s4947_s28  ;;  %s6632_s18 = smov %s4859_s19 }
 0x255   : > { %s6633_s19 = smov %s6635_s23  ;;  %16 = sbr.rel (!%p14_p5) target bundleno = 4 (0x4), region = 88 }
 0x25c   :  { %3889 = vsyncpa [#allocation4], 1 }
 0x25d   :  { %3891 = vsyncpa [#allocation4 + $0x1], 1 }

</bundles_post_ra>
